<compile_context>
chip_gen: v6e
topology: v6e:2x2x1
jax: 0.10.0
libtpu: 0.0.40
codegen_flags: <defaults>
</compile_context>

<pallas_src>
import jax
import jax.numpy as jnp
from jax.experimental import pallas as pl
from jax.experimental.pallas import tpu as pltpu


_VMEM = pl.BlockSpec(memory_space=pltpu.MemorySpace.VMEM)
# Tiny problem -> tiny footprint; knob kept explicit so realistic sizes can
# raise it (v5e default 16 MiB / v6e 32 MiB) or lower it for v7x's 64 MiB VMEM.
_CPARAMS = pltpu.CompilerParams(vmem_limit_bytes=32 * 1024 * 1024)


# ----------------------------------------------------------------------------
# Pallas kernels
# ----------------------------------------------------------------------------

def _norm_kernel(x_ref, xn_ref, mean_ref, std_ref):
    # x_ref: (G, M) f32 with G = B*T*2, M = (C//2)*H*W   (matches torch view)
    x = x_ref[...]
    m = x.shape[-1]
    s = jnp.sum(x, axis=-1, keepdims=True)                    # single pass:
    ss = jnp.sum(x * x, axis=-1, keepdims=True)               # sum + sum-of-squares
    mean = s * (1.0 / m)
    # unbiased variance (torch.std default); clamp negative round-off to 0
    var = jnp.maximum(ss - mean * s, 0.0) * (1.0 / (m - 1))
    inv_std = jax.lax.rsqrt(var)                               # EUP, not a VALU divide
    xn_ref[...] = ((x - mean) * inv_std).astype(xn_ref.dtype)  # bf16 out -> 1/2 HBM write
    mean_ref[...] = mean
    std_ref[...] = jnp.sqrt(var)


def _make_conv3x3_kernel(offs, lout, relu):
    """3x3 'same' conv as 9 shifted MXU matmuls over a flat-padded bf16 slab."""
    def kernel(x_ref, w_ref, b_ref, o_ref):
        # x_ref: (Cin, N*Hp*Wp) bf16   w_ref: (9, Cout, Cin) bf16   b_ref: (Cout, 1) f32
        cout = w_ref.shape[1]
        acc = jnp.zeros((cout, lout), jnp.float32)
        for t, off in enumerate(offs):                         # unrolled, 9 taps
            acc = acc + jnp.dot(w_ref[t], x_ref[:, off:off + lout],
                                preferred_element_type=jnp.float32)
        acc = acc + b_ref[...]                                 # f32 epilogue
        if relu:
            acc = jnp.maximum(acc, 0.0)
        o_ref[...] = acc.astype(o_ref.dtype)                   # (Cout, lanes) lane-dense
    return kernel


def _make_conv3x3_dual_kernel(offs, lout, relu):
    """conv3 with the skip-concat fused: two weight blocks, one accumulator."""
    def kernel(xa_ref, xb_ref, wa_ref, wb_ref, b_ref, o_ref):
        cout = wa_ref.shape[1]
        acc = jnp.zeros((cout, lout), jnp.float32)
        for t, off in enumerate(offs):
            acc = acc + jnp.dot(wa_ref[t], xa_ref[:, off:off + lout],
                                preferred_element_type=jnp.float32)
            acc = acc + jnp.dot(wb_ref[t], xb_ref[:, off:off + lout],
                                preferred_element_type=jnp.float32)
        acc = acc + b_ref[...]
        if relu:
            acc = jnp.maximum(acc, 0.0)
        o_ref[...] = acc.astype(o_ref.dtype)
    return kernel


def _make_conv1x1_unnorm_kernel(n_frames):
    """1x1 conv (no patch extraction) with the NormUnet unnorm fused in."""
    def kernel(x_ref, w_ref, b_ref, scale_ref, shift_ref, o_ref):
        # x_ref: (N, Cin, HW) bf16   w_ref: (Cout, Cin) bf16   b_ref: (Cout, 1) f32
        # scale/shift: (N, Cout, 1) f32  (std / mean broadcast per real/imag group)
        w = w_ref[...]
        b = b_ref[...]
        for i in range(n_frames):                              # N=4, unrolled
            acc = jnp.dot(w, x_ref[i], preferred_element_type=jnp.float32)
            o_ref[i] = (acc + b) * scale_ref[i] + shift_ref[i]  # unnorm epilogue, f32
    return kernel


# ----------------------------------------------------------------------------
# Flat-padded layout helpers (XLA glue: 1x data, no 9x im2col blow-up)
# ----------------------------------------------------------------------------

def _flatpad(x):
    """(N, C, H, W) -> bf16 (C, N*Hp*Wp) zero-padded flat slab + geometry."""
    n, c, h, w = x.shape
    hp, wp = h + 2, w + 2
    fp = hp * wp
    xt = jnp.transpose(x, (1, 0, 2, 3))
    xp = jnp.pad(xt, ((0, 0), (0, 0), (1, 1), (1, 1)))
    return xp.reshape(c, n * fp).astype(jnp.bfloat16), (n, h, w, hp, wp, fp)


def _conv_geom(geom):
    n, h, w, hp, wp, fp = geom
    # last valid output base index + 1; guarantees off + lout <= n*fp for all taps
    lout = (n - 1) * fp + (h - 1) * wp + w
    offs = tuple(ky * wp + kx for ky in range(3) for kx in range(3))
    return offs, lout


def _unflatten(o_flat, geom):
    """(Cout, lout) flat-padded-coords output -> (N, Cout, H, W)."""
    n, h, w, hp, wp, fp = geom
    cout, lout = o_flat.shape
    o = jnp.pad(o_flat, ((0, 0), (0, n * fp - lout)))
    o = o.reshape(cout, n, hp, wp)[:, :, :h, :w]
    return jnp.transpose(o, (1, 0, 2, 3))


# ----------------------------------------------------------------------------
# Pallas wrappers
# ----------------------------------------------------------------------------

def norm_pallas(xg):
    g, m = xg.shape
    return pl.pallas_call(
        _norm_kernel,
        out_shape=(jax.ShapeDtypeStruct((g, m), jnp.bfloat16),
                   jax.ShapeDtypeStruct((g, 1), jnp.float32),
                   jax.ShapeDtypeStruct((g, 1), jnp.float32)),
        in_specs=[_VMEM],
        out_specs=(_VMEM, _VMEM, _VMEM),
        compiler_params=_CPARAMS,
    )(xg)


def conv3x3_pallas(x, w, bias, relu):
    """'same' 3x3 conv, NCHW in / NCHW out, all frames in one lane-dense matmul."""
    xflat, geom = _flatpad(x)
    offs, lout = _conv_geom(geom)
    cout, cin = w.shape[0], w.shape[1]
    wtaps = jnp.transpose(w, (2, 3, 0, 1)).reshape(9, cout, cin).astype(jnp.bfloat16)
    bcol = bias.astype(jnp.float32).reshape(cout, 1)
    o_flat = pl.pallas_call(
        _make_conv3x3_kernel(offs, lout, relu),
        out_shape=jax.ShapeDtypeStruct((cout, lout), jnp.bfloat16),
        in_specs=[_VMEM, _VMEM, _VMEM],
        out_specs=_VMEM,
        compiler_params=_CPARAMS,
    )(xflat, wtaps, bcol)
    return _unflatten(o_flat, geom)


def conv3x3_dual_pallas(xa, xb, wa, wb, bias, relu):
    """3x3 conv over concat([xa, xb], channel) WITHOUT materializing the concat."""
    xaf, geom = _flatpad(xa)
    xbf, _ = _flatpad(xb)
    offs, lout = _conv_geom(geom)
    cout = wa.shape[0]
    wat = jnp.transpose(wa, (2, 3, 0, 1)).reshape(9, cout, wa.shape[1]).astype(jnp.bfloat16)
    wbt = jnp.transpose(wb, (2, 3, 0, 1)).reshape(9, cout, wb.shape[1]).astype(jnp.bfloat16)
    bcol = bias.astype(jnp.float32).reshape(cout, 1)
    o_flat = pl.pallas_call(
        _make_conv3x3_dual_kernel(offs, lout, relu),
        out_shape=jax.ShapeDtypeStruct((cout, lout), jnp.bfloat16),
        in_specs=[_VMEM] * 5,
        out_specs=_VMEM,
        compiler_params=_CPARAMS,
    )(xaf, xbf, wat, wbt, bcol)
    return _unflatten(o_flat, geom)


def conv1x1_unnorm_pallas(x, w, bias, mean, std, c_half):
    """1x1 conv + fused NormUnet unnorm (x*std + mean per (frame, re/im) group)."""
    n, cin, h, wd = x.shape
    cout = w.shape[0]
    hw = h * wd
    xr = x.reshape(n, cin, hw).astype(jnp.bfloat16)
    wmat = w.reshape(cout, cin).astype(jnp.bfloat16)
    bcol = bias.astype(jnp.float32).reshape(cout, 1)
    # channels [0, C) are real (group 0), [C, 2C) imaginary (group 1)
    gidx = (jnp.arange(cout) >= c_half).astype(jnp.int32)
    scale = jnp.take(std.reshape(n, 2), gidx, axis=1)[:, :, None].astype(jnp.float32)
    shift = jnp.take(mean.reshape(n, 2), gidx, axis=1)[:, :, None].astype(jnp.float32)
    out = pl.pallas_call(
        _make_conv1x1_unnorm_kernel(n),
        out_shape=jax.ShapeDtypeStruct((n, cout, hw), jnp.float32),
        in_specs=[_VMEM] * 5,
        out_specs=_VMEM,
        compiler_params=_CPARAMS,
    )(xr, wmat, bcol, scale, shift)
    return out.reshape(n, cout, h, wd)


# ----------------------------------------------------------------------------
# Pure-JAX references (mirror the bf16-in / f32-accumulate numerics)
# ----------------------------------------------------------------------------

def norm_ref(xg):
    mean = jnp.mean(xg, axis=-1, keepdims=True)
    std = jnp.std(xg, axis=-1, keepdims=True, ddof=1)   # torch.std default (unbiased)
    return ((xg - mean) / std).astype(jnp.bfloat16), mean, std


def conv3x3_ref(x, w, bias, relu):
    out = jax.lax.conv_general_dilated(
        x.astype(jnp.bfloat16), w.astype(jnp.bfloat16), (1, 1), "SAME",
        dimension_numbers=("NCHW", "OIHW", "NCHW"),
        preferred_element_type=jnp.float32)
    out = out + bias.astype(jnp.float32)[None, :, None, None]
    if relu:
        out = jnp.maximum(out, 0.0)
    return out.astype(jnp.bfloat16)


def conv3x3_dual_ref(xa, xb, wa, wb, bias, relu):
    cat = jnp.concatenate([xa, xb], axis=1)
    w = jnp.concatenate([wa, wb], axis=1)
    return conv3x3_ref(cat, w, bias, relu)


def conv1x1_unnorm_ref(x, w, bias, mean, std, c_half):
    n = x.shape[0]
    cout = w.shape[0]
    out = jax.lax.conv_general_dilated(
        x.astype(jnp.bfloat16), w.astype(jnp.bfloat16), (1, 1), "SAME",
        dimension_numbers=("NCHW", "OIHW", "NCHW"),
        preferred_element_type=jnp.float32)
    out = out + bias.astype(jnp.float32)[None, :, None, None]
    gidx = (jnp.arange(cout) >= c_half).astype(jnp.int32)
    scale = jnp.take(std.reshape(n, 2), gidx, axis=1)[:, :, None, None]
    shift = jnp.take(mean.reshape(n, 2), gidx, axis=1)[:, :, None, None]
    return out * scale + shift


# ----------------------------------------------------------------------------
# Synthetic inner U-Net + NormUnet forward (shared flow, ops-table switched)
# ----------------------------------------------------------------------------

def init_unet_params(key, chans, in_ch, out_ch):
    def conv_init(k, co, ci, ksz):
        k1, k2 = jax.random.split(k)
        fan_in = ci * ksz * ksz
        w = jax.random.normal(k1, (co, ci, ksz, ksz), jnp.float32) / jnp.sqrt(fan_in)
        b = 0.01 * jax.random.normal(k2, (co,), jnp.float32)
        return w, b
    ks = jax.random.split(key, 4)
    return {
        "conv1": conv_init(ks[0], chans, in_ch, 3),
        "conv2": conv_init(ks[1], 2 * chans, chans, 3),
        "conv3": conv_init(ks[2], chans, 3 * chans, 3),
        "conv4": conv_init(ks[3], out_ch, chans, 1),
    }


# TODO(synk): 2x2 avgpool / nearest upsample remain XLA glue; they could be
# folded into the neighbouring conv kernels via stride-2 pl.ds loads later.
def avgpool2(x):
    n, c, h, w = x.shape
    return (x.astype(jnp.float32).reshape(n, c, h // 2, 2, w // 2, 2)
            .mean(axis=(3, 5)).astype(jnp.bfloat16))


def upsample2(x):
    return jnp.repeat(jnp.repeat(x, 2, axis=2), 2, axis=3)


def norm_unet_forward(params, x, ops):
    # x: (B, T, C, H, W, 2) -- last dim is complex (real/imag)
    b, t, c, h, w, two = x.shape
    if two != 2:
        raise ValueError("Last dimension must be 2 for complex.")
    n = b * t
    # complex_to_chan_dim: (B,T,C,H,W,2) -> (B,T,2C,H,W) [real chans, then imag]
    xc = jnp.transpose(x, (0, 1, 5, 2, 3, 4)).reshape(b, t, 2 * c, h, w)
    # norm over (C*H*W) per (b, t, real/imag) group
    xg = xc.reshape(n * 2, c * h * w)
    xn, mean, std = ops["norm"](xg)
    xn = xn.reshape(n, 2 * c, h, w)                            # bf16 activations
    # ---- synthetic inner U-Net (frames treated as batch) ----
    e1 = ops["conv3"](xn, *params["conv1"], True)              # (N, ch, H, W)
    ch = e1.shape[1]
    d = avgpool2(e1)                                           # (N, ch, H/2, W/2)
    bott = ops["conv3"](d, *params["conv2"], True)             # (N, 2ch, H/2, W/2)
    up = upsample2(bott)                                       # (N, 2ch, H, W)
    w3, b3 = params["conv3"]
    d1 = ops["conv3_dual"](up, e1, w3[:, :2 * ch], w3[:, 2 * ch:], b3, True)
    w4, b4 = params["conv4"]
    out = ops["conv1_unnorm"](d1, w4, b4, mean, std, c)        # unnorm fused, f32
    # chan_complex_to_last_dim: (B,T,2C,H,W) -> (B,T,C,H,W,2)
    xo = out.reshape(b, t, 2, c, h, w)
    return jnp.transpose(xo, (0, 1, 3, 4, 5, 2))


PALLAS_OPS = dict(norm=norm_pallas, conv3=conv3x3_pallas,
                  conv3_dual=conv3x3_dual_pallas, conv1_unnorm=conv1x1_unnorm_pallas)
REF_OPS = dict(norm=norm_ref, conv3=conv3x3_ref,
               conv3_dual=conv3x3_dual_ref, conv1_unnorm=conv1x1_unnorm_ref)


# ----------------------------------------------------------------------------
# Main
# ----------------------------------------------------------------------------

if __name__ == "__main__":
    key = jax.random.PRNGKey(0)
    kx, kp = jax.random.split(key)

    B, T, C, H, W = 2, 2, 2, 16, 16
    x = jax.random.normal(kx, (B, T, C, H, W, 2), jnp.float32)
    params = init_unet_params(kp, chans=8, in_ch=2 * C, out_ch=2 * C)

    fwd_pallas = jax.jit(lambda p, v: norm_unet_forward(p, v, PALLAS_OPS))
    fwd_ref = jax.jit(lambda p, v: norm_unet_forward(p, v, REF_OPS))

    out = jax.block_until_ready(fwd_pallas(params, x))
    ref = jax.block_until_ready(fwd_ref(params, x))

    assert out.shape == (B, T, C, H, W, 2), out.shape
    assert bool(jnp.all(jnp.isfinite(out)))
    max_err = float(jnp.max(jnp.abs(out - ref)))
    assert bool(jnp.allclose(out, ref, atol=2e-2, rtol=2e-2)), max_err

    print("KERNEL_OK")
</pallas_src>

<mosaic_0001>
module attributes {stable_mosaic.version = 11 : i64} {
  func.func @_norm_kernel(%arg0: memref<8x512xf32, #tpu.memory_space<vmem>>, %arg1: memref<8x512xbf16, #tpu.memory_space<vmem>>, %arg2: memref<8x1xf32, #tpu.memory_space<vmem>>, %arg3: memref<8x1xf32, #tpu.memory_space<vmem>>) attributes {dimension_semantics = [], scalar_prefetch = 0 : i64, scratch_operands = 0 : i64, tpu.core_type = #tpu.core_type<tc>} {
    %c0 = arith.constant 0 : index
    %c0_0 = arith.constant 0 : index
    %0 = vector.load %arg0[%c0, %c0_0] : memref<8x512xf32, #tpu.memory_space<vmem>>, vector<8x512xf32>
    %cst = arith.constant dense<0.000000e+00> : vector<8xf32>
    %1 = vector.multi_reduction <add>, %0, %cst [1] : vector<8x512xf32> to vector<8xf32>
    %2 = vector.shape_cast %1 : vector<8xf32> to vector<8x1xf32>
    %3 = arith.mulf %0, %0 : vector<8x512xf32>
    %cst_1 = arith.constant dense<0.000000e+00> : vector<8xf32>
    %4 = vector.multi_reduction <add>, %3, %cst_1 [1] : vector<8x512xf32> to vector<8xf32>
    %5 = vector.shape_cast %4 : vector<8xf32> to vector<8x1xf32>
    %cst_2 = arith.constant 0.001953125 : f32
    %6 = vector.broadcast %cst_2 : f32 to vector<8x1xf32>
    %7 = arith.mulf %2, %6 : vector<8x1xf32>
    %8 = arith.mulf %7, %2 : vector<8x1xf32>
    %9 = arith.subf %5, %8 : vector<8x1xf32>
    %cst_3 = arith.constant 0.000000e+00 : f32
    %10 = vector.broadcast %cst_3 : f32 to vector<8x1xf32>
    %11 = arith.maximumf %9, %10 : vector<8x1xf32>
    %cst_4 = arith.constant 0.00195694715 : f32
    %12 = vector.broadcast %cst_4 : f32 to vector<8x1xf32>
    %13 = arith.mulf %11, %12 : vector<8x1xf32>
    %14 = math.rsqrt %13 : vector<8x1xf32>
    %15 = vector.broadcast %7 : vector<8x1xf32> to vector<8x512xf32>
    %16 = arith.subf %0, %15 : vector<8x512xf32>
    %17 = vector.broadcast %14 : vector<8x1xf32> to vector<8x512xf32>
    %18 = arith.mulf %16, %17 : vector<8x512xf32>
    %19 = arith.truncf %18 : vector<8x512xf32> to vector<8x512xbf16>
    %c0_5 = arith.constant 0 : index
    %c0_6 = arith.constant 0 : index
    %20 = vector.load %arg1[%c0_5, %c0_6] : memref<8x512xbf16, #tpu.memory_space<vmem>>, vector<8x512xbf16>
    tpu.vector_store %arg1[%c0_5, %c0_6], %19 {strides = array<i32>} : memref<8x512xbf16, #tpu.memory_space<vmem>>, vector<8x512xbf16>,
    %c0_7 = arith.constant 0 : index
    %c0_8 = arith.constant 0 : index
    %21 = vector.load %arg2[%c0_7, %c0_8] : memref<8x1xf32, #tpu.memory_space<vmem>>, vector<8x1xf32>
    tpu.vector_store %arg2[%c0_7, %c0_8], %7 {strides = array<i32>} : memref<8x1xf32, #tpu.memory_space<vmem>>, vector<8x1xf32>,
    %22 = math.sqrt %13 : vector<8x1xf32>
    %c0_9 = arith.constant 0 : index
    %c0_10 = arith.constant 0 : index
    %23 = vector.load %arg3[%c0_9, %c0_10] : memref<8x1xf32, #tpu.memory_space<vmem>>, vector<8x1xf32>
    tpu.vector_store %arg3[%c0_9, %c0_10], %22 {strides = array<i32>} : memref<8x1xf32, #tpu.memory_space<vmem>>, vector<8x1xf32>,
    return
  }
}

module attributes {stable_mosaic.version = 11 : i64} {
  func.func @kernel(%arg0: memref<4x1296xbf16, #tpu.memory_space<vmem>>, %arg1: memref<9x8x4xbf16, #tpu.memory_space<vmem>>, %arg2: memref<8x1xf32, #tpu.memory_space<vmem>>, %arg3: memref<8x1258xbf16, #tpu.memory_space<vmem>>) attributes {dimension_semantics = [], scalar_prefetch = 0 : i64, scratch_operands = 0 : i64, tpu.core_type = #tpu.core_type<tc>} {
    %cst = arith.constant 0.000000e+00 : f32
    %0 = vector.broadcast %cst : f32 to vector<8x1258xf32>
    %c0 = arith.constant 0 : index
    %c0_0 = arith.constant 0 : index
    %c0_1 = arith.constant 0 : index
    %1 = vector.load %arg1[%c0, %c0_0, %c0_1] : memref<9x8x4xbf16, #tpu.memory_space<vmem>>, vector<1x8x4xbf16>
    %2 = vector.shape_cast %1 : vector<1x8x4xbf16> to vector<8x4xbf16>
    %c0_2 = arith.constant 0 : index
    %c0_3 = arith.constant 0 : index
    %3 = vector.load %arg0[%c0_2, %c0_3] : memref<4x1296xbf16, #tpu.memory_space<vmem>>, vector<4x1258xbf16>
    %cst_4 = arith.constant dense<0.000000e+00> : vector<8x1258xf32>
    %4 = tpu.matmul %2, %3, %cst_4 {dimension_numbers = #tpu.dot_dimension_numbers<[1], [0], [0], [1], [0, 0, 1, 1], [], []>} : vector<8x4xbf16>, vector<4x1258xbf16>, vector<8x1258xf32> -> vector<8x1258xf32>
    %5 = arith.addf %0, %4 : vector<8x1258xf32>
    %c1 = arith.constant 1 : index
    %c0_5 = arith.constant 0 : index
    %c0_6 = arith.constant 0 : index
    %6 = vector.load %arg1[%c1, %c0_5, %c0_6] : memref<9x8x4xbf16, #tpu.memory_space<vmem>>, vector<1x8x4xbf16>
    %7 = vector.shape_cast %6 : vector<1x8x4xbf16> to vector<8x4xbf16>
    %c0_7 = arith.constant 0 : index
    %c1_8 = arith.constant 1 : index
    %8 = vector.load %arg0[%c0_7, %c1_8] : memref<4x1296xbf16, #tpu.memory_space<vmem>>, vector<4x1258xbf16>
    %cst_9 = arith.constant dense<0.000000e+00> : vector<8x1258xf32>
    %9 = tpu.matmul %7, %8, %cst_9 {dimension_numbers = #tpu.dot_dimension_numbers<[1], [0], [0], [1], [0, 0, 1, 1], [], []>} : vector<8x4xbf16>, vector<4x1258xbf16>, vector<8x1258xf32> -> vector<8x1258xf32>
    %10 = arith.addf %5, %9 : vector<8x1258xf32>
    %c2 = arith.constant 2 : index
    %c0_10 = arith.constant 0 : index
    %c0_11 = arith.constant 0 : index
    %11 = vector.load %arg1[%c2, %c0_10, %c0_11] : memref<9x8x4xbf16, #tpu.memory_space<vmem>>, vector<1x8x4xbf16>
    %12 = vector.shape_cast %11 : vector<1x8x4xbf16> to vector<8x4xbf16>
    %c0_12 = arith.constant 0 : index
    %c2_13 = arith.constant 2 : index
    %13 = vector.load %arg0[%c0_12, %c2_13] : memref<4x1296xbf16, #tpu.memory_space<vmem>>, vector<4x1258xbf16>
    %cst_14 = arith.constant dense<0.000000e+00> : vector<8x1258xf32>
    %14 = tpu.matmul %12, %13, %cst_14 {dimension_numbers = #tpu.dot_dimension_numbers<[1], [0], [0], [1], [0, 0, 1, 1], [], []>} : vector<8x4xbf16>, vector<4x1258xbf16>, vector<8x1258xf32> -> vector<8x1258xf32>
    %15 = arith.addf %10, %14 : vector<8x1258xf32>
    %c3 = arith.constant 3 : index
    %c0_15 = arith.constant 0 : index
    %c0_16 = arith.constant 0 : index
    %16 = vector.load %arg1[%c3, %c0_15, %c0_16] : memref<9x8x4xbf16, #tpu.memory_space<vmem>>, vector<1x8x4xbf16>
    %17 = vector.shape_cast %16 : vector<1x8x4xbf16> to vector<8x4xbf16>
    %c0_17 = arith.constant 0 : index
    %c18 = arith.constant 18 : index
    %18 = vector.load %arg0[%c0_17, %c18] : memref<4x1296xbf16, #tpu.memory_space<vmem>>, vector<4x1258xbf16>
    %cst_18 = arith.constant dense<0.000000e+00> : vector<8x1258xf32>
    %19 = tpu.matmul %17, %18, %cst_18 {dimension_numbers = #tpu.dot_dimension_numbers<[1], [0], [0], [1], [0, 0, 1, 1], [], []>} : vector<8x4xbf16>, vector<4x1258xbf16>, vector<8x1258xf32> -> vector<8x1258xf32>
    %20 = arith.addf %15, %19 : vector<8x1258xf32>
    %c4 = arith.constant 4 : index
    %c0_19 = arith.constant 0 : index
    %c0_20 = arith.constant 0 : index
    %21 = vector.load %arg1[%c4, %c0_19, %c0_20] : memref<9x8x4xbf16, #tpu.memory_space<vmem>>, vector<1x8x4xbf16>
    %22 = vector.shape_cast %21 : vector<1x8x4xbf16> to vector<8x4xbf16>
    %c0_21 = arith.constant 0 : index
    %c19 = arith.constant 19 : index
    %23 = vector.load %arg0[%c0_21, %c19] : memref<4x1296xbf16, #tpu.memory_space<vmem>>, vector<4x1258xbf16>
    %cst_22 = arith.constant dense<0.000000e+00> : vector<8x1258xf32>
    %24 = tpu.matmul %22, %23, %cst_22 {dimension_numbers = #tpu.dot_dimension_numbers<[1], [0], [0], [1], [0, 0, 1, 1], [], []>} : vector<8x4xbf16>, vector<4x1258xbf16>, vector<8x1258xf32> -> vector<8x1258xf32>
    %25 = arith.addf %20, %24 : vector<8x1258xf32>
    %c5 = arith.constant 5 : index
    %c0_23 = arith.constant 0 : index
    %c0_24 = arith.constant 0 : index
    %26 = vector.load %arg1[%c5, %c0_23, %c0_24] : memref<9x8x4xbf16, #tpu.memory_space<vmem>>, vector<1x8x4xbf16>
    %27 = vector.shape_cast %26 : vector<1x8x4xbf16> to vector<8x4xbf16>
    %c0_25 = arith.constant 0 : index
    %c20 = arith.constant 20 : index
    %28 = vector.load %arg0[%c0_25, %c20] : memref<4x1296xbf16, #tpu.memory_space<vmem>>, vector<4x1258xbf16>
    %cst_26 = arith.constant dense<0.000000e+00> : vector<8x1258xf32>
    %29 = tpu.matmul %27, %28, %cst_26 {dimension_numbers = #tpu.dot_dimension_numbers<[1], [0], [0], [1], [0, 0, 1, 1], [], []>} : vector<8x4xbf16>, vector<4x1258xbf16>, vector<8x1258xf32> -> vector<8x1258xf32>
    %30 = arith.addf %25, %29 : vector<8x1258xf32>
    %c6 = arith.constant 6 : index
    %c0_27 = arith.constant 0 : index
    %c0_28 = arith.constant 0 : index
    %31 = vector.load %arg1[%c6, %c0_27, %c0_28] : memref<9x8x4xbf16, #tpu.memory_space<vmem>>, vector<1x8x4xbf16>
    %32 = vector.shape_cast %31 : vector<1x8x4xbf16> to vector<8x4xbf16>
    %c0_29 = arith.constant 0 : index
    %c36 = arith.constant 36 : index
    %33 = vector.load %arg0[%c0_29, %c36] : memref<4x1296xbf16, #tpu.memory_space<vmem>>, vector<4x1258xbf16>
    %cst_30 = arith.constant dense<0.000000e+00> : vector<8x1258xf32>
    %34 = tpu.matmul %32, %33, %cst_30 {dimension_numbers = #tpu.dot_dimension_numbers<[1], [0], [0], [1], [0, 0, 1, 1], [], []>} : vector<8x4xbf16>, vector<4x1258xbf16>, vector<8x1258xf32> -> vector<8x1258xf32>
    %35 = arith.addf %30, %34 : vector<8x1258xf32>
    %c7 = arith.constant 7 : index
    %c0_31 = arith.constant 0 : index
    %c0_32 = arith.constant 0 : index
    %36 = vector.load %arg1[%c7, %c0_31, %c0_32] : memref<9x8x4xbf16, #tpu.memory_space<vmem>>, vector<1x8x4xbf16>
    %37 = vector.shape_cast %36 : vector<1x8x4xbf16> to vector<8x4xbf16>
    %c0_33 = arith.constant 0 : index
    %c37 = arith.constant 37 : index
    %38 = vector.load %arg0[%c0_33, %c37] : memref<4x1296xbf16, #tpu.memory_space<vmem>>, vector<4x1258xbf16>
    %cst_34 = arith.constant dense<0.000000e+00> : vector<8x1258xf32>
    %39 = tpu.matmul %37, %38, %cst_34 {dimension_numbers = #tpu.dot_dimension_numbers<[1], [0], [0], [1], [0, 0, 1, 1], [], []>} : vector<8x4xbf16>, vector<4x1258xbf16>, vector<8x1258xf32> -> vector<8x1258xf32>
    %40 = arith.addf %35, %39 : vector<8x1258xf32>
    %c8 = arith.constant 8 : index
    %c0_35 = arith.constant 0 : index
    %c0_36 = arith.constant 0 : index
    %41 = vector.load %arg1[%c8, %c0_35, %c0_36] : memref<9x8x4xbf16, #tpu.memory_space<vmem>>, vector<1x8x4xbf16>
    %42 = vector.shape_cast %41 : vector<1x8x4xbf16> to vector<8x4xbf16>
    %c0_37 = arith.constant 0 : index
    %c38 = arith.constant 38 : index
    %43 = vector.load %arg0[%c0_37, %c38] : memref<4x1296xbf16, #tpu.memory_space<vmem>>, vector<4x1258xbf16>
    %cst_38 = arith.constant dense<0.000000e+00> : vector<8x1258xf32>
    %44 = tpu.matmul %42, %43, %cst_38 {dimension_numbers = #tpu.dot_dimension_numbers<[1], [0], [0], [1], [0, 0, 1, 1], [], []>} : vector<8x4xbf16>, vector<4x1258xbf16>, vector<8x1258xf32> -> vector<8x1258xf32>
    %45 = arith.addf %40, %44 : vector<8x1258xf32>
    %c0_39 = arith.constant 0 : index
    %c0_40 = arith.constant 0 : index
    %46 = vector.load %arg2[%c0_39, %c0_40] : memref<8x1xf32, #tpu.memory_space<vmem>>, vector<8x1xf32>
    %47 = vector.broadcast %46 : vector<8x1xf32> to vector<8x1258xf32>
    %48 = arith.addf %45, %47 : vector<8x1258xf32>
    %cst_41 = arith.constant 0.000000e+00 : f32
    %49 = vector.broadcast %cst_41 : f32 to vector<8x1258xf32>
    %50 = arith.maximumf %48, %49 : vector<8x1258xf32>
    %51 = arith.truncf %50 : vector<8x1258xf32> to vector<8x1258xbf16>
    %c0_42 = arith.constant 0 : index
    %c0_43 = arith.constant 0 : index
    %52 = vector.load %arg3[%c0_42, %c0_43] : memref<8x1258xbf16, #tpu.memory_space<vmem>>, vector<8x1258xbf16>
    tpu.vector_store %arg3[%c0_42, %c0_43], %51 {strides = array<i32>} : memref<8x1258xbf16, #tpu.memory_space<vmem>>, vector<8x1258xbf16>,
    return
  }
}

module attributes {stable_mosaic.version = 11 : i64} {
  func.func @kernel(%arg0: memref<8x400xbf16, #tpu.memory_space<vmem>>, %arg1: memref<9x16x8xbf16, #tpu.memory_space<vmem>>, %arg2: memref<16x1xf32, #tpu.memory_space<vmem>>, %arg3: memref<16x378xbf16, #tpu.memory_space<vmem>>) attributes {dimension_semantics = [], scalar_prefetch = 0 : i64, scratch_operands = 0 : i64, tpu.core_type = #tpu.core_type<tc>} {
    %cst = arith.constant 0.000000e+00 : f32
    %0 = vector.broadcast %cst : f32 to vector<16x378xf32>
    %c0 = arith.constant 0 : index
    %c0_0 = arith.constant 0 : index
    %c0_1 = arith.constant 0 : index
    %1 = vector.load %arg1[%c0, %c0_0, %c0_1] : memref<9x16x8xbf16, #tpu.memory_space<vmem>>, vector<1x16x8xbf16>
    %2 = vector.shape_cast %1 : vector<1x16x8xbf16> to vector<16x8xbf16>
    %c0_2 = arith.constant 0 : index
    %c0_3 = arith.constant 0 : index
    %3 = vector.load %arg0[%c0_2, %c0_3] : memref<8x400xbf16, #tpu.memory_space<vmem>>, vector<8x378xbf16>
    %cst_4 = arith.constant dense<0.000000e+00> : vector<16x378xf32>
    %4 = tpu.matmul %2, %3, %cst_4 {dimension_numbers = #tpu.dot_dimension_numbers<[1], [0], [0], [1], [0, 0, 1, 1], [], []>} : vector<16x8xbf16>, vector<8x378xbf16>, vector<16x378xf32> -> vector<16x378xf32>
    %5 = arith.addf %0, %4 : vector<16x378xf32>
    %c1 = arith.constant 1 : index
    %c0_5 = arith.constant 0 : index
    %c0_6 = arith.constant 0 : index
    %6 = vector.load %arg1[%c1, %c0_5, %c0_6] : memref<9x16x8xbf16, #tpu.memory_space<vmem>>, vector<1x16x8xbf16>
    %7 = vector.shape_cast %6 : vector<1x16x8xbf16> to vector<16x8xbf16>
    %c0_7 = arith.constant 0 : index
    %c1_8 = arith.constant 1 : index
    %8 = vector.load %arg0[%c0_7, %c1_8] : memref<8x400xbf16, #tpu.memory_space<vmem>>, vector<8x378xbf16>
    %cst_9 = arith.constant dense<0.000000e+00> : vector<16x378xf32>
    %9 = tpu.matmul %7, %8, %cst_9 {dimension_numbers = #tpu.dot_dimension_numbers<[1], [0], [0], [1], [0, 0, 1, 1], [], []>} : vector<16x8xbf16>, vector<8x378xbf16>, vector<16x378xf32> -> vector<16x378xf32>
    %10 = arith.addf %5, %9 : vector<16x378xf32>
    %c2 = arith.constant 2 : index
    %c0_10 = arith.constant 0 : index
    %c0_11 = arith.constant 0 : index
    %11 = vector.load %arg1[%c2, %c0_10, %c0_11] : memref<9x16x8xbf16, #tpu.memory_space<vmem>>, vector<1x16x8xbf16>
    %12 = vector.shape_cast %11 : vector<1x16x8xbf16> to vector<16x8xbf16>
    %c0_12 = arith.constant 0 : index
    %c2_13 = arith.constant 2 : index
    %13 = vector.load %arg0[%c0_12, %c2_13] : memref<8x400xbf16, #tpu.memory_space<vmem>>, vector<8x378xbf16>
    %cst_14 = arith.constant dense<0.000000e+00> : vector<16x378xf32>
    %14 = tpu.matmul %12, %13, %cst_14 {dimension_numbers = #tpu.dot_dimension_numbers<[1], [0], [0], [1], [0, 0, 1, 1], [], []>} : vector<16x8xbf16>, vector<8x378xbf16>, vector<16x378xf32> -> vector<16x378xf32>
    %15 = arith.addf %10, %14 : vector<16x378xf32>
    %c3 = arith.constant 3 : index
    %c0_15 = arith.constant 0 : index
    %c0_16 = arith.constant 0 : index
    %16 = vector.load %arg1[%c3, %c0_15, %c0_16] : memref<9x16x8xbf16, #tpu.memory_space<vmem>>, vector<1x16x8xbf16>
    %17 = vector.shape_cast %16 : vector<1x16x8xbf16> to vector<16x8xbf16>
    %c0_17 = arith.constant 0 : index
    %c10 = arith.constant 10 : index
    %18 = vector.load %arg0[%c0_17, %c10] : memref<8x400xbf16, #tpu.memory_space<vmem>>, vector<8x378xbf16>
    %cst_18 = arith.constant dense<0.000000e+00> : vector<16x378xf32>
    %19 = tpu.matmul %17, %18, %cst_18 {dimension_numbers = #tpu.dot_dimension_numbers<[1], [0], [0], [1], [0, 0, 1, 1], [], []>} : vector<16x8xbf16>, vector<8x378xbf16>, vector<16x378xf32> -> vector<16x378xf32>
    %20 = arith.addf %15, %19 : vector<16x378xf32>
    %c4 = arith.constant 4 : index
    %c0_19 = arith.constant 0 : index
    %c0_20 = arith.constant 0 : index
    %21 = vector.load %arg1[%c4, %c0_19, %c0_20] : memref<9x16x8xbf16, #tpu.memory_space<vmem>>, vector<1x16x8xbf16>
    %22 = vector.shape_cast %21 : vector<1x16x8xbf16> to vector<16x8xbf16>
    %c0_21 = arith.constant 0 : index
    %c11 = arith.constant 11 : index
    %23 = vector.load %arg0[%c0_21, %c11] : memref<8x400xbf16, #tpu.memory_space<vmem>>, vector<8x378xbf16>
    %cst_22 = arith.constant dense<0.000000e+00> : vector<16x378xf32>
    %24 = tpu.matmul %22, %23, %cst_22 {dimension_numbers = #tpu.dot_dimension_numbers<[1], [0], [0], [1], [0, 0, 1, 1], [], []>} : vector<16x8xbf16>, vector<8x378xbf16>, vector<16x378xf32> -> vector<16x378xf32>
    %25 = arith.addf %20, %24 : vector<16x378xf32>
    %c5 = arith.constant 5 : index
    %c0_23 = arith.constant 0 : index
    %c0_24 = arith.constant 0 : index
    %26 = vector.load %arg1[%c5, %c0_23, %c0_24] : memref<9x16x8xbf16, #tpu.memory_space<vmem>>, vector<1x16x8xbf16>
    %27 = vector.shape_cast %26 : vector<1x16x8xbf16> to vector<16x8xbf16>
    %c0_25 = arith.constant 0 : index
    %c12 = arith.constant 12 : index
    %28 = vector.load %arg0[%c0_25, %c12] : memref<8x400xbf16, #tpu.memory_space<vmem>>, vector<8x378xbf16>
    %cst_26 = arith.constant dense<0.000000e+00> : vector<16x378xf32>
    %29 = tpu.matmul %27, %28, %cst_26 {dimension_numbers = #tpu.dot_dimension_numbers<[1], [0], [0], [1], [0, 0, 1, 1], [], []>} : vector<16x8xbf16>, vector<8x378xbf16>, vector<16x378xf32> -> vector<16x378xf32>
    %30 = arith.addf %25, %29 : vector<16x378xf32>
    %c6 = arith.constant 6 : index
    %c0_27 = arith.constant 0 : index
    %c0_28 = arith.constant 0 : index
    %31 = vector.load %arg1[%c6, %c0_27, %c0_28] : memref<9x16x8xbf16, #tpu.memory_space<vmem>>, vector<1x16x8xbf16>
    %32 = vector.shape_cast %31 : vector<1x16x8xbf16> to vector<16x8xbf16>
    %c0_29 = arith.constant 0 : index
    %c20 = arith.constant 20 : index
    %33 = vector.load %arg0[%c0_29, %c20] : memref<8x400xbf16, #tpu.memory_space<vmem>>, vector<8x378xbf16>
    %cst_30 = arith.constant dense<0.000000e+00> : vector<16x378xf32>
    %34 = tpu.matmul %32, %33, %cst_30 {dimension_numbers = #tpu.dot_dimension_numbers<[1], [0], [0], [1], [0, 0, 1, 1], [], []>} : vector<16x8xbf16>, vector<8x378xbf16>, vector<16x378xf32> -> vector<16x378xf32>
    %35 = arith.addf %30, %34 : vector<16x378xf32>
    %c7 = arith.constant 7 : index
    %c0_31 = arith.constant 0 : index
    %c0_32 = arith.constant 0 : index
    %36 = vector.load %arg1[%c7, %c0_31, %c0_32] : memref<9x16x8xbf16, #tpu.memory_space<vmem>>, vector<1x16x8xbf16>
    %37 = vector.shape_cast %36 : vector<1x16x8xbf16> to vector<16x8xbf16>
    %c0_33 = arith.constant 0 : index
    %c21 = arith.constant 21 : index
    %38 = vector.load %arg0[%c0_33, %c21] : memref<8x400xbf16, #tpu.memory_space<vmem>>, vector<8x378xbf16>
    %cst_34 = arith.constant dense<0.000000e+00> : vector<16x378xf32>
    %39 = tpu.matmul %37, %38, %cst_34 {dimension_numbers = #tpu.dot_dimension_numbers<[1], [0], [0], [1], [0, 0, 1, 1], [], []>} : vector<16x8xbf16>, vector<8x378xbf16>, vector<16x378xf32> -> vector<16x378xf32>
    %40 = arith.addf %35, %39 : vector<16x378xf32>
    %c8 = arith.constant 8 : index
    %c0_35 = arith.constant 0 : index
    %c0_36 = arith.constant 0 : index
    %41 = vector.load %arg1[%c8, %c0_35, %c0_36] : memref<9x16x8xbf16, #tpu.memory_space<vmem>>, vector<1x16x8xbf16>
    %42 = vector.shape_cast %41 : vector<1x16x8xbf16> to vector<16x8xbf16>
    %c0_37 = arith.constant 0 : index
    %c22 = arith.constant 22 : index
    %43 = vector.load %arg0[%c0_37, %c22] : memref<8x400xbf16, #tpu.memory_space<vmem>>, vector<8x378xbf16>
    %cst_38 = arith.constant dense<0.000000e+00> : vector<16x378xf32>
    %44 = tpu.matmul %42, %43, %cst_38 {dimension_numbers = #tpu.dot_dimension_numbers<[1], [0], [0], [1], [0, 0, 1, 1], [], []>} : vector<16x8xbf16>, vector<8x378xbf16>, vector<16x378xf32> -> vector<16x378xf32>
    %45 = arith.addf %40, %44 : vector<16x378xf32>
    %c0_39 = arith.constant 0 : index
    %c0_40 = arith.constant 0 : index
    %46 = vector.load %arg2[%c0_39, %c0_40] : memref<16x1xf32, #tpu.memory_space<vmem>>, vector<16x1xf32>
    %47 = vector.broadcast %46 : vector<16x1xf32> to vector<16x378xf32>
    %48 = arith.addf %45, %47 : vector<16x378xf32>
    %cst_41 = arith.constant 0.000000e+00 : f32
    %49 = vector.broadcast %cst_41 : f32 to vector<16x378xf32>
    %50 = arith.maximumf %48, %49 : vector<16x378xf32>
    %51 = arith.truncf %50 : vector<16x378xf32> to vector<16x378xbf16>
    %c0_42 = arith.constant 0 : index
    %c0_43 = arith.constant 0 : index
    %52 = vector.load %arg3[%c0_42, %c0_43] : memref<16x378xbf16, #tpu.memory_space<vmem>>, vector<16x378xbf16>
    tpu.vector_store %arg3[%c0_42, %c0_43], %51 {strides = array<i32>} : memref<16x378xbf16, #tpu.memory_space<vmem>>, vector<16x378xbf16>,
    return
  }
}

module attributes {stable_mosaic.version = 11 : i64} {
  func.func @kernel(%arg0: memref<16x1296xbf16, #tpu.memory_space<vmem>>, %arg1: memref<8x1296xbf16, #tpu.memory_space<vmem>>, %arg2: memref<9x8x16xbf16, #tpu.memory_space<vmem>>, %arg3: memref<9x8x8xbf16, #tpu.memory_space<vmem>>, %arg4: memref<8x1xf32, #tpu.memory_space<vmem>>, %arg5: memref<8x1258xbf16, #tpu.memory_space<vmem>>) attributes {dimension_semantics = [], scalar_prefetch = 0 : i64, scratch_operands = 0 : i64, tpu.core_type = #tpu.core_type<tc>} {
    %cst = arith.constant 0.000000e+00 : f32
    %0 = vector.broadcast %cst : f32 to vector<8x1258xf32>
    %c0 = arith.constant 0 : index
    %c0_0 = arith.constant 0 : index
    %c0_1 = arith.constant 0 : index
    %1 = vector.load %arg2[%c0, %c0_0, %c0_1] : memref<9x8x16xbf16, #tpu.memory_space<vmem>>, vector<1x8x16xbf16>
    %2 = vector.shape_cast %1 : vector<1x8x16xbf16> to vector<8x16xbf16>
    %c0_2 = arith.constant 0 : index
    %c0_3 = arith.constant 0 : index
    %3 = vector.load %arg0[%c0_2, %c0_3] : memref<16x1296xbf16, #tpu.memory_space<vmem>>, vector<16x1258xbf16>
    %cst_4 = arith.constant dense<0.000000e+00> : vector<8x1258xf32>
    %4 = tpu.matmul %2, %3, %cst_4 {dimension_numbers = #tpu.dot_dimension_numbers<[1], [0], [0], [1], [0, 0, 1, 1], [], []>} : vector<8x16xbf16>, vector<16x1258xbf16>, vector<8x1258xf32> -> vector<8x1258xf32>
    %5 = arith.addf %0, %4 : vector<8x1258xf32>
    %c0_5 = arith.constant 0 : index
    %c0_6 = arith.constant 0 : index
    %c0_7 = arith.constant 0 : index
    %6 = vector.load %arg3[%c0_5, %c0_6, %c0_7] : memref<9x8x8xbf16, #tpu.memory_space<vmem>>, vector<1x8x8xbf16>
    %7 = vector.shape_cast %6 : vector<1x8x8xbf16> to vector<8x8xbf16>
    %c0_8 = arith.constant 0 : index
    %c0_9 = arith.constant 0 : index
    %8 = vector.load %arg1[%c0_8, %c0_9] : memref<8x1296xbf16, #tpu.memory_space<vmem>>, vector<8x1258xbf16>
    %cst_10 = arith.constant dense<0.000000e+00> : vector<8x1258xf32>
    %9 = tpu.matmul %7, %8, %cst_10 {dimension_numbers = #tpu.dot_dimension_numbers<[1], [0], [0], [1], [0, 0, 1, 1], [], []>} : vector<8x8xbf16>, vector<8x1258xbf16>, vector<8x1258xf32> -> vector<8x1258xf32>
    %10 = arith.addf %5, %9 : vector<8x1258xf32>
    %c1 = arith.constant 1 : index
    %c0_11 = arith.constant 0 : index
    %c0_12 = arith.constant 0 : index
    %11 = vector.load %arg2[%c1, %c0_11, %c0_12] : memref<9x8x16xbf16, #tpu.memory_space<vmem>>, vector<1x8x16xbf16>
    %12 = vector.shape_cast %11 : vector<1x8x16xbf16> to vector<8x16xbf16>
    %c0_13 = arith.constant 0 : index
    %c1_14 = arith.constant 1 : index
    %13 = vector.load %arg0[%c0_13, %c1_14] : memref<16x1296xbf16, #tpu.memory_space<vmem>>, vector<16x1258xbf16>
    %cst_15 = arith.constant dense<0.000000e+00> : vector<8x1258xf32>
    %14 = tpu.matmul %12, %13, %cst_15 {dimension_numbers = #tpu.dot_dimension_numbers<[1], [0], [0], [1], [0, 0, 1, 1], [], []>} : vector<8x16xbf16>, vector<16x1258xbf16>, vector<8x1258xf32> -> vector<8x1258xf32>
    %15 = arith.addf %10, %14 : vector<8x1258xf32>
    %c1_16 = arith.constant 1 : index
    %c0_17 = arith.constant 0 : index
    %c0_18 = arith.constant 0 : index
    %16 = vector.load %arg3[%c1_16, %c0_17, %c0_18] : memref<9x8x8xbf16, #tpu.memory_space<vmem>>, vector<1x8x8xbf16>
    %17 = vector.shape_cast %16 : vector<1x8x8xbf16> to vector<8x8xbf16>
    %c0_19 = arith.constant 0 : index
    %c1_20 = arith.constant 1 : index
    %18 = vector.load %arg1[%c0_19, %c1_20] : memref<8x1296xbf16, #tpu.memory_space<vmem>>, vector<8x1258xbf16>
    %cst_21 = arith.constant dense<0.000000e+00> : vector<8x1258xf32>
    %19 = tpu.matmul %17, %18, %cst_21 {dimension_numbers = #tpu.dot_dimension_numbers<[1], [0], [0], [1], [0, 0, 1, 1], [], []>} : vector<8x8xbf16>, vector<8x1258xbf16>, vector<8x1258xf32> -> vector<8x1258xf32>
    %20 = arith.addf %15, %19 : vector<8x1258xf32>
    %c2 = arith.constant 2 : index
    %c0_22 = arith.constant 0 : index
    %c0_23 = arith.constant 0 : index
    %21 = vector.load %arg2[%c2, %c0_22, %c0_23] : memref<9x8x16xbf16, #tpu.memory_space<vmem>>, vector<1x8x16xbf16>
    %22 = vector.shape_cast %21 : vector<1x8x16xbf16> to vector<8x16xbf16>
    %c0_24 = arith.constant 0 : index
    %c2_25 = arith.constant 2 : index
    %23 = vector.load %arg0[%c0_24, %c2_25] : memref<16x1296xbf16, #tpu.memory_space<vmem>>, vector<16x1258xbf16>
    %cst_26 = arith.constant dense<0.000000e+00> : vector<8x1258xf32>
    %24 = tpu.matmul %22, %23, %cst_26 {dimension_numbers = #tpu.dot_dimension_numbers<[1], [0], [0], [1], [0, 0, 1, 1], [], []>} : vector<8x16xbf16>, vector<16x1258xbf16>, vector<8x1258xf32> -> vector<8x1258xf32>
    %25 = arith.addf %20, %24 : vector<8x1258xf32>
    %c2_27 = arith.constant 2 : index
    %c0_28 = arith.constant 0 : index
    %c0_29 = arith.constant 0 : index
    %26 = vector.load %arg3[%c2_27, %c0_28, %c0_29] : memref<9x8x8xbf16, #tpu.memory_space<vmem>>, vector<1x8x8xbf16>
    %27 = vector.shape_cast %26 : vector<1x8x8xbf16> to vector<8x8xbf16>
    %c0_30 = arith.constant 0 : index
    %c2_31 = arith.constant 2 : index
    %28 = vector.load %arg1[%c0_30, %c2_31] : memref<8x1296xbf16, #tpu.memory_space<vmem>>, vector<8x1258xbf16>
    %cst_32 = arith.constant dense<0.000000e+00> : vector<8x1258xf32>
    %29 = tpu.matmul %27, %28, %cst_32 {dimension_numbers = #tpu.dot_dimension_numbers<[1], [0], [0], [1], [0, 0, 1, 1], [], []>} : vector<8x8xbf16>, vector<8x1258xbf16>, vector<8x1258xf32> -> vector<8x1258xf32>
    %30 = arith.addf %25, %29 : vector<8x1258xf32>
    %c3 = arith.constant 3 : index
    %c0_33 = arith.constant 0 : index
    %c0_34 = arith.constant 0 : index
    %31 = vector.load %arg2[%c3, %c0_33, %c0_34] : memref<9x8x16xbf16, #tpu.memory_space<vmem>>, vector<1x8x16xbf16>
    %32 = vector.shape_cast %31 : vector<1x8x16xbf16> to vector<8x16xbf16>
    %c0_35 = arith.constant 0 : index
    %c18 = arith.constant 18 : index
    %33 = vector.load %arg0[%c0_35, %c18] : memref<16x1296xbf16, #tpu.memory_space<vmem>>, vector<16x1258xbf16>
    %cst_36 = arith.constant dense<0.000000e+00> : vector<8x1258xf32>
    %34 = tpu.matmul %32, %33, %cst_36 {dimension_numbers = #tpu.dot_dimension_numbers<[1], [0], [0], [1], [0, 0, 1, 1], [], []>} : vector<8x16xbf16>, vector<16x1258xbf16>, vector<8x1258xf32> -> vector<8x1258xf32>
    %35 = arith.addf %30, %34 : vector<8x1258xf32>
    %c3_37 = arith.constant 3 : index
    %c0_38 = arith.constant 0 : index
    %c0_39 = arith.constant 0 : index
    %36 = vector.load %arg3[%c3_37, %c0_38, %c0_39] : memref<9x8x8xbf16, #tpu.memory_space<vmem>>, vector<1x8x8xbf16>
    %37 = vector.shape_cast %36 : vector<1x8x8xbf16> to vector<8x8xbf16>
    %c0_40 = arith.constant 0 : index
    %c18_41 = arith.constant 18 : index
    %38 = vector.load %arg1[%c0_40, %c18_41] : memref<8x1296xbf16, #tpu.memory_space<vmem>>, vector<8x1258xbf16>
    %cst_42 = arith.constant dense<0.000000e+00> : vector<8x1258xf32>
    %39 = tpu.matmul %37, %38, %cst_42 {dimension_numbers = #tpu.dot_dimension_numbers<[1], [0], [0], [1], [0, 0, 1, 1], [], []>} : vector<8x8xbf16>, vector<8x1258xbf16>, vector<8x1258xf32> -> vector<8x1258xf32>
    %40 = arith.addf %35, %39 : vector<8x1258xf32>
    %c4 = arith.constant 4 : index
    %c0_43 = arith.constant 0 : index
    %c0_44 = arith.constant 0 : index
    %41 = vector.load %arg2[%c4, %c0_43, %c0_44] : memref<9x8x16xbf16, #tpu.memory_space<vmem>>, vector<1x8x16xbf16>
    %42 = vector.shape_cast %41 : vector<1x8x16xbf16> to vector<8x16xbf16>
    %c0_45 = arith.constant 0 : index
    %c19 = arith.constant 19 : index
    %43 = vector.load %arg0[%c0_45, %c19] : memref<16x1296xbf16, #tpu.memory_space<vmem>>, vector<16x1258xbf16>
    %cst_46 = arith.constant dense<0.000000e+00> : vector<8x1258xf32>
    %44 = tpu.matmul %42, %43, %cst_46 {dimension_numbers = #tpu.dot_dimension_numbers<[1], [0], [0], [1], [0, 0, 1, 1], [], []>} : vector<8x16xbf16>, vector<16x1258xbf16>, vector<8x1258xf32> -> vector<8x1258xf32>
    %45 = arith.addf %40, %44 : vector<8x1258xf32>
    %c4_47 = arith.constant 4 : index
    %c0_48 = arith.constant 0 : index
    %c0_49 = arith.constant 0 : index
    %46 = vector.load %arg3[%c4_47, %c0_48, %c0_49] : memref<9x8x8xbf16, #tpu.memory_space<vmem>>, vector<1x8x8xbf16>
    %47 = vector.shape_cast %46 : vector<1x8x8xbf16> to vector<8x8xbf16>
    %c0_50 = arith.constant 0 : index
    %c19_51 = arith.constant 19 : index
    %48 = vector.load %arg1[%c0_50, %c19_51] : memref<8x1296xbf16, #tpu.memory_space<vmem>>, vector<8x1258xbf16>
    %cst_52 = arith.constant dense<0.000000e+00> : vector<8x1258xf32>
    %49 = tpu.matmul %47, %48, %cst_52 {dimension_numbers = #tpu.dot_dimension_numbers<[1], [0], [0], [1], [0, 0, 1, 1], [], []>} : vector<8x8xbf16>, vector<8x1258xbf16>, vector<8x1258xf32> -> vector<8x1258xf32>
    %50 = arith.addf %45, %49 : vector<8x1258xf32>
    %c5 = arith.constant 5 : index
    %c0_53 = arith.constant 0 : index
    %c0_54 = arith.constant 0 : index
    %51 = vector.load %arg2[%c5, %c0_53, %c0_54] : memref<9x8x16xbf16, #tpu.memory_space<vmem>>, vector<1x8x16xbf16>
    %52 = vector.shape_cast %51 : vector<1x8x16xbf16> to vector<8x16xbf16>
    %c0_55 = arith.constant 0 : index
    %c20 = arith.constant 20 : index
    %53 = vector.load %arg0[%c0_55, %c20] : memref<16x1296xbf16, #tpu.memory_space<vmem>>, vector<16x1258xbf16>
    %cst_56 = arith.constant dense<0.000000e+00> : vector<8x1258xf32>
    %54 = tpu.matmul %52, %53, %cst_56 {dimension_numbers = #tpu.dot_dimension_numbers<[1], [0], [0], [1], [0, 0, 1, 1], [], []>} : vector<8x16xbf16>, vector<16x1258xbf16>, vector<8x1258xf32> -> vector<8x1258xf32>
    %55 = arith.addf %50, %54 : vector<8x1258xf32>
    %c5_57 = arith.constant 5 : index
    %c0_58 = arith.constant 0 : index
    %c0_59 = arith.constant 0 : index
    %56 = vector.load %arg3[%c5_57, %c0_58, %c0_59] : memref<9x8x8xbf16, #tpu.memory_space<vmem>>, vector<1x8x8xbf16>
    %57 = vector.shape_cast %56 : vector<1x8x8xbf16> to vector<8x8xbf16>
    %c0_60 = arith.constant 0 : index
    %c20_61 = arith.constant 20 : index
    %58 = vector.load %arg1[%c0_60, %c20_61] : memref<8x1296xbf16, #tpu.memory_space<vmem>>, vector<8x1258xbf16>
    %cst_62 = arith.constant dense<0.000000e+00> : vector<8x1258xf32>
    %59 = tpu.matmul %57, %58, %cst_62 {dimension_numbers = #tpu.dot_dimension_numbers<[1], [0], [0], [1], [0, 0, 1, 1], [], []>} : vector<8x8xbf16>, vector<8x1258xbf16>, vector<8x1258xf32> -> vector<8x1258xf32>
    %60 = arith.addf %55, %59 : vector<8x1258xf32>
    %c6 = arith.constant 6 : index
    %c0_63 = arith.constant 0 : index
    %c0_64 = arith.constant 0 : index
    %61 = vector.load %arg2[%c6, %c0_63, %c0_64] : memref<9x8x16xbf16, #tpu.memory_space<vmem>>, vector<1x8x16xbf16>
    %62 = vector.shape_cast %61 : vector<1x8x16xbf16> to vector<8x16xbf16>
    %c0_65 = arith.constant 0 : index
    %c36 = arith.constant 36 : index
    %63 = vector.load %arg0[%c0_65, %c36] : memref<16x1296xbf16, #tpu.memory_space<vmem>>, vector<16x1258xbf16>
    %cst_66 = arith.constant dense<0.000000e+00> : vector<8x1258xf32>
    %64 = tpu.matmul %62, %63, %cst_66 {dimension_numbers = #tpu.dot_dimension_numbers<[1], [0], [0], [1], [0, 0, 1, 1], [], []>} : vector<8x16xbf16>, vector<16x1258xbf16>, vector<8x1258xf32> -> vector<8x1258xf32>
    %65 = arith.addf %60, %64 : vector<8x1258xf32>
    %c6_67 = arith.constant 6 : index
    %c0_68 = arith.constant 0 : index
    %c0_69 = arith.constant 0 : index
    %66 = vector.load %arg3[%c6_67, %c0_68, %c0_69] : memref<9x8x8xbf16, #tpu.memory_space<vmem>>, vector<1x8x8xbf16>
    %67 = vector.shape_cast %66 : vector<1x8x8xbf16> to vector<8x8xbf16>
    %c0_70 = arith.constant 0 : index
    %c36_71 = arith.constant 36 : index
    %68 = vector.load %arg1[%c0_70, %c36_71] : memref<8x1296xbf16, #tpu.memory_space<vmem>>, vector<8x1258xbf16>
    %cst_72 = arith.constant dense<0.000000e+00> : vector<8x1258xf32>
    %69 = tpu.matmul %67, %68, %cst_72 {dimension_numbers = #tpu.dot_dimension_numbers<[1], [0], [0], [1], [0, 0, 1, 1], [], []>} : vector<8x8xbf16>, vector<8x1258xbf16>, vector<8x1258xf32> -> vector<8x1258xf32>
    %70 = arith.addf %65, %69 : vector<8x1258xf32>
    %c7 = arith.constant 7 : index
    %c0_73 = arith.constant 0 : index
    %c0_74 = arith.constant 0 : index
    %71 = vector.load %arg2[%c7, %c0_73, %c0_74] : memref<9x8x16xbf16, #tpu.memory_space<vmem>>, vector<1x8x16xbf16>
    %72 = vector.shape_cast %71 : vector<1x8x16xbf16> to vector<8x16xbf16>
    %c0_75 = arith.constant 0 : index
    %c37 = arith.constant 37 : index
    %73 = vector.load %arg0[%c0_75, %c37] : memref<16x1296xbf16, #tpu.memory_space<vmem>>, vector<16x1258xbf16>
    %cst_76 = arith.constant dense<0.000000e+00> : vector<8x1258xf32>
    %74 = tpu.matmul %72, %73, %cst_76 {dimension_numbers = #tpu.dot_dimension_numbers<[1], [0], [0], [1], [0, 0, 1, 1], [], []>} : vector<8x16xbf16>, vector<16x1258xbf16>, vector<8x1258xf32> -> vector<8x1258xf32>
    %75 = arith.addf %70, %74 : vector<8x1258xf32>
    %c7_77 = arith.constant 7 : index
    %c0_78 = arith.constant 0 : index
    %c0_79 = arith.constant 0 : index
    %76 = vector.load %arg3[%c7_77, %c0_78, %c0_79] : memref<9x8x8xbf16, #tpu.memory_space<vmem>>, vector<1x8x8xbf16>
    %77 = vector.shape_cast %76 : vector<1x8x8xbf16> to vector<8x8xbf16>
    %c0_80 = arith.constant 0 : index
    %c37_81 = arith.constant 37 : index
    %78 = vector.load %arg1[%c0_80, %c37_81] : memref<8x1296xbf16, #tpu.memory_space<vmem>>, vector<8x1258xbf16>
    %cst_82 = arith.constant dense<0.000000e+00> : vector<8x1258xf32>
    %79 = tpu.matmul %77, %78, %cst_82 {dimension_numbers = #tpu.dot_dimension_numbers<[1], [0], [0], [1], [0, 0, 1, 1], [], []>} : vector<8x8xbf16>, vector<8x1258xbf16>, vector<8x1258xf32> -> vector<8x1258xf32>
    %80 = arith.addf %75, %79 : vector<8x1258xf32>
    %c8 = arith.constant 8 : index
    %c0_83 = arith.constant 0 : index
    %c0_84 = arith.constant 0 : index
    %81 = vector.load %arg2[%c8, %c0_83, %c0_84] : memref<9x8x16xbf16, #tpu.memory_space<vmem>>, vector<1x8x16xbf16>
    %82 = vector.shape_cast %81 : vector<1x8x16xbf16> to vector<8x16xbf16>
    %c0_85 = arith.constant 0 : index
    %c38 = arith.constant 38 : index
    %83 = vector.load %arg0[%c0_85, %c38] : memref<16x1296xbf16, #tpu.memory_space<vmem>>, vector<16x1258xbf16>
    %cst_86 = arith.constant dense<0.000000e+00> : vector<8x1258xf32>
    %84 = tpu.matmul %82, %83, %cst_86 {dimension_numbers = #tpu.dot_dimension_numbers<[1], [0], [0], [1], [0, 0, 1, 1], [], []>} : vector<8x16xbf16>, vector<16x1258xbf16>, vector<8x1258xf32> -> vector<8x1258xf32>
    %85 = arith.addf %80, %84 : vector<8x1258xf32>
    %c8_87 = arith.constant 8 : index
    %c0_88 = arith.constant 0 : index
    %c0_89 = arith.constant 0 : index
    %86 = vector.load %arg3[%c8_87, %c0_88, %c0_89] : memref<9x8x8xbf16, #tpu.memory_space<vmem>>, vector<1x8x8xbf16>
    %87 = vector.shape_cast %86 : vector<1x8x8xbf16> to vector<8x8xbf16>
    %c0_90 = arith.constant 0 : index
    %c38_91 = arith.constant 38 : index
    %88 = vector.load %arg1[%c0_90, %c38_91] : memref<8x1296xbf16, #tpu.memory_space<vmem>>, vector<8x1258xbf16>
    %cst_92 = arith.constant dense<0.000000e+00> : vector<8x1258xf32>
    %89 = tpu.matmul %87, %88, %cst_92 {dimension_numbers = #tpu.dot_dimension_numbers<[1], [0], [0], [1], [0, 0, 1, 1], [], []>} : vector<8x8xbf16>, vector<8x1258xbf16>, vector<8x1258xf32> -> vector<8x1258xf32>
    %90 = arith.addf %85, %89 : vector<8x1258xf32>
    %c0_93 = arith.constant 0 : index
    %c0_94 = arith.constant 0 : index
    %91 = vector.load %arg4[%c0_93, %c0_94] : memref<8x1xf32, #tpu.memory_space<vmem>>, vector<8x1xf32>
    %92 = vector.broadcast %91 : vector<8x1xf32> to vector<8x1258xf32>
    %93 = arith.addf %90, %92 : vector<8x1258xf32>
    %cst_95 = arith.constant 0.000000e+00 : f32
    %94 = vector.broadcast %cst_95 : f32 to vector<8x1258xf32>
    %95 = arith.maximumf %93, %94 : vector<8x1258xf32>
    %96 = arith.truncf %95 : vector<8x1258xf32> to vector<8x1258xbf16>
    %c0_96 = arith.constant 0 : index
    %c0_97 = arith.constant 0 : index
    %97 = vector.load %arg5[%c0_96, %c0_97] : memref<8x1258xbf16, #tpu.memory_space<vmem>>, vector<8x1258xbf16>
    tpu.vector_store %arg5[%c0_96, %c0_97], %96 {strides = array<i32>} : memref<8x1258xbf16, #tpu.memory_space<vmem>>, vector<8x1258xbf16>,
    return
  }
}

module attributes {stable_mosaic.version = 11 : i64} {
  func.func @kernel(%arg0: memref<4x8x256xbf16, #tpu.memory_space<vmem>>, %arg1: memref<4x8xbf16, #tpu.memory_space<vmem>>, %arg2: memref<4x1xf32, #tpu.memory_space<vmem>>, %arg3: memref<4x4x1xf32, #tpu.memory_space<vmem>>, %arg4: memref<4x4x1xf32, #tpu.memory_space<vmem>>, %arg5: memref<4x4x256xf32, #tpu.memory_space<vmem>>) attributes {dimension_semantics = [], scalar_prefetch = 0 : i64, scratch_operands = 0 : i64, tpu.core_type = #tpu.core_type<tc>} {
    %c0 = arith.constant 0 : index
    %c0_0 = arith.constant 0 : index
    %0 = vector.load %arg1[%c0, %c0_0] : memref<4x8xbf16, #tpu.memory_space<vmem>>, vector<4x8xbf16>
    %c0_1 = arith.constant 0 : index
    %c0_2 = arith.constant 0 : index
    %1 = vector.load %arg2[%c0_1, %c0_2] : memref<4x1xf32, #tpu.memory_space<vmem>>, vector<4x1xf32>
    %c0_3 = arith.constant 0 : index
    %c0_4 = arith.constant 0 : index
    %c0_5 = arith.constant 0 : index
    %2 = vector.load %arg0[%c0_3, %c0_4, %c0_5] : memref<4x8x256xbf16, #tpu.memory_space<vmem>>, vector<1x8x256xbf16>
    %3 = vector.shape_cast %2 : vector<1x8x256xbf16> to vector<8x256xbf16>
    %cst = arith.constant dense<0.000000e+00> : vector<4x256xf32>
    %4 = tpu.matmul %0, %3, %cst {dimension_numbers = #tpu.dot_dimension_numbers<[1], [0], [0], [1], [0, 0, 1, 1], [], []>} : vector<4x8xbf16>, vector<8x256xbf16>, vector<4x256xf32> -> vector<4x256xf32>
    %5 = vector.broadcast %1 : vector<4x1xf32> to vector<4x256xf32>
    %6 = arith.addf %4, %5 : vector<4x256xf32>
    %c0_6 = arith.constant 0 : index
    %c0_7 = arith.constant 0 : index
    %c0_8 = arith.constant 0 : index
    %7 = vector.load %arg3[%c0_6, %c0_7, %c0_8] : memref<4x4x1xf32, #tpu.memory_space<vmem>>, vector<1x4x1xf32>
    %8 = vector.shape_cast %7 : vector<1x4x1xf32> to vector<4x1xf32>
    %9 = vector.broadcast %8 : vector<4x1xf32> to vector<4x256xf32>
    %10 = arith.mulf %6, %9 : vector<4x256xf32>
    %c0_9 = arith.constant 0 : index
    %c0_10 = arith.constant 0 : index
    %c0_11 = arith.constant 0 : index
    %11 = vector.load %arg4[%c0_9, %c0_10, %c0_11] : memref<4x4x1xf32, #tpu.memory_space<vmem>>, vector<1x4x1xf32>
    %12 = vector.shape_cast %11 : vector<1x4x1xf32> to vector<4x1xf32>
    %13 = vector.broadcast %12 : vector<4x1xf32> to vector<4x256xf32>
    %14 = arith.addf %10, %13 : vector<4x256xf32>
    %c0_12 = arith.constant 0 : index
    %c0_13 = arith.constant 0 : index
    %c0_14 = arith.constant 0 : index
    %15 = vector.load %arg5[%c0_12, %c0_13, %c0_14] : memref<4x4x256xf32, #tpu.memory_space<vmem>>, vector<1x4x256xf32>
    %16 = vector.shape_cast %15 : vector<1x4x256xf32> to vector<4x256xf32>
    %17 = vector.shape_cast %14 : vector<4x256xf32> to vector<1x4x256xf32>
    tpu.vector_store %arg5[%c0_12, %c0_13, %c0_14], %17 {strides = array<i32>} : memref<4x4x256xf32, #tpu.memory_space<vmem>>, vector<1x4x256xf32>,
    %c1 = arith.constant 1 : index
    %c0_15 = arith.constant 0 : index
    %c0_16 = arith.constant 0 : index
    %18 = vector.load %arg0[%c1, %c0_15, %c0_16] : memref<4x8x256xbf16, #tpu.memory_space<vmem>>, vector<1x8x256xbf16>
    %19 = vector.shape_cast %18 : vector<1x8x256xbf16> to vector<8x256xbf16>
    %cst_17 = arith.constant dense<0.000000e+00> : vector<4x256xf32>
    %20 = tpu.matmul %0, %19, %cst_17 {dimension_numbers = #tpu.dot_dimension_numbers<[1], [0], [0], [1], [0, 0, 1, 1], [], []>} : vector<4x8xbf16>, vector<8x256xbf16>, vector<4x256xf32> -> vector<4x256xf32>
    %21 = vector.broadcast %1 : vector<4x1xf32> to vector<4x256xf32>
    %22 = arith.addf %20, %21 : vector<4x256xf32>
    %c1_18 = arith.constant 1 : index
    %c0_19 = arith.constant 0 : index
    %c0_20 = arith.constant 0 : index
    %23 = vector.load %arg3[%c1_18, %c0_19, %c0_20] : memref<4x4x1xf32, #tpu.memory_space<vmem>>, vector<1x4x1xf32>
    %24 = vector.shape_cast %23 : vector<1x4x1xf32> to vector<4x1xf32>
    %25 = vector.broadcast %24 : vector<4x1xf32> to vector<4x256xf32>
    %26 = arith.mulf %22, %25 : vector<4x256xf32>
    %c1_21 = arith.constant 1 : index
    %c0_22 = arith.constant 0 : index
    %c0_23 = arith.constant 0 : index
    %27 = vector.load %arg4[%c1_21, %c0_22, %c0_23] : memref<4x4x1xf32, #tpu.memory_space<vmem>>, vector<1x4x1xf32>
    %28 = vector.shape_cast %27 : vector<1x4x1xf32> to vector<4x1xf32>
    %29 = vector.broadcast %28 : vector<4x1xf32> to vector<4x256xf32>
    %30 = arith.addf %26, %29 : vector<4x256xf32>
    %c1_24 = arith.constant 1 : index
    %c0_25 = arith.constant 0 : index
    %c0_26 = arith.constant 0 : index
    %31 = vector.load %arg5[%c1_24, %c0_25, %c0_26] : memref<4x4x256xf32, #tpu.memory_space<vmem>>, vector<1x4x256xf32>
    %32 = vector.shape_cast %31 : vector<1x4x256xf32> to vector<4x256xf32>
    %33 = vector.shape_cast %30 : vector<4x256xf32> to vector<1x4x256xf32>
    tpu.vector_store %arg5[%c1_24, %c0_25, %c0_26], %33 {strides = array<i32>} : memref<4x4x256xf32, #tpu.memory_space<vmem>>, vector<1x4x256xf32>,
    %c2 = arith.constant 2 : index
    %c0_27 = arith.constant 0 : index
    %c0_28 = arith.constant 0 : index
    %34 = vector.load %arg0[%c2, %c0_27, %c0_28] : memref<4x8x256xbf16, #tpu.memory_space<vmem>>, vector<1x8x256xbf16>
    %35 = vector.shape_cast %34 : vector<1x8x256xbf16> to vector<8x256xbf16>
    %cst_29 = arith.constant dense<0.000000e+00> : vector<4x256xf32>
    %36 = tpu.matmul %0, %35, %cst_29 {dimension_numbers = #tpu.dot_dimension_numbers<[1], [0], [0], [1], [0, 0, 1, 1], [], []>} : vector<4x8xbf16>, vector<8x256xbf16>, vector<4x256xf32> -> vector<4x256xf32>
    %37 = vector.broadcast %1 : vector<4x1xf32> to vector<4x256xf32>
    %38 = arith.addf %36, %37 : vector<4x256xf32>
    %c2_30 = arith.constant 2 : index
    %c0_31 = arith.constant 0 : index
    %c0_32 = arith.constant 0 : index
    %39 = vector.load %arg3[%c2_30, %c0_31, %c0_32] : memref<4x4x1xf32, #tpu.memory_space<vmem>>, vector<1x4x1xf32>
    %40 = vector.shape_cast %39 : vector<1x4x1xf32> to vector<4x1xf32>
    %41 = vector.broadcast %40 : vector<4x1xf32> to vector<4x256xf32>
    %42 = arith.mulf %38, %41 : vector<4x256xf32>
    %c2_33 = arith.constant 2 : index
    %c0_34 = arith.constant 0 : index
    %c0_35 = arith.constant 0 : index
    %43 = vector.load %arg4[%c2_33, %c0_34, %c0_35] : memref<4x4x1xf32, #tpu.memory_space<vmem>>, vector<1x4x1xf32>
    %44 = vector.shape_cast %43 : vector<1x4x1xf32> to vector<4x1xf32>
    %45 = vector.broadcast %44 : vector<4x1xf32> to vector<4x256xf32>
    %46 = arith.addf %42, %45 : vector<4x256xf32>
    %c2_36 = arith.constant 2 : index
    %c0_37 = arith.constant 0 : index
    %c0_38 = arith.constant 0 : index
    %47 = vector.load %arg5[%c2_36, %c0_37, %c0_38] : memref<4x4x256xf32, #tpu.memory_space<vmem>>, vector<1x4x256xf32>
    %48 = vector.shape_cast %47 : vector<1x4x256xf32> to vector<4x256xf32>
    %49 = vector.shape_cast %46 : vector<4x256xf32> to vector<1x4x256xf32>
    tpu.vector_store %arg5[%c2_36, %c0_37, %c0_38], %49 {strides = array<i32>} : memref<4x4x256xf32, #tpu.memory_space<vmem>>, vector<1x4x256xf32>,
    %c3 = arith.constant 3 : index
    %c0_39 = arith.constant 0 : index
    %c0_40 = arith.constant 0 : index
    %50 = vector.load %arg0[%c3, %c0_39, %c0_40] : memref<4x8x256xbf16, #tpu.memory_space<vmem>>, vector<1x8x256xbf16>
    %51 = vector.shape_cast %50 : vector<1x8x256xbf16> to vector<8x256xbf16>
    %cst_41 = arith.constant dense<0.000000e+00> : vector<4x256xf32>
    %52 = tpu.matmul %0, %51, %cst_41 {dimension_numbers = #tpu.dot_dimension_numbers<[1], [0], [0], [1], [0, 0, 1, 1], [], []>} : vector<4x8xbf16>, vector<8x256xbf16>, vector<4x256xf32> -> vector<4x256xf32>
    %53 = vector.broadcast %1 : vector<4x1xf32> to vector<4x256xf32>
    %54 = arith.addf %52, %53 : vector<4x256xf32>
    %c3_42 = arith.constant 3 : index
    %c0_43 = arith.constant 0 : index
    %c0_44 = arith.constant 0 : index
    %55 = vector.load %arg3[%c3_42, %c0_43, %c0_44] : memref<4x4x1xf32, #tpu.memory_space<vmem>>, vector<1x4x1xf32>
    %56 = vector.shape_cast %55 : vector<1x4x1xf32> to vector<4x1xf32>
    %57 = vector.broadcast %56 : vector<4x1xf32> to vector<4x256xf32>
    %58 = arith.mulf %54, %57 : vector<4x256xf32>
    %c3_45 = arith.constant 3 : index
    %c0_46 = arith.constant 0 : index
    %c0_47 = arith.constant 0 : index
    %59 = vector.load %arg4[%c3_45, %c0_46, %c0_47] : memref<4x4x1xf32, #tpu.memory_space<vmem>>, vector<1x4x1xf32>
    %60 = vector.shape_cast %59 : vector<1x4x1xf32> to vector<4x1xf32>
    %61 = vector.broadcast %60 : vector<4x1xf32> to vector<4x256xf32>
    %62 = arith.addf %58, %61 : vector<4x256xf32>
    %c3_48 = arith.constant 3 : index
    %c0_49 = arith.constant 0 : index
    %c0_50 = arith.constant 0 : index
    %63 = vector.load %arg5[%c3_48, %c0_49, %c0_50] : memref<4x4x256xf32, #tpu.memory_space<vmem>>, vector<1x4x256xf32>
    %64 = vector.shape_cast %63 : vector<1x4x256xf32> to vector<4x256xf32>
    %65 = vector.shape_cast %62 : vector<4x256xf32> to vector<1x4x256xf32>
    tpu.vector_store %arg5[%c3_48, %c0_49, %c0_50], %65 {strides = array<i32>} : memref<4x4x256xf32, #tpu.memory_space<vmem>>, vector<1x4x256xf32>,
    return
  }
}

</mosaic_0001>

<bundles_post_ra>
// kernel: _lambda_.5
= control target key start
LH: loop header
LB: loop body
LE: loop exit
PB: predicated region body
PF: predicated region fallthrough
CT: control target
= control target key end

     0   :  { %vm61_vm0 = vcmask 7168   ;;  %s135_s0 = inlined_call_operand.vmem [shape: f32[8,512], index: 0, kind: input, shape index: {}]   ;;  %s136_s2 = inlined_call_operand.vmem [shape: f32[8,1], index: 2, kind: output, shape index: {1}]   ;;  %s137_s1 = inlined_call_operand.vmem [shape: bf16[8,512], index: 1, kind: output, shape index: {0}]   ;;  %s138_s3 = inlined_call_operand.vmem [shape: f32[8,1], index: 3, kind: output, shape index: {2}]  }
   0x1   :  { %v11_v0 = vld [vmem:[%s135_s0] sm:$0xff]  ;;  %v12_v1 = vld [vmem:[%s135_s0 + $0x8] sm:$0xff]  ;;  %v13_v2 = vld [vmem:[%s135_s0 + $0x10] sm:$0xff] }
   0x2   :  { %v15_v3 = vadd.f32 %v12_v1, %v11_v0  ;;  %v20_v4 = vmul.f32 %v11_v0, %v11_v0  ;;  %v21_v5 = vmul.f32 %v12_v1, %v12_v1  ;;  %v22_v6 = vmul.f32 %v13_v2, %v13_v2  ;;  %v14_v7 = vld [vmem:[%s135_s0 + $0x18] sm:$0xff] }
   0x3   :  { %v23_v9 = vmul.f32 %v14_v7, %v14_v7 }
   0x4   :  { %v16_v8 = vadd.f32 %v15_v3, %v13_v2  ;;  %v24_v10 = vadd.f32 %v21_v5, %v20_v4 }
   0x6   :  { %v17_v11 = vadd.f32 %v16_v8, %v14_v7  ;;  %v25_v12 = vadd.f32 %v24_v10, %v22_v6 }
   0x8   :  { %18 = vadd.xlane.f32.xlu0 %v17_v11  ;;  %v26_v13 = vadd.f32 %v25_v12, %v23_v9 }
   0xc   :  { %27 = vadd.xlane.f32.xlu0 %v26_v13 }
  0x91   :  { %v19_v14 = vpop.xlane.xlu0 %18 }
  0x92   :  { %v29_v15 = vmul.f32 0.001953125, %v19_v14 }
  0x94   :  { %v30_v16 = vmul.f32 %v29_v15, %v19_v14  ;;  %62 = vst.msk [vmem:[%s136_s2] sm:$0xff] %vm61_vm0, %v29_v15  ;;  %v35_v21 = vsub.f32 %v11_v0, %v29_v15  ;;  %v36_v22 = vsub.f32 %v12_v1, %v29_v15  ;;  %v37_v23 = vsub.f32 %v13_v2, %v29_v15 }
  0x95   :  { %v28_v17 = vpop.xlane.xlu0 %27  ;;  %v38_v24 = vsub.f32 %v14_v7, %v29_v15 }
  0x96   :  { %v31_v18 = vsub.f32 %v28_v17, %v30_v16 }
  0x98   :  { %v32_v19 = vmax.f32 %v31_v18, 0.0 }
  0x9a   :  { %v33_v20 = vmul.f32 0.0019569471, %v32_v19 }
  0x9c   :  { %87 = vrsqrt.f32 %v33_v20  ;;  %vm65_vm1 = vcmp.eq.f32.partialorder %v33_v20, inf  ;;  %v68_v33 = vand.u32 2147483648, %v33_v20  ;;  %vm67_vm2 = vcmp.eq.f32.partialorder %v33_v20, 0.0 }
  0xa9   :  { %v88_v25 = vpop.eup %87 }
  0xaa   :  { %v39_v26 = vmul.f32 %v88_v25, %v35_v21  ;;  %v40_v27 = vmul.f32 %v88_v25, %v36_v22  ;;  %v41_v28 = vmul.f32 %v88_v25, %v37_v23  ;;  %v42_v29 = vmul.f32 %v88_v25, %v38_v24 }
  0xab   :  { %v64_v30 = vmul.f32 %v88_v25, %v33_v20 }
  0xac   :  { %v85_v31 = vpack.c.bf16 %v40_v27, %v39_v26  ;;  %v86_v32 = vpack.c.bf16 %v42_v29, %v41_v28 }
  0xad   :  { %v66_v34 = vsel %vm65_vm1, %v33_v20, %v64_v30 }
  0xae   :  { %59 = vst [vmem:[%s137_s1] sm:$0xff] %v85_v31  ;;  %60 = vst [vmem:[%s137_s1 + $0x8] sm:$0xff] %v86_v32  ;;  %v69_v35 = vsel %vm67_vm2, %v68_v33, %v66_v34 }
  0xaf   :  { %70 = vst.msk [vmem:[%s138_s3] sm:$0xff] %vm61_vm0, %v69_v35 }

// kernel: _lambda_.6
= control target key start
LH: loop header
LB: loop body
LE: loop exit
PB: predicated region body
PF: predicated region fallthrough
CT: control target
= control target key end

     0   :  { %v28_v0 = vlaneseq  ;;  %v3111_v2 = vmov 1983009808   ;;  %v3112_v7 = vmov 0   ;;  %s3113_s18 = smov 127   ;;  %s3114_s23 = smov 126   ;;  %vm86_vm0 = vcmask 1039360   ;;  %s3702_s0 = inlined_call_operand.vmem [shape: bf16[4,1296], index: 0, kind: input, shape index: {}]   ;;  %s3703_s1 = inlined_call_operand.vmem [shape: bf16[9,8,4], index: 1, kind: input, shape index: {}]   ;;  %s3704_s2 = inlined_call_operand.vmem [shape: f32[8,1], index: 2, kind: input, shape index: {}]   ;;  %s3705_s3 = inlined_call_operand.vmem [shape: bf16[8,1258], index: 3, kind: output, shape index: {}]  }
   0x1   :  { %v16_v1 = vld [vmem:[%s3702_s0] sm:$0xff]  ;;  %v26_v3 = vunpack.c.l.s4 %v3111_v2  ;;  %163 = vmatprep.mubr.bf16.mxu0 %v3112_v7  ;;  %204 = vmatprep.mubr.bf16.mxu1 %v3112_v7  ;;  %v17_v9 = vld [vmem:[%s3702_s0 + $0x8] sm:$0xff]  ;;  %v1890_v10 = vld [vmem:[%s3702_s0 + $0x10] sm:$0x3f]  ;;  %s3115_s24 = smov 110   ;;  %s3117_s27 = smov 108  }
   0x2   :  { %v29_v4 = vshrl.u32 %v28_v0, 7  ;;  %v24_v6 = vcombine.high %v16_v1, %v16_v1  ;;  %3104 = vset.pattern.permute.xlu1 %v3112_v7  ;;  %3105 = vset.pattern.permute.xlu0 %v3112_v7  ;;  %v41_v13 = vcombine.high %v17_v9, %v17_v9  ;;  %v1928_v18 = vcombine.high %v1890_v10, %v1890_v10  ;;  %v3191_v23 = vld.sshfl [vmem:[%s3702_s0 + $0x10] sm:$0x33 pattern:$0x76325410]  ;;  %s3118_s28 = smov 92  }
   0x3   :  { %v27_v5 = vunpack.c.0.s8 %v26_v3  ;;  %v3197_v24 = vcombine.high %v3191_v23, %v3191_v23  ;;  %v2229_v25 = vld [vmem:[%s3702_s0 + $0x10] sm:$0x3f]  ;;  %vm100_vm1 = vcmask 1041408   ;;  %v2981_v41 = vld [vmem:[%s3703_s1 + $0x4] sm:$0xf]  ;;  %vm96_vm2 = vcmask 31744  }
   0x4   :  { %v2267_v27 = vcombine.high %v2229_v25, %v2229_v25  ;;  %v2568_v29 = vld [vmem:[%s3702_s0 + $0x10] sm:$0x3f]  ;;  %s3116_s0 = smov 109   ;;  %s3119_s4 = smov 91   ;;  %v15_v2 = vld [vmem:[%s3703_s1] sm:$0xf] }
   0x5   :  { %v30_v8 = vsub.s32 %v27_v5, %v29_v4  ;;  %v2606_v31 = vcombine.high %v2568_v29, %v2568_v29  ;;  %vm644_vm3 = vcmask 1031168   ;;  %s3120_s7 = smov 90   ;;  %vm972_vm4 = vcmask 900096  }
   0x6   :  { %vm1300_vm5 = vcmask 891904   ;;  %vm1628_vm6 = vcmask 883712   ;;  %vm1966_vm7 = vcmask 752640   ;;  %vm2305_vm8 = vcmask 744448  }
   0x7   :  { %v3154_v11 = vrot.slane %v16_v1, %v30_v8  ;;  %v3156_v12 = vrot.slane %v24_v6, %v30_v8  ;;  %v3158_v14 = vrot.slane %v1890_v10, %v30_v8  ;;  %v3170_v17 = vrot.slane %v17_v9, %v30_v8 }
   0x8   :  { %v3172_v19 = vrot.slane %v1928_v18, %v30_v8  ;;  %v3180_v21 = vrot.slane %v41_v13, %v30_v8  ;;  %v3206_v26 = vrot.slane %v2229_v25, %v30_v8  ;;  %v3210_v28 = vrot.slane %v2267_v27, %v30_v8 }
   0x9   :  { %66 = vrot.lane.b32.xlu0 %v3154_v11, %s3113_s18  ;;  %70 = vrot.lane.b32.xlu1 %v3156_v12, %s3113_s18  ;;  %v3164_v15 = vcombine.high %v3154_v11, %v3154_v11  ;;  %v3168_v16 = vcombine.high %v3156_v12, %v3156_v12  ;;  %v3178_v20 = vcombine.high %v3170_v17, %v3170_v17  ;;  %v340_v59 = vsel %vm100_vm1, %v3154_v11, 0 }
   0xa   :  { %v3186_v22 = vcombine.high %v3180_v21, %v3180_v21  ;;  %v3223_v30 = vrot.slane %v2568_v29, %v30_v8  ;;  %v3227_v32 = vrot.slane %v2606_v31, %v30_v8  ;;  %v1943_v33 = vcombine.high %v3158_v14, %v3158_v14  ;;  %v3003_v29 = vld [vmem:[%s3703_s1 + $0x8] sm:$0xf] }
   0xb   :  { %v346_v62 = vsel %vm100_vm1, %v3156_v12, 0  ;;  %v2282_v1 = vcombine.high %v3206_v26, %v3206_v26  ;;  %v352_v3 = vsel %vm100_vm1, %v3170_v17, 0  ;;  %v358_v6 = vsel %vm100_vm1, %v3180_v21, 0 }
   0xc   :  { %v364_v13 = vsel %vm100_vm1, %v3191_v23, 0  ;;  %vm2644_vm9 = vcmask 736256   ;;  %vm2973_vm10 = vcmask 1043456   ;;  %vm2974_vm11 = vcmask 867332  }
   0xd   :  { %68 = vrot.lane.b32.xlu0 %v3164_v15, %s3113_s18  ;;  %72 = vrot.lane.b32.xlu1 %v3168_v16, %s3113_s18  ;;  %vm2975_vm12 = vmor %vm2974_vm11, %vm2973_vm10 }
  0x11   :  { %74 = vrot.lane.b32.xlu0 %v3170_v17, %s3113_s18  ;;  %76 = vrot.lane.b32.xlu1 %v3178_v20, %s3113_s18 }
  0x15   :  { %78 = vrot.lane.b32.xlu0 %v3180_v21, %s3113_s18  ;;  %80 = vrot.lane.b32.xlu1 %v3186_v22, %s3113_s18 }
  0x19   :  { %82 = vrot.lane.b32.xlu0 %v3191_v23, %s3113_s18  ;;  %84 = vrot.lane.b32.xlu1 %v3197_v24, %s3113_s18 }
  0x1d   :  { %624 = vrot.lane.b32.xlu0 %v3154_v11, %s3114_s23  ;;  %626 = vrot.lane.b32.xlu1 %v3164_v15, %s3114_s23 }
  0x21   :  { %628 = vrot.lane.b32.xlu0 %v3156_v12, %s3114_s23  ;;  %630 = vrot.lane.b32.xlu1 %v3168_v16, %s3114_s23 }
  0x25   :  { %632 = vrot.lane.b32.xlu0 %v3170_v17, %s3114_s23  ;;  %634 = vrot.lane.b32.xlu1 %v3178_v20, %s3114_s23 }
  0x29   :  { %636 = vrot.lane.b32.xlu0 %v3180_v21, %s3114_s23  ;;  %638 = vrot.lane.b32.xlu1 %v3186_v22, %s3114_s23 }
  0x2d   :  { %640 = vrot.lane.b32.xlu0 %v3191_v23, %s3114_s23  ;;  %642 = vrot.lane.b32.xlu1 %v3197_v24, %s3114_s23 }
  0x31   :  { %952 = vrot.lane.b32.xlu0 %v3154_v11, %s3115_s24  ;;  %954 = vrot.lane.b32.xlu1 %v3164_v15, %s3115_s24 }
  0x35   :  { %956 = vrot.lane.b32.xlu0 %v3156_v12, %s3115_s24  ;;  %958 = vrot.lane.b32.xlu1 %v3168_v16, %s3115_s24 }
  0x39   :  { %960 = vrot.lane.b32.xlu0 %v3170_v17, %s3115_s24  ;;  %962 = vrot.lane.b32.xlu1 %v3178_v20, %s3115_s24 }
  0x3d   :  { %964 = vrot.lane.b32.xlu0 %v3180_v21, %s3115_s24  ;;  %966 = vrot.lane.b32.xlu1 %v3186_v22, %s3115_s24 }
  0x41   :  { %968 = vrot.lane.b32.xlu0 %v3191_v23, %s3115_s24  ;;  %970 = vrot.lane.b32.xlu1 %v3197_v24, %s3115_s24 }
  0x45   :  { %1280 = vrot.lane.b32.xlu0 %v3154_v11, %s3116_s0  ;;  %1282 = vrot.lane.b32.xlu1 %v3164_v15, %s3116_s0 }
  0x49   :  { %1284 = vrot.lane.b32.xlu0 %v3156_v12, %s3116_s0  ;;  %1286 = vrot.lane.b32.xlu1 %v3168_v16, %s3116_s0 }
  0x4d   :  { %1288 = vrot.lane.b32.xlu0 %v3170_v17, %s3116_s0  ;;  %1290 = vrot.lane.b32.xlu1 %v3178_v20, %s3116_s0 }
  0x51   :  { %1292 = vrot.lane.b32.xlu0 %v3180_v21, %s3116_s0  ;;  %1294 = vrot.lane.b32.xlu1 %v3186_v22, %s3116_s0 }
  0x55   :  { %1296 = vrot.lane.b32.xlu0 %v3191_v23, %s3116_s0  ;;  %1298 = vrot.lane.b32.xlu1 %v3197_v24, %s3116_s0 }
  0x59   :  { %1608 = vrot.lane.b32.xlu0 %v3154_v11, %s3117_s27  ;;  %1610 = vrot.lane.b32.xlu1 %v3164_v15, %s3117_s27 }
  0x5d   :  { %1612 = vrot.lane.b32.xlu0 %v3156_v12, %s3117_s27  ;;  %1614 = vrot.lane.b32.xlu1 %v3168_v16, %s3117_s27 }
  0x61   :  { %1616 = vrot.lane.b32.xlu0 %v3170_v17, %s3117_s27  ;;  %1618 = vrot.lane.b32.xlu1 %v3178_v20, %s3117_s27 }
  0x65   :  { %1620 = vrot.lane.b32.xlu0 %v3180_v21, %s3117_s27  ;;  %1622 = vrot.lane.b32.xlu1 %v3186_v22, %s3117_s27 }
  0x69   :  { %1624 = vrot.lane.b32.xlu0 %v3191_v23, %s3117_s27  ;;  %1626 = vrot.lane.b32.xlu1 %v3197_v24, %s3117_s27 }
  0x6d   :  { %1944 = vrot.lane.b32.xlu0 %v3154_v11, %s3118_s28  ;;  %1946 = vrot.lane.b32.xlu1 %v3164_v15, %s3118_s28 }
  0x71   :  { %1948 = vrot.lane.b32.xlu0 %v3156_v12, %s3118_s28  ;;  %1950 = vrot.lane.b32.xlu1 %v3168_v16, %s3118_s28 }
  0x75   :  { %1952 = vrot.lane.b32.xlu0 %v3170_v17, %s3118_s28  ;;  %1954 = vrot.lane.b32.xlu1 %v3178_v20, %s3118_s28 }
  0x79   :  { %1956 = vrot.lane.b32.xlu0 %v3180_v21, %s3118_s28  ;;  %1958 = vrot.lane.b32.xlu1 %v3186_v22, %s3118_s28 }
  0x7b   :  { %v67_v34 = vpop.permute.xlu0 %66  ;;  %v71_v35 = vpop.permute.xlu1 %70 }
  0x7d   :  { %1960 = vrot.lane.b32.xlu0 %v3158_v14, %s3118_s28  ;;  %1962 = vrot.lane.b32.xlu1 %v1943_v33, %s3118_s28 }
  0x7f   :  { %v69_v36 = vpop.permute.xlu0 %68  ;;  %v73_v37 = vpop.permute.xlu1 %72 }
  0x80   :  { %v88_v38 = vsel %vm86_vm0, %v69_v36, %v71_v35  ;;  %v87_v39 = vsel %vm86_vm0, %v67_v34, %v69_v36  ;;  %v89_v42 = vsel %vm86_vm0, %v71_v35, %v73_v37 }
  0x81   :  { %2983 = vmatprep.subr.msk.bf16.mxu0 %vm100_vm1, %v88_v38  ;;  %v102_v40 = vsel %vm100_vm1, %v87_v39, 0  ;;  %1964 = vrot.lane.b32.xlu0 %v3172_v19, %s3118_s28  ;;  %v108_v46 = vsel %vm100_vm1, %v89_v42, 0 }
  0x82   :  { %146 = vmatpush1.bf16.msra.mxu0 %v102_v40  ;;  %2283 = vrot.lane.b32.xlu1 %v3154_v11, %s3119_s4 }
  0x83   :  { %v75_v43 = vpop.permute.xlu0 %74  ;;  %v77_v44 = vpop.permute.xlu1 %76 }
  0x84   :  { %v90_v45 = vsel %vm86_vm0, %v73_v37, %v75_v43  ;;  %v91_v47 = vsel %vm86_vm0, %v75_v43, %v77_v44 }
  0x85   :  { %2984 = vmatmul.mubr.msk.bf16.vlgmr.msra.gmra.mxu0 %vm96_vm2, %v2981_v41  ;;  %2985 = vmatprep.subr.msk.bf16.mxu1 %vm100_vm1, %v90_v45  ;;  %v114_v51 = vsel %vm100_vm1, %v91_v47, 0 }
  0x86   :  { %187 = vmatpush1.bf16.msra.mxu1 %v108_v46  ;;  %245 = vmatprep.mubr.bf16.mxu0 %v3112_v7 }
  0x87   :  { %v79_v48 = vpop.permute.xlu0 %78  ;;  %v81_v49 = vpop.permute.xlu1 %80  ;;  %2285 = vrot.lane.b32.xlu0 %v3164_v15, %s3119_s4  ;;  %2287 = vrot.lane.b32.xlu1 %v3156_v12, %s3119_s4 }
  0x88   :  { %v92_v50 = vsel %vm86_vm0, %v77_v44, %v79_v48  ;;  %v93_v52 = vsel %vm86_vm0, %v79_v48, %v81_v49 }
  0x89   :  { %2986 = vmatmul.mubr.msk.bf16.vlgmr.msra.gmra.mxu1 %vm96_vm2, %v2981_v41  ;;  %2987 = vmatprep.subr.msk.bf16.mxu0 %vm100_vm1, %v92_v50  ;;  %v120_v57 = vsel %vm100_vm1, %v93_v52, 0  ;;  %v3015_v52 = vld [vmem:[%s3703_s1 + $0xc] sm:$0xf] }
  0x8a   :  { %228 = vmatpush1.bf16.msra.mxu0 %v114_v51  ;;  %286 = vmatprep.mubr.bf16.mxu1 %v3112_v7 }
  0x8b   :  { %v83_v53 = vpop.permute.xlu0 %82  ;;  %v85_v54 = vpop.permute.xlu1 %84  ;;  %2289 = vrot.lane.b32.xlu0 %v3168_v16, %s3119_s4  ;;  %2291 = vrot.lane.b32.xlu1 %v3170_v17, %s3119_s4 }
  0x8c   :  { %v94_v55 = vsel %vm86_vm0, %v81_v49, %v83_v53  ;;  %v95_v56 = vsel %vm86_vm0, %v83_v53, %v85_v54  ;;  %2991 = vmatprep.subr.msk.bf16.mxu0 %vm100_vm1, %v85_v54 }
  0x8d   :  { %2988 = vmatmul.mubr.msk.bf16.vlgmr.msra.gmra.mxu0 %vm96_vm2, %v2981_v41  ;;  %2989 = vmatprep.subr.msk.bf16.mxu1 %vm100_vm1, %v94_v55  ;;  %v126_v58 = vsel %vm100_vm1, %v95_v56, 0 }
  0x8e   :  { %269 = vmatpush1.bf16.msra.mxu1 %v120_v57  ;;  %310 = vmatpush1.bf16.msra.mxu0 %v126_v58 }
  0x8f   :  { %327 = vmatprep.mubr.bf16.mxu0 %v3112_v7  ;;  %2993 = vmatprep.subr.msk.bf16.mxu1 %vm100_vm1, %v3164_v15  ;;  %v625_v60 = vpop.permute.xlu0 %624  ;;  %v627_v61 = vpop.permute.xlu1 %626 }
  0x90   :  { %2293 = vrot.lane.b32.xlu0 %v3178_v20, %s3119_s4  ;;  %2995 = vmatprep.subr.msk.bf16.mxu0 %vm100_vm1, %v3168_v16 }
  0x91   :  { %2990 = vmatmul.mubr.msk.bf16.vlgmr.msra.gmra.mxu1 %vm96_vm2, %v2981_v41  ;;  %2295 = vrot.lane.b32.xlu1 %v3180_v21, %s3119_s4 }
  0x92   :  { %384 = vmatpush1.bf16.msra.mxu1 %v340_v59  ;;  %401 = vmatprep.mubr.bf16.mxu1 %v3112_v7 }
  0x93   :  { %2997 = vmatprep.subr.msk.bf16.mxu1 %vm100_vm1, %v3178_v20  ;;  %v629_v63 = vpop.permute.xlu0 %628  ;;  %v631_v0 = vpop.permute.xlu1 %630 }
  0x94   :  { %2297 = vrot.lane.b32.xlu0 %v3186_v22, %s3119_s4  ;;  %v646_v10 = vsel %vm644_vm3, %v627_v61, %v629_v63 }
  0x95   :  { %2992 = vmatmul.mubr.msk.bf16.vlgmr.msra.gmra.mxu0 %vm96_vm2, %v2981_v41  ;;  %2299 = vrot.lane.b32.xlu1 %v3206_v26, %s3119_s4 }
  0x96   :  { %425 = vmatpush1.bf16.msra.mxu0 %v346_v62  ;;  %442 = vmatprep.mubr.bf16.mxu0 %v3112_v7 }
  0x97   :  { %2999 = vmatprep.subr.msk.bf16.mxu0 %vm100_vm1, %v3186_v22  ;;  %v633_v4 = vpop.permute.xlu0 %632  ;;  %v635_v5 = vpop.permute.xlu1 %634 }
  0x98   :  { %2301 = vrot.lane.b32.xlu0 %v2282_v1, %s3119_s4  ;;  %v648_v19 = vsel %vm644_vm3, %v631_v0, %v633_v4 }
  0x99   :  { %2994 = vmatmul.mubr.msk.bf16.vlgmr.msra.gmra.mxu1 %vm96_vm2, %v15_v2  ;;  %2303 = vrot.lane.b32.xlu1 %v3210_v28, %s3119_s4  ;;  %v649_v28 = vsel %vm644_vm3, %v633_v4, %v635_v5 }
  0x9a   :  { %466 = vmatpush1.bf16.msra.mxu1 %v352_v3  ;;  %483 = vmatprep.mubr.bf16.mxu1 %v3112_v7 }
  0x9b   :  { %3001 = vmatprep.subr.msk.bf16.mxu1 %vm100_vm1, %v3197_v24  ;;  %v637_v8 = vpop.permute.xlu0 %636  ;;  %v639_v9 = vpop.permute.xlu1 %638 }
  0x9c   :  { %2622 = vrot.lane.b32.xlu0 %v3154_v11, %s3120_s7  ;;  %v645_v11 = vsel %vm644_vm3, %v625_v60, %v627_v61  ;;  %v650_v24 = vsel %vm644_vm3, %v635_v5, %v637_v8  ;;  %v651_v33 = vsel %vm644_vm3, %v637_v8, %v639_v9 }
  0x9d   :  { %2996 = vmatmul.mubr.msk.bf16.vlgmr.msra.gmra.mxu0 %vm96_vm2, %v15_v2  ;;  %2624 = vrot.lane.b32.xlu1 %v3164_v15, %s3120_s7 }
  0x9e   :  { %507 = vmatpush1.bf16.msra.mxu0 %v358_v6  ;;  %524 = vmatprep.mubr.bf16.mxu0 %v3112_v7 }
  0x9f   :  { %3005 = vmatprep.subr.msk.bf16.mxu0 %vm100_vm1, %v646_v10  ;;  %v641_v14 = vpop.permute.xlu0 %640  ;;  %v643_v18 = vpop.permute.xlu1 %642 }
  0xa0   :  { %2626 = vrot.lane.b32.xlu0 %v3156_v12, %s3120_s7  ;;  %v658_v12 = vsel %vm100_vm1, %v645_v11, 0  ;;  %v652_v27 = vsel %vm644_vm3, %v639_v9, %v641_v14  ;;  %v653_v37 = vsel %vm644_vm3, %v641_v14, %v643_v18 }
  0xa1   :  { %2998 = vmatmul.mubr.msk.bf16.vlgmr.msra.gmra.mxu1 %vm96_vm2, %v15_v2  ;;  %2628 = vrot.lane.b32.xlu1 %v3168_v16, %s3120_s7  ;;  %v647_v16 = vsel %vm644_vm3, %v629_v63, %v631_v0  ;;  %v682_v41 = vsel %vm100_vm1, %v653_v37, 0 }
  0xa2   :  { %548 = vmatpush1.bf16.msra.mxu1 %v364_v13  ;;  %565 = vmatprep.mubr.bf16.mxu1 %v3112_v7 }
  0xa3   :  { %3007 = vmatprep.subr.msk.bf16.mxu1 %vm100_vm1, %v648_v19  ;;  %v953_v15 = vpop.permute.xlu0 %952  ;;  %v955_v23 = vpop.permute.xlu1 %954  ;;  %v3027_v19 = vld [vmem:[%s3703_s1 + $0x10] sm:$0xf] }
  0xa4   :  { %2630 = vrot.lane.b32.xlu0 %v3170_v17, %s3120_s7  ;;  %v664_v17 = vsel %vm100_vm1, %v647_v16, 0 }
  0xa5   :  { %3000 = vmatmul.mubr.msk.bf16.vlgmr.msra.gmra.mxu0 %vm96_vm2, %v15_v2  ;;  %2632 = vrot.lane.b32.xlu1 %v3178_v20, %s3120_s7  ;;  %v2621_v20 = vcombine.high %v3223_v30, %v3223_v30 }
  0xa6   :  { %702 = vmatpush1.bf16.msra.mxu0 %v658_v12  ;;  %719 = vmatprep.mubr.bf16.mxu0 %v3112_v7 }
  0xa7   :  { %3009 = vmatprep.subr.msk.bf16.mxu0 %vm100_vm1, %v650_v24  ;;  %v957_v25 = vpop.permute.xlu0 %956  ;;  %v959_v26 = vpop.permute.xlu1 %958 }
  0xa8   :  { %2634 = vrot.lane.b32.xlu0 %v3180_v21, %s3120_s7  ;;  %v974_v36 = vsel %vm972_vm4, %v955_v23, %v957_v25  ;;  %v975_v46 = vsel %vm972_vm4, %v957_v25, %v959_v26 }
  0xa9   :  { %3002 = vmatmul.mubr.msk.bf16.vlgmr.msra.gmra.mxu1 %vm96_vm2, %v15_v2  ;;  %2636 = vrot.lane.b32.xlu1 %v3186_v22, %s3120_s7  ;;  %v670_v22 = vsel %vm100_vm1, %v649_v28, 0  ;;  %v992_v50 = vsel %vm100_vm1, %v975_v46, 0 }
  0xaa   :  { %743 = vmatpush1.bf16.msra.mxu1 %v664_v17  ;;  %760 = vmatprep.mubr.bf16.mxu1 %v3112_v7 }
  0xab   :  { %3011 = vmatprep.subr.msk.bf16.mxu1 %vm100_vm1, %v652_v27  ;;  %v961_v21 = vpop.permute.xlu0 %960  ;;  %v963_v31 = vpop.permute.xlu1 %962 }
  0xac   :  { %2638 = vrot.lane.b32.xlu0 %v3223_v30, %s3120_s7  ;;  %v676_v30 = vsel %vm100_vm1, %v651_v33, 0  ;;  %v976_v40 = vsel %vm972_vm4, %v959_v26, %v961_v21  ;;  %v977_v51 = vsel %vm972_vm4, %v961_v21, %v963_v31 }
  0xad   :  { %3006 = vmatmul.mubr.msk.bf16.vlgmr.msra.gmra.mxu0 %vm96_vm2, %v3003_v29  ;;  %2640 = vrot.lane.b32.xlu1 %v2621_v20, %s3120_s7  ;;  %v998_v55 = vsel %vm100_vm1, %v977_v51, 0 }
  0xae   :  { %784 = vmatpush1.bf16.msra.mxu0 %v670_v22  ;;  %801 = vmatprep.mubr.bf16.mxu0 %v3112_v7 }
  0xaf   :  { %3013 = vmatprep.subr.msk.bf16.mxu0 %vm100_vm1, %v643_v18  ;;  %v965_v34 = vpop.permute.xlu0 %964  ;;  %v967_v35 = vpop.permute.xlu1 %966 }
  0xb0   :  { %2642 = vrot.lane.b32.xlu0 %v3227_v32, %s3120_s7  ;;  %v973_v32 = vsel %vm972_vm4, %v953_v15, %v955_v23  ;;  %v978_v44 = vsel %vm972_vm4, %v963_v31, %v965_v34  ;;  %v979_v56 = vsel %vm972_vm4, %v965_v34, %v967_v35 }
  0xb1   :  { %3008 = vmatmul.mubr.msk.bf16.vlgmr.msra.gmra.mxu1 %vm96_vm2, %v3003_v29  ;;  %v986_v45 = vsel %vm100_vm1, %v973_v32, 0  ;;  %v1004_v60 = vsel %vm100_vm1, %v979_v56, 0 }
  0xb2   :  { %825 = vmatpush1.bf16.msra.mxu1 %v676_v30  ;;  %842 = vmatprep.mubr.bf16.mxu1 %v3112_v7 }
  0xb3   :  { %3017 = vmatprep.subr.msk.bf16.mxu1 %vm100_vm1, %v974_v36  ;;  %v969_v38 = vpop.permute.xlu0 %968  ;;  %v971_v39 = vpop.permute.xlu1 %970 }
  0xb4   :  { %v980_v49 = vsel %vm972_vm4, %v967_v35, %v969_v38  ;;  %v981_v61 = vsel %vm972_vm4, %v969_v38, %v971_v39 }
  0xb5   :  { %3010 = vmatmul.mubr.msk.bf16.vlgmr.msra.gmra.mxu0 %vm96_vm2, %v3003_v29  ;;  %v1010_v1 = vsel %vm100_vm1, %v981_v61, 0 }
  0xb6   :  { %866 = vmatpush1.bf16.msra.mxu0 %v682_v41  ;;  %883 = vmatprep.mubr.bf16.mxu0 %v3112_v7 }
  0xb7   :  { %3019 = vmatprep.subr.msk.bf16.mxu0 %vm100_vm1, %v976_v40  ;;  %v1281_v42 = vpop.permute.xlu0 %1280  ;;  %v1283_v43 = vpop.permute.xlu1 %1282  ;;  %v3039_v40 = vld [vmem:[%s3703_s1 + $0x14] sm:$0xf] }
  0xb8   :  { %v1301_v2 = vsel %vm1300_vm5, %v1281_v42, %v1283_v43 }
  0xb9   :  { %3012 = vmatmul.mubr.msk.bf16.vlgmr.msra.gmra.mxu1 %vm96_vm2, %v3003_v29  ;;  %v1314_v6 = vsel %vm100_vm1, %v1301_v2, 0 }
  0xba   :  { %1030 = vmatpush1.bf16.msra.mxu1 %v986_v45  ;;  %1047 = vmatprep.mubr.bf16.mxu1 %v3112_v7 }
  0xbb   :  { %3021 = vmatprep.subr.msk.bf16.mxu1 %vm100_vm1, %v978_v44  ;;  %v1285_v47 = vpop.permute.xlu0 %1284  ;;  %v1287_v48 = vpop.permute.xlu1 %1286 }
  0xbc   :  { %v1302_v59 = vsel %vm1300_vm5, %v1283_v43, %v1285_v47  ;;  %v1303_v8 = vsel %vm1300_vm5, %v1285_v47, %v1287_v48  ;;  %v2903_v47 = vld [vmem:[%s3704_s2] sm:$0xff] }
  0xbd   :  { %3014 = vmatmul.mubr.msk.bf16.vlgmr.msra.gmra.mxu0 %vm96_vm2, %v3003_v29  ;;  %v1320_v14 = vsel %vm100_vm1, %v1303_v8, 0  ;;  %2906 = vperm.xlu1 %3104, %v2903_v47  }
  0xbe   :  { %1071 = vmatpush1.bf16.msra.mxu0 %v992_v50  ;;  %1088 = vmatprep.mubr.bf16.mxu0 %v3112_v7 }
  0xbf   :  { %3023 = vmatprep.subr.msk.bf16.mxu0 %vm100_vm1, %v980_v49  ;;  %v1289_v53 = vpop.permute.xlu0 %1288  ;;  %v1291_v54 = vpop.permute.xlu1 %1290 }
  0xc0   :  { %v1304_v0 = vsel %vm1300_vm5, %v1287_v48, %v1289_v53  ;;  %v1305_v18 = vsel %vm1300_vm5, %v1289_v53, %v1291_v54 }
  0xc1   :  { %3018 = vmatmul.mubr.msk.bf16.vlgmr.msra.gmra.mxu1 %vm96_vm2, %v3015_v52  ;;  %v1326_v23 = vsel %vm100_vm1, %v1305_v18, 0 }
  0xc2   :  { %1112 = vmatpush1.bf16.msra.mxu1 %v998_v55  ;;  %1129 = vmatprep.mubr.bf16.mxu1 %v3112_v7 }
  0xc3   :  { %3025 = vmatprep.subr.msk.bf16.mxu1 %vm100_vm1, %v971_v39  ;;  %v1293_v57 = vpop.permute.xlu0 %1292  ;;  %v1295_v58 = vpop.permute.xlu1 %1294 }
  0xc4   :  { %v1306_v5 = vsel %vm1300_vm5, %v1291_v54, %v1293_v57  ;;  %v1307_v24 = vsel %vm1300_vm5, %v1293_v57, %v1295_v58 }
  0xc5   :  { %3020 = vmatmul.mubr.msk.bf16.vlgmr.msra.gmra.mxu0 %vm96_vm2, %v3015_v52  ;;  %v1332_v26 = vsel %vm100_vm1, %v1307_v24, 0 }
  0xc6   :  { %1153 = vmatpush1.bf16.msra.mxu0 %v1004_v60  ;;  %1170 = vmatprep.mubr.bf16.mxu0 %v3112_v7 }
  0xc7   :  { %3029 = vmatprep.subr.msk.bf16.mxu0 %vm100_vm1, %v1302_v59  ;;  %v1297_v62 = vpop.permute.xlu0 %1296  ;;  %v1299_v63 = vpop.permute.xlu1 %1298 }
  0xc8   :  { %v1308_v13 = vsel %vm1300_vm5, %v1295_v58, %v1297_v62  ;;  %v1309_v27 = vsel %vm1300_vm5, %v1297_v62, %v1299_v63 }
  0xc9   :  { %3022 = vmatmul.mubr.msk.bf16.vlgmr.msra.gmra.mxu1 %vm96_vm2, %v3015_v52  ;;  %v1338_v29 = vsel %vm100_vm1, %v1309_v27, 0 }
  0xca   :  { %1194 = vmatpush1.bf16.msra.mxu1 %v1010_v1  ;;  %1211 = vmatprep.mubr.bf16.mxu1 %v3112_v7  ;;  %v3051_v1 = vld [vmem:[%s3703_s1 + $0x18] sm:$0xf] }
  0xcb   :  { %3031 = vmatprep.subr.msk.bf16.mxu1 %vm100_vm1, %v1304_v0  ;;  %v1609_v3 = vpop.permute.xlu0 %1608  ;;  %v1611_v4 = vpop.permute.xlu1 %1610 }
  0xcc   :  { %v1629_v21 = vsel %vm1628_vm6, %v1609_v3, %v1611_v4 }
  0xcd   :  { %3024 = vmatmul.mubr.msk.bf16.vlgmr.msra.gmra.mxu0 %vm96_vm2, %v3015_v52  ;;  %v1642_v34 = vsel %vm100_vm1, %v1629_v21, 0 }
  0xce   :  { %1358 = vmatpush1.bf16.msra.mxu0 %v1314_v6  ;;  %1375 = vmatprep.mubr.bf16.mxu0 %v3112_v7 }
  0xcf   :  { %3033 = vmatprep.subr.msk.bf16.mxu0 %vm100_vm1, %v1306_v5  ;;  %v1613_v9 = vpop.permute.xlu0 %1612  ;;  %v1615_v10 = vpop.permute.xlu1 %1614 }
  0xd0   :  { %v1630_v25 = vsel %vm1628_vm6, %v1611_v4, %v1613_v9  ;;  %v1631_v35 = vsel %vm1628_vm6, %v1613_v9, %v1615_v10 }
  0xd1   :  { %3026 = vmatmul.mubr.msk.bf16.vlgmr.msra.gmra.mxu1 %vm96_vm2, %v3015_v52  ;;  %v1648_v38 = vsel %vm100_vm1, %v1631_v35, 0 }
  0xd2   :  { %1399 = vmatpush1.bf16.msra.mxu1 %v1320_v14  ;;  %1416 = vmatprep.mubr.bf16.mxu1 %v3112_v7 }
  0xd3   :  { %3035 = vmatprep.subr.msk.bf16.mxu1 %vm100_vm1, %v1308_v13  ;;  %v1617_v11 = vpop.permute.xlu0 %1616  ;;  %v1619_v15 = vpop.permute.xlu1 %1618 }
  0xd4   :  { %v1632_v28 = vsel %vm1628_vm6, %v1615_v10, %v1617_v11  ;;  %v1633_v39 = vsel %vm1628_vm6, %v1617_v11, %v1619_v15 }
  0xd5   :  { %3030 = vmatmul.mubr.msk.bf16.vlgmr.msra.gmra.mxu0 %vm96_vm2, %v3027_v19  ;;  %v1654_v42 = vsel %vm100_vm1, %v1633_v39, 0 }
  0xd6   :  { %1440 = vmatpush1.bf16.msra.mxu0 %v1326_v23  ;;  %1457 = vmatprep.mubr.bf16.mxu0 %v3112_v7 }
  0xd7   :  { %3037 = vmatprep.subr.msk.bf16.mxu0 %vm100_vm1, %v1299_v63  ;;  %v1621_v12 = vpop.permute.xlu0 %1620  ;;  %v1623_v16 = vpop.permute.xlu1 %1622 }
  0xd8   :  { %v1634_v33 = vsel %vm1628_vm6, %v1619_v15, %v1621_v12  ;;  %v1635_v43 = vsel %vm1628_vm6, %v1621_v12, %v1623_v16 }
  0xd9   :  { %3032 = vmatmul.mubr.msk.bf16.vlgmr.msra.gmra.mxu1 %vm96_vm2, %v3027_v19  ;;  %v1660_v48 = vsel %vm100_vm1, %v1635_v43, 0 }
  0xda   :  { %1481 = vmatpush1.bf16.msra.mxu1 %v1332_v26  ;;  %1498 = vmatprep.mubr.bf16.mxu1 %v3112_v7 }
  0xdb   :  { %3041 = vmatprep.subr.msk.bf16.mxu1 %vm100_vm1, %v1630_v25  ;;  %v1625_v17 = vpop.permute.xlu0 %1624  ;;  %v1627_v20 = vpop.permute.xlu1 %1626 }
  0xdc   :  { %v1636_v37 = vsel %vm1628_vm6, %v1623_v16, %v1625_v17  ;;  %v1637_v49 = vsel %vm1628_vm6, %v1625_v17, %v1627_v20 }
  0xdd   :  { %3034 = vmatmul.mubr.msk.bf16.vlgmr.msra.gmra.mxu0 %vm96_vm2, %v3027_v19  ;;  %v1666_v53 = vsel %vm100_vm1, %v1637_v49, 0 }
  0xde   :  { %1522 = vmatpush1.bf16.msra.mxu0 %v1338_v29  ;;  %1539 = vmatprep.mubr.bf16.mxu0 %v3112_v7 }
  0xdf   :  { %3043 = vmatprep.subr.msk.bf16.mxu0 %vm100_vm1, %v1632_v28  ;;  %v1945_v31 = vpop.permute.xlu0 %1944  ;;  %v1947_v22 = vpop.permute.xlu1 %1946  ;;  %v3062_v28 = vld [vmem:[%s3703_s1 + $0x1c] sm:$0xf] }
  0xe0   :  { %v1967_v54 = vsel %vm1966_vm7, %v1945_v31, %v1947_v22 }
  0xe1   :  { %3036 = vmatmul.mubr.msk.bf16.vlgmr.msra.gmra.mxu1 %vm96_vm2, %v3027_v19  ;;  %v1981_v58 = vsel %vm100_vm1, %v1967_v54, 0 }
  0xe2   :  { %1686 = vmatpush1.bf16.msra.mxu1 %v1642_v34  ;;  %1703 = vmatprep.mubr.bf16.mxu1 %v3112_v7 }
  0xe3   :  { %3045 = vmatprep.subr.msk.bf16.mxu1 %vm100_vm1, %v1634_v33  ;;  %v1949_v36 = vpop.permute.xlu0 %1948  ;;  %v1951_v30 = vpop.permute.xlu1 %1950 }
  0xe4   :  { %v1968_v46 = vsel %vm1966_vm7, %v1947_v22, %v1949_v36  ;;  %v1969_v59 = vsel %vm1966_vm7, %v1949_v36, %v1951_v30 }
  0xe5   :  { %3038 = vmatmul.mubr.msk.bf16.vlgmr.msra.gmra.mxu0 %vm96_vm2, %v3027_v19  ;;  %v1987_v61 = vsel %vm100_vm1, %v1969_v59, 0 }
  0xe6   :  { %1727 = vmatpush1.bf16.msra.mxu0 %v1648_v38  ;;  %1744 = vmatprep.mubr.bf16.mxu0 %v3112_v7 }
  0xe7   :  { %3047 = vmatprep.subr.msk.bf16.mxu0 %vm100_vm1, %v1636_v37  ;;  %v1953_v41 = vpop.permute.xlu0 %1952  ;;  %v1955_v32 = vpop.permute.xlu1 %1954 }
  0xe8   :  { %v1970_v52 = vsel %vm1966_vm7, %v1951_v30, %v1953_v41  ;;  %v1971_v0 = vsel %vm1966_vm7, %v1953_v41, %v1955_v32 }
  0xe9   :  { %3042 = vmatmul.mubr.msk.bf16.vlgmr.msra.gmra.mxu1 %vm96_vm2, %v3039_v40  ;;  %v1993_v3 = vsel %vm100_vm1, %v1971_v0, 0 }
  0xea   :  { %1768 = vmatpush1.bf16.msra.mxu1 %v1654_v42  ;;  %1785 = vmatprep.mubr.bf16.mxu1 %v3112_v7 }
  0xeb   :  { %3049 = vmatprep.subr.msk.bf16.mxu1 %vm100_vm1, %v1627_v20  ;;  %v1957_v44 = vpop.permute.xlu0 %1956  ;;  %v1959_v45 = vpop.permute.xlu1 %1958 }
  0xec   :  { %v1972_v56 = vsel %vm1966_vm7, %v1955_v32, %v1957_v44  ;;  %v1973_v6 = vsel %vm1966_vm7, %v1957_v44, %v1959_v45 }
  0xed   :  { %3044 = vmatmul.mubr.msk.bf16.vlgmr.msra.gmra.mxu0 %vm96_vm2, %v3039_v40  ;;  %v1999_v9 = vsel %vm100_vm1, %v1973_v6, 0 }
  0xee   :  { %1809 = vmatpush1.bf16.msra.mxu0 %v1660_v48  ;;  %1826 = vmatprep.mubr.bf16.mxu0 %v3112_v7 }
  0xef   :  { %3052 = vmatprep.subr.msk.bf16.mxu0 %vm100_vm1, %v1968_v46  ;;  %v1961_v50 = vpop.permute.xlu0 %1960  ;;  %v1963_v51 = vpop.permute.xlu1 %1962 }
  0xf0   :  { %v1974_v60 = vsel %vm1966_vm7, %v1959_v45, %v1961_v50  ;;  %v1975_v10 = vsel %vm1966_vm7, %v1961_v50, %v1963_v51 }
  0xf1   :  { %3046 = vmatmul.mubr.msk.bf16.vlgmr.msra.gmra.mxu1 %vm96_vm2, %v3039_v40  ;;  %v2005_v11 = vsel %vm100_vm1, %v1975_v10, 0 }
  0xf2   :  { %1850 = vmatpush1.bf16.msra.mxu1 %v1666_v53  ;;  %1867 = vmatprep.mubr.bf16.mxu1 %v3112_v7 }
  0xf3   :  { %3054 = vmatprep.subr.msk.bf16.mxu1 %vm100_vm1, %v1970_v52  ;;  %v1965_v55 = vpop.permute.xlu0 %1964  ;;  %v3073_v52 = vld [vmem:[%s3703_s1 + $0x20] sm:$0xf] }
  0xf4   :  { %v2284_v57 = vpop.permute.xlu1 %2283  ;;  %v1976_v2 = vsel %vm1966_vm7, %v1963_v51, %v1965_v55 }
  0xf5   :  { %3048 = vmatmul.mubr.msk.bf16.vlgmr.msra.gmra.mxu0 %vm96_vm2, %v3039_v40 }
  0xf6   :  { %2025 = vmatpush1.bf16.msra.mxu0 %v1981_v58  ;;  %2042 = vmatprep.mubr.bf16.mxu0 %v3112_v7 }
  0xf7   :  { %3056 = vmatprep.subr.msk.bf16.mxu0 %vm100_vm1, %v1972_v56 }
  0xf9   :  { %3050 = vmatmul.mubr.msk.bf16.vlgmr.msra.gmra.mxu1 %vm96_vm2, %v3039_v40  ;;  %v2286_v62 = vpop.permute.xlu0 %2285  ;;  %v2288_v63 = vpop.permute.xlu1 %2287 }
  0xfa   :  { %2066 = vmatpush1.bf16.msra.mxu1 %v1987_v61  ;;  %2083 = vmatprep.mubr.bf16.mxu1 %v3112_v7  ;;  %v2307_v8 = vsel %vm2305_vm8, %v2286_v62, %v2288_v63  ;;  %v2306_v18 = vsel %vm2305_vm8, %v2284_v57, %v2286_v62 }
  0xfb   :  { %3058 = vmatprep.subr.msk.bf16.mxu1 %vm100_vm1, %v1974_v60  ;;  %v2320_v23 = vsel %vm100_vm1, %v2306_v18, 0 }
  0xfd   :  { %3053 = vmatmul.mubr.msk.bf16.vlgmr.msra.gmra.mxu0 %vm96_vm2, %v3051_v1  ;;  %v2290_v4 = vpop.permute.xlu0 %2289  ;;  %v2292_v5 = vpop.permute.xlu1 %2291 }
  0xfe   :  { %2107 = vmatpush1.bf16.msra.mxu0 %v1993_v3  ;;  %2124 = vmatprep.mubr.bf16.mxu0 %v3112_v7  ;;  %v2309_v19 = vsel %vm2305_vm8, %v2290_v4, %v2292_v5  ;;  %v2308_v12 = vsel %vm2305_vm8, %v2288_v63, %v2290_v4 }
  0xff   :  { %3060 = vmatprep.subr.msk.bf16.mxu0 %vm100_vm1, %v1976_v2  ;;  %v2326_v26 = vsel %vm100_vm1, %v2308_v12, 0 }
 0x101   :  { %3055 = vmatmul.mubr.msk.bf16.vlgmr.msra.gmra.mxu1 %vm96_vm2, %v3051_v1 }
 0x102   :  { %2148 = vmatpush1.bf16.msra.mxu1 %v1999_v9  ;;  %2165 = vmatprep.mubr.bf16.mxu1 %v3112_v7  ;;  %v2294_v13 = vpop.permute.xlu0 %2293 }
 0x103   :  { %3063 = vmatprep.subr.msk.bf16.mxu1 %vm100_vm1, %v2307_v8  ;;  %v2296_v14 = vpop.permute.xlu1 %2295  ;;  %v2310_v17 = vsel %vm2305_vm8, %v2292_v5, %v2294_v13 }
 0x104   :  { %v2311_v16 = vsel %vm2305_vm8, %v2294_v13, %v2296_v14  ;;  %v2332_v21 = vsel %vm100_vm1, %v2310_v17, 0 }
 0x105   :  { %3057 = vmatmul.mubr.msk.bf16.vlgmr.msra.gmra.mxu0 %vm96_vm2, %v3051_v1 }
 0x106   :  { %2189 = vmatpush1.bf16.msra.mxu0 %v2005_v11  ;;  %2206 = vmatprep.mubr.bf16.mxu0 %v3112_v7  ;;  %v2298_v15 = vpop.permute.xlu0 %2297 }
 0x107   :  { %3065 = vmatprep.subr.msk.bf16.mxu0 %vm100_vm1, %v2309_v19  ;;  %v2300_v24 = vpop.permute.xlu1 %2299  ;;  %v2312_v22 = vsel %vm2305_vm8, %v2296_v14, %v2298_v15 }
 0x108   :  { %v2313_v20 = vsel %vm2305_vm8, %v2298_v15, %v2300_v24  ;;  %v2338_v35 = vsel %vm100_vm1, %v2312_v22, 0 }
 0x109   :  { %3059 = vmatmul.mubr.msk.bf16.vlgmr.msra.gmra.mxu1 %vm96_vm2, %v3051_v1 }
 0x10a   :  { %2364 = vmatpush1.bf16.msra.mxu1 %v2320_v23  ;;  %2381 = vmatprep.mubr.bf16.mxu1 %v3112_v7  ;;  %v2302_v25 = vpop.permute.xlu0 %2301 }
 0x10b   :  { %3067 = vmatprep.subr.msk.bf16.mxu1 %vm100_vm1, %v2311_v16  ;;  %v2304_v27 = vpop.permute.xlu1 %2303  ;;  %v2314_v30 = vsel %vm2305_vm8, %v2300_v24, %v2302_v25 }
 0x10c   :  { %v2315_v33 = vsel %vm2305_vm8, %v2302_v25, %v2304_v27  ;;  %v2344_v39 = vsel %vm100_vm1, %v2314_v30, 0 }
 0x10d   :  { %3061 = vmatmul.mubr.msk.bf16.vlgmr.msra.gmra.mxu0 %vm96_vm2, %v3051_v1 }
 0x10e   :  { %2405 = vmatpush1.bf16.msra.mxu0 %v2326_v26  ;;  %2422 = vmatprep.mubr.bf16.mxu0 %v3112_v7  ;;  %v2623_v29 = vpop.permute.xlu0 %2622 }
 0x10f   :  { %3069 = vmatprep.subr.msk.bf16.mxu0 %vm100_vm1, %v2313_v20  ;;  %v2625_v31 = vpop.permute.xlu1 %2624 }
 0x110   :  { %v2645_v41 = vsel %vm2644_vm9, %v2623_v29, %v2625_v31 }
 0x111   :  { %3064 = vmatmul.mubr.msk.bf16.vlgmr.msra.gmra.mxu1 %vm96_vm2, %v3062_v28  ;;  %v2659_v43 = vsel %vm100_vm1, %v2645_v41, 0 }
 0x112   :  { %2446 = vmatpush1.bf16.msra.mxu1 %v2332_v21  ;;  %2463 = vmatprep.mubr.bf16.mxu1 %v3112_v7  ;;  %v2627_v34 = vpop.permute.xlu0 %2626 }
 0x113   :  { %3071 = vmatprep.subr.msk.bf16.mxu1 %vm100_vm1, %v2315_v33  ;;  %v2629_v36 = vpop.permute.xlu1 %2628  ;;  %v2646_v37 = vsel %vm2644_vm9, %v2625_v31, %v2627_v34 }
 0x114   :  { %v2647_v45 = vsel %vm2644_vm9, %v2627_v34, %v2629_v36 }
 0x115   :  { %3066 = vmatmul.mubr.msk.bf16.vlgmr.msra.gmra.mxu0 %vm96_vm2, %v3062_v28  ;;  %v2665_v48 = vsel %vm100_vm1, %v2647_v45, 0 }
 0x116   :  { %2487 = vmatpush1.bf16.msra.mxu0 %v2338_v35  ;;  %2504 = vmatprep.mubr.bf16.mxu0 %v3112_v7  ;;  %v2631_v38 = vpop.permute.xlu0 %2630 }
 0x117   :  { %3074 = vmatprep.subr.msk.bf16.mxu0 %vm100_vm1, %v2646_v37  ;;  %v2633_v40 = vpop.permute.xlu1 %2632  ;;  %v2648_v32 = vsel %vm2644_vm9, %v2629_v36, %v2631_v38 }
 0x118   :  { %v2649_v49 = vsel %vm2644_vm9, %v2631_v38, %v2633_v40 }
 0x119   :  { %3068 = vmatmul.mubr.msk.bf16.vlgmr.msra.gmra.mxu1 %vm96_vm2, %v3062_v28  ;;  %v2671_v54 = vsel %vm100_vm1, %v2649_v49, 0 }
 0x11a   :  { %2528 = vmatpush1.bf16.msra.mxu1 %v2344_v39  ;;  %2545 = vmatprep.mubr.bf16.mxu1 %v3112_v7  ;;  %v2635_v42 = vpop.permute.xlu0 %2634 }
 0x11b   :  { %3076 = vmatprep.subr.msk.bf16.mxu1 %vm100_vm1, %v2648_v32  ;;  %v2637_v44 = vpop.permute.xlu1 %2636  ;;  %v2650_v46 = vsel %vm2644_vm9, %v2633_v40, %v2635_v42 }
 0x11c   :  { %v2651_v55 = vsel %vm2644_vm9, %v2635_v42, %v2637_v44 }
 0x11d   :  { %3070 = vmatmul.mubr.msk.bf16.vlgmr.msra.gmra.mxu0 %vm96_vm2, %v3062_v28  ;;  %v2677_v57 = vsel %vm100_vm1, %v2651_v55, 0 }
 0x11e   :  { %2703 = vmatpush1.bf16.msra.mxu0 %v2659_v43  ;;  %2720 = vmatprep.mubr.bf16.mxu0 %v3112_v7  ;;  %v2639_v47 = vpop.permute.xlu0 %2638 }
 0x11f   :  { %3078 = vmatprep.subr.msk.bf16.mxu0 %vm100_vm1, %v2650_v46  ;;  %v2652_v50 = vsel %vm2644_vm9, %v2637_v44, %v2639_v47  ;;  %v2641_v51 = vpop.permute.xlu1 %2640 }
 0x120   :  { %v2653_v58 = vsel %vm2644_vm9, %v2639_v47, %v2641_v51 }
 0x121   :  { %3072 = vmatmul.mubr.msk.bf16.vlgmr.msra.gmra.mxu1 %vm96_vm2, %v3062_v28  ;;  %v2683_v59 = vsel %vm100_vm1, %v2653_v58, 0 }
 0x122   :  { %2744 = vmatpush1.bf16.msra.mxu1 %v2665_v48  ;;  %2761 = vmatprep.mubr.bf16.mxu1 %v3112_v7  ;;  %v2643_v53 = vpop.permute.xlu0 %2642 }
 0x123   :  { %3080 = vmatprep.subr.msk.bf16.mxu1 %vm100_vm1, %v2652_v50  ;;  %v2654_v56 = vsel %vm2644_vm9, %v2641_v51, %v2643_v53 }
 0x125   :  { %3075 = vmatmul.mubr.msk.bf16.vlgmr.msra.gmra.mxu0 %vm96_vm2, %v3073_v52 }
 0x126   :  { %2785 = vmatpush1.bf16.msra.mxu0 %v2671_v54  ;;  %2802 = vmatprep.mubr.bf16.mxu0 %v3112_v7 }
 0x127   :  { %3082 = vmatprep.subr.msk.bf16.mxu0 %vm100_vm1, %v2654_v56 }
 0x129   :  { %3077 = vmatmul.mubr.msk.bf16.vlgmr.msra.gmra.mxu1 %vm96_vm2, %v3073_v52 }
 0x12a   :  { %2826 = vmatpush1.bf16.msra.mxu1 %v2677_v57  ;;  %2843 = vmatprep.mubr.bf16.mxu1 %v3112_v7 }
 0x12d   :  { %3079 = vmatmul.mubr.msk.bf16.vlgmr.msra.gmra.mxu0 %vm96_vm2, %v3073_v52 }
 0x12e   :  { %2867 = vmatpush1.bf16.msra.mxu0 %v2683_v59  ;;  %2884 = vmatprep.mubr.bf16.mxu0 %v3112_v7 }
 0x131   :  { %3081 = vmatmul.mubr.msk.bf16.vlgmr.msra.gmra.mxu1 %vm96_vm2, %v3073_v52 }
 0x135   :  { %3083 = vmatmul.mubr.msk.bf16.vlgmr.msra.gmra.mxu0 %vm96_vm2, %v3073_v52 }
 0x145   :  { %v165_v60 = vpop.f32.mrf.mxu0 }
 0x147   :  { %v167_v61 = vpop.f32.mrf.mxu0 }
 0x149   :  { %v169_v62 = vpop.f32.mrf.mxu0  ;;  %v206_v63 = vpop.f32.mrf.mxu1 }
 0x14b   :  { %v170_v0 = vpop.f32.mrf.mxu0  ;;  %v208_v1 = vpop.f32.mrf.mxu1 }
 0x14d   :  { %v210_v2 = vpop.f32.mrf.mxu1  ;;  %v247_v3 = vpop.f32.mrf.mxu0 }
 0x14f   :  { %v211_v4 = vpop.f32.mrf.mxu1  ;;  %v249_v5 = vpop.f32.mrf.mxu0 }
 0x151   :  { %v251_v6 = vpop.f32.mrf.mxu0  ;;  %v288_v8 = vpop.f32.mrf.mxu1 }
 0x153   :  { %v252_v9 = vpop.f32.mrf.mxu0  ;;  %v290_v10 = vpop.f32.mrf.mxu1 }
 0x155   :  { %v292_v13 = vpop.f32.mrf.mxu1  ;;  %v329_v7 = vpop.f32.mrf.mxu0 }
 0x157   :  { %v293_v14 = vpop.f32.mrf.mxu1  ;;  %v331_v18 = vpop.f32.mrf.mxu0 }
 0x159   :  { %v333_v19 = vpop.f32.mrf.mxu0  ;;  %v403_v11 = vpop.f32.mrf.mxu1 }
 0x15a   :  { %v404_v15 = vadd.f32 %v403_v11, %v165_v60 }
 0x15b   :  { %v334_v23 = vpop.f32.mrf.mxu0  ;;  %v405_v24 = vpop.f32.mrf.mxu1 }
 0x15c   :  { %v406_v12 = vadd.f32 %v405_v24, %v167_v61 }
 0x15d   :  { %v407_v16 = vpop.f32.mrf.mxu1  ;;  %v444_v25 = vpop.f32.mrf.mxu0 }
 0x15e   :  { %v445_v26 = vadd.f32 %v444_v25, %v206_v63 }
 0x15f   :  { %v408_v27 = vpop.f32.mrf.mxu1  ;;  %v446_v17 = vpop.f32.mrf.mxu0 }
 0x160   :  { %v447_v20 = vadd.f32 %v446_v17, %v208_v1 }
 0x161   :  { %v448_v28 = vpop.f32.mrf.mxu0  ;;  %v485_v29 = vpop.f32.mrf.mxu1 }
 0x162   :  { %v486_v21 = vadd.f32 %v485_v29, %v247_v3 }
 0x163   :  { %v449_v31 = vpop.f32.mrf.mxu0  ;;  %v487_v22 = vpop.f32.mrf.mxu1 }
 0x164   :  { %v488_v33 = vadd.f32 %v487_v22, %v249_v5 }
 0x165   :  { %v489_v34 = vpop.f32.mrf.mxu1  ;;  %v526_v35 = vpop.f32.mrf.mxu0 }
 0x166   :  { %v527_v36 = vadd.f32 %v526_v35, %v288_v8 }
 0x167   :  { %v490_v30 = vpop.f32.mrf.mxu1  ;;  %v528_v37 = vpop.f32.mrf.mxu0 }
 0x168   :  { %v529_v38 = vadd.f32 %v528_v37, %v290_v10 }
 0x169   :  { %v530_v39 = vpop.f32.mrf.mxu0  ;;  %v567_v40 = vpop.f32.mrf.mxu1 }
 0x16a   :  { %v568_v41 = vadd.f32 %v567_v40, %v329_v7 }
 0x16b   :  { %v531_v32 = vpop.f32.mrf.mxu0  ;;  %v569_v42 = vpop.f32.mrf.mxu1 }
 0x16c   :  { %v570_v43 = vadd.f32 %v569_v42, %v331_v18 }
 0x16d   :  { %v571_v44 = vpop.f32.mrf.mxu1  ;;  %v721_v45 = vpop.f32.mrf.mxu0 }
 0x16e   :  { %v892_v46 = vadd.f32 %v721_v45, %v404_v15 }
 0x16f   :  { %v572_v47 = vpop.f32.mrf.mxu1  ;;  %v723_v48 = vpop.f32.mrf.mxu0 }
 0x170   :  { %v893_v49 = vadd.f32 %v723_v48, %v406_v12 }
 0x171   :  { %v725_v50 = vpop.f32.mrf.mxu0  ;;  %v762_v51 = vpop.f32.mrf.mxu1 }
 0x172   :  { %v894_v52 = vadd.f32 %v762_v51, %v445_v26 }
 0x173   :  { %v726_v53 = vpop.f32.mrf.mxu0  ;;  %v764_v54 = vpop.f32.mrf.mxu1 }
 0x174   :  { %v895_v55 = vadd.f32 %v764_v54, %v447_v20 }
 0x175   :  { %v766_v56 = vpop.f32.mrf.mxu1  ;;  %v803_v57 = vpop.f32.mrf.mxu0 }
 0x176   :  { %v896_v58 = vadd.f32 %v803_v57, %v486_v21 }
 0x177   :  { %v767_v59 = vpop.f32.mrf.mxu1  ;;  %v805_v60 = vpop.f32.mrf.mxu0 }
 0x178   :  { %v897_v61 = vadd.f32 %v805_v60, %v488_v33 }
 0x179   :  { %v807_v62 = vpop.f32.mrf.mxu0  ;;  %v844_v63 = vpop.f32.mrf.mxu1 }
 0x17a   :  { %v898_v0 = vadd.f32 %v844_v63, %v527_v36 }
 0x17b   :  { %v808_v1 = vpop.f32.mrf.mxu0  ;;  %v846_v2 = vpop.f32.mrf.mxu1 }
 0x17c   :  { %v899_v3 = vadd.f32 %v846_v2, %v529_v38 }
 0x17d   :  { %v848_v4 = vpop.f32.mrf.mxu1  ;;  %v885_v5 = vpop.f32.mrf.mxu0 }
 0x17e   :  { %v900_v6 = vadd.f32 %v885_v5, %v568_v41 }
 0x17f   :  { %v849_v8 = vpop.f32.mrf.mxu1  ;;  %v887_v9 = vpop.f32.mrf.mxu0 }
 0x180   :  { %v901_v10 = vadd.f32 %v887_v9, %v570_v43 }
 0x181   :  { %v889_v13 = vpop.f32.mrf.mxu0  ;;  %v1049_v7 = vpop.f32.mrf.mxu1 }
 0x182   :  { %v1220_v14 = vadd.f32 %v1049_v7, %v892_v46 }
 0x183   :  { %v890_v18 = vpop.f32.mrf.mxu0  ;;  %v1051_v19 = vpop.f32.mrf.mxu1 }
 0x184   :  { %v1221_v11 = vadd.f32 %v1051_v19, %v893_v49 }
 0x185   :  { %v1053_v15 = vpop.f32.mrf.mxu1  ;;  %v1090_v23 = vpop.f32.mrf.mxu0 }
 0x186   :  { %v1222_v24 = vadd.f32 %v1090_v23, %v894_v52 }
 0x187   :  { %v1054_v12 = vpop.f32.mrf.mxu1  ;;  %v1092_v16 = vpop.f32.mrf.mxu0 }
 0x188   :  { %v1223_v25 = vadd.f32 %v1092_v16, %v895_v55 }
 0x189   :  { %v1094_v26 = vpop.f32.mrf.mxu0  ;;  %v1131_v27 = vpop.f32.mrf.mxu1 }
 0x18a   :  { %v1224_v17 = vadd.f32 %v1131_v27, %v896_v58 }
 0x18b   :  { %v1095_v20 = vpop.f32.mrf.mxu0  ;;  %v1133_v28 = vpop.f32.mrf.mxu1 }
 0x18c   :  { %v1225_v29 = vadd.f32 %v1133_v28, %v897_v61 }
 0x18d   :  { %v1135_v21 = vpop.f32.mrf.mxu1  ;;  %v1172_v31 = vpop.f32.mrf.mxu0 }
 0x18e   :  { %v1226_v22 = vadd.f32 %v1172_v31, %v898_v0 }
 0x18f   :  { %v1136_v33 = vpop.f32.mrf.mxu1  ;;  %v1174_v34 = vpop.f32.mrf.mxu0 }
 0x190   :  { %v1227_v35 = vadd.f32 %v1174_v34, %v899_v3 }
 0x191   :  { %v1176_v36 = vpop.f32.mrf.mxu0  ;;  %v1213_v30 = vpop.f32.mrf.mxu1 }
 0x192   :  { %v1228_v37 = vadd.f32 %v1213_v30, %v900_v6 }
 0x193   :  { %v1177_v38 = vpop.f32.mrf.mxu0  ;;  %v1215_v39 = vpop.f32.mrf.mxu1 }
 0x194   :  { %v1229_v40 = vadd.f32 %v1215_v39, %v901_v10 }
 0x195   :  { %v1217_v41 = vpop.f32.mrf.mxu1  ;;  %v1377_v32 = vpop.f32.mrf.mxu0 }
 0x196   :  { %v3606_v42 = vadd.f32 %v1377_v32, %v1220_v14 }
 0x197   :  { %v1218_v43 = vpop.f32.mrf.mxu1  ;;  %v1379_v44 = vpop.f32.mrf.mxu0 }
 0x198   :  { %v3608_v45 = vadd.f32 %v1379_v44, %v1221_v11 }
 0x199   :  { %v1381_v46 = vpop.f32.mrf.mxu0  ;;  %v1418_v47 = vpop.f32.mrf.mxu1 }
 0x19a   :  { %v3610_v48 = vadd.f32 %v1418_v47, %v1222_v24 }
 0x19b   :  { %v1382_v49 = vpop.f32.mrf.mxu0  ;;  %v1420_v50 = vpop.f32.mrf.mxu1 }
 0x19c   :  { %v3612_v51 = vadd.f32 %v1420_v50, %v1223_v25 }
 0x19d   :  { %v1422_v52 = vpop.f32.mrf.mxu1  ;;  %v1459_v53 = vpop.f32.mrf.mxu0 }
 0x19e   :  { %v3614_v54 = vadd.f32 %v1459_v53, %v1224_v17 }
 0x19f   :  { %v1423_v55 = vpop.f32.mrf.mxu1  ;;  %v1461_v56 = vpop.f32.mrf.mxu0 }
 0x1a0   :  { %v3616_v57 = vadd.f32 %v1461_v56, %v1225_v29 }
 0x1a1   :  { %v1463_v58 = vpop.f32.mrf.mxu0  ;;  %v1500_v59 = vpop.f32.mrf.mxu1 }
 0x1a2   :  { %v3618_v60 = vadd.f32 %v1500_v59, %v1226_v22 }
 0x1a3   :  { %v1464_v61 = vpop.f32.mrf.mxu0  ;;  %v1502_v62 = vpop.f32.mrf.mxu1 }
 0x1a4   :  { %v3620_v63 = vadd.f32 %v1502_v62, %v1227_v35 }
 0x1a5   :  { %v1504_v0 = vpop.f32.mrf.mxu1  ;;  %v1541_v1 = vpop.f32.mrf.mxu0 }
 0x1a6   :  { %v3622_v2 = vadd.f32 %v1541_v1, %v1228_v37 }
 0x1a7   :  { %v1505_v3 = vpop.f32.mrf.mxu1  ;;  %v1543_v4 = vpop.f32.mrf.mxu0 }
 0x1a8   :  { %v3624_v5 = vadd.f32 %v1543_v4, %v1229_v40 }
 0x1a9   :  { %v1545_v6 = vpop.f32.mrf.mxu0  ;;  %v1705_v8 = vpop.f32.mrf.mxu1 }
 0x1ab   :  { %v1546_v9 = vpop.f32.mrf.mxu0  ;;  %v1707_v10 = vpop.f32.mrf.mxu1 }
 0x1ad   :  { %v1709_v13 = vpop.f32.mrf.mxu1  ;;  %v1746_v7 = vpop.f32.mrf.mxu0 }
 0x1ae   :  { %v1876_v13 = vadd.f32 %v1705_v8, %v3606_v42 }
 0x1af   :  { %v1710_v14 = vpop.f32.mrf.mxu1  ;;  %v1748_v18 = vpop.f32.mrf.mxu0 }
 0x1b1   :  { %v1750_v19 = vpop.f32.mrf.mxu0  ;;  %v3626_v11 = vpop.f32.mrf.mxu1 }
 0x1b3   :  { %v1751_v15 = vpop.f32.mrf.mxu0  ;;  %v3628_v23 = vpop.f32.mrf.mxu1 }
 0x1b4   :  { %v1877_v15 = vadd.f32 %v1707_v10, %v3608_v45  ;;  %v1880_v45 = vadd.f32 %v3626_v11, %v3614_v54 }
 0x1b5   :  { %v1791_v24 = vpop.f32.mrf.mxu1  ;;  %v3630_v12 = vpop.f32.mrf.mxu0 }
 0x1b6   :  { %v1882_v54 = vadd.f32 %v3630_v12, %v3618_v60 }
 0x1b7   :  { %v1792_v16 = vpop.f32.mrf.mxu1  ;;  %v3632_v25 = vpop.f32.mrf.mxu0 }
 0x1b9   :  { %v1832_v26 = vpop.f32.mrf.mxu0  ;;  %v3634_v27 = vpop.f32.mrf.mxu1 }
 0x1bb   :  { %v1833_v17 = vpop.f32.mrf.mxu0  ;;  %v3636_v20 = vpop.f32.mrf.mxu1 }
 0x1bc   :  { %v1878_v17 = vadd.f32 %v1746_v7, %v3610_v48  ;;  %v1881_v7 = vadd.f32 %v3628_v23, %v3616_v57  ;;  %v1883_v57 = vadd.f32 %v3632_v25, %v3620_v63 }
 0x1bd   :  { %v1873_v28 = vpop.f32.mrf.mxu1  ;;  %v2044_v29 = vpop.f32.mrf.mxu0 }
 0x1be   :  { %v2215_v24 = vadd.f32 %v2044_v29, %v1876_v13 }
 0x1bf   :  { %v1874_v21 = vpop.f32.mrf.mxu1  ;;  %v2046_v31 = vpop.f32.mrf.mxu0 }
 0x1c0   :  { %v2216_v28 = vadd.f32 %v2046_v31, %v1877_v15 }
 0x1c1   :  { %v2048_v22 = vpop.f32.mrf.mxu0  ;;  %v2085_v33 = vpop.f32.mrf.mxu1 }
 0x1c2   :  { %v3655_v22 = vpop.permute.xlu1 %2906  ;;  %v2217_v42 = vadd.f32 %v2085_v33, %v1878_v17 }
 0x1c3   :  { %v2049_v34 = vpop.f32.mrf.mxu0  ;;  %v2087_v35 = vpop.f32.mrf.mxu1 }
 0x1c5   :  { %v2089_v36 = vpop.f32.mrf.mxu1  ;;  %v2126_v30 = vpop.f32.mrf.mxu0 }
 0x1c6   :  { %v2219_v31 = vadd.f32 %v2126_v30, %v1880_v45 }
 0x1c7   :  { %v2090_v37 = vpop.f32.mrf.mxu1  ;;  %v2128_v38 = vpop.f32.mrf.mxu0 }
 0x1c8   :  { %v1879_v37 = vadd.f32 %v1748_v18, %v3612_v51  ;;  %v2220_v11 = vadd.f32 %v2128_v38, %v1881_v7  ;;  %v1884_v38 = vadd.f32 %v3634_v27, %v3622_v2 }
 0x1c9   :  { %v2130_v39 = vpop.f32.mrf.mxu0  ;;  %v3638_v40 = vpop.f32.mrf.mxu1 }
 0x1ca   :  { %v2221_v23 = vadd.f32 %v3638_v40, %v1882_v54  ;;  %v1885_v40 = vadd.f32 %v3636_v20, %v3624_v5 }
 0x1cb   :  { %v2131_v41 = vpop.f32.mrf.mxu0  ;;  %v3640_v32 = vpop.f32.mrf.mxu1 }
 0x1cc   :  { %v2218_v41 = vadd.f32 %v2087_v35, %v1879_v37 }
 0x1cd   :  { %v2171_v43 = vpop.f32.mrf.mxu1  ;;  %v3642_v44 = vpop.f32.mrf.mxu0 }
 0x1cf   :  { %v2172_v46 = vpop.f32.mrf.mxu1  ;;  %v3644_v47 = vpop.f32.mrf.mxu0 }
 0x1d1   :  { %v2212_v49 = vpop.f32.mrf.mxu0  ;;  %v2383_v50 = vpop.f32.mrf.mxu1 }
 0x1d2   :  { %v2554_v21 = vadd.f32 %v2383_v50, %v2215_v24 }
 0x1d3   :  { %v2213_v52 = vpop.f32.mrf.mxu0  ;;  %v2385_v53 = vpop.f32.mrf.mxu1 }
 0x1d4   :  { %v2555_v8 = vadd.f32 %v2385_v53, %v2216_v28  ;;  %v2224_v28 = vadd.f32 %v3644_v47, %v1885_v40 }
 0x1d5   :  { %v2387_v55 = vpop.f32.mrf.mxu1  ;;  %v2424_v56 = vpop.f32.mrf.mxu0 }
 0x1d6   :  { %v2556_v43 = vadd.f32 %v2424_v56, %v2217_v42 }
 0x1d7   :  { %v2388_v58 = vpop.f32.mrf.mxu1  ;;  %v2426_v59 = vpop.f32.mrf.mxu0 }
 0x1d8   :  { %v2557_v51 = vadd.f32 %v2426_v59, %v2218_v41 }
 0x1d9   :  { %v2428_v61 = vpop.f32.mrf.mxu0  ;;  %v2465_v62 = vpop.f32.mrf.mxu1 }
 0x1da   :  { %v2558_v52 = vadd.f32 %v2465_v62, %v2219_v31  ;;  %v2222_v62 = vadd.f32 %v3640_v32, %v1883_v57 }
 0x1db   :  { %v2429_v0 = vpop.f32.mrf.mxu0  ;;  %v2467_v1 = vpop.f32.mrf.mxu1 }
 0x1dc   :  { %v2559_v0 = vadd.f32 %v2467_v1, %v2220_v11  ;;  %v2223_v1 = vadd.f32 %v3642_v44, %v1884_v38 }
 0x1dd   :  { %v2469_v3 = vpop.f32.mrf.mxu1  ;;  %v2506_v4 = vpop.f32.mrf.mxu0 }
 0x1df   :  { %v2470_v6 = vpop.f32.mrf.mxu1  ;;  %v3646_v9 = vpop.f32.mrf.mxu0 }
 0x1e0   :  { %v2560_v6 = vadd.f32 %v2506_v4, %v2221_v23  ;;  %v2561_v32 = vadd.f32 %v3646_v9, %v2222_v62 }
 0x1e1   :  { %v2510_v14 = vpop.f32.mrf.mxu0  ;;  %v3649_v19 = vpop.f32.mrf.mxu1 }
 0x1e3   :  { %v2511_v16 = vpop.f32.mrf.mxu0  ;;  %v3652_v26 = vpop.f32.mrf.mxu1 }
 0x1e5   :  { %v2551_v34 = vpop.f32.mrf.mxu1  ;;  %v2722_v36 = vpop.f32.mrf.mxu0 }
 0x1e6   :  { %v2893_v39 = vadd.f32 %v2722_v36, %v2554_v21  ;;  %v2562_v21 = vadd.f32 %v3649_v19, %v2223_v1 }
 0x1e7   :  { %v2552_v10 = vpop.f32.mrf.mxu1  ;;  %v2724_v29 = vpop.f32.mrf.mxu0 }
 0x1e8   :  { %v2894_v46 = vadd.f32 %v2724_v29, %v2555_v8  ;;  %v2909_v48 = vadd.f32 %v3655_v22, %v2893_v39  ;;  %v2563_v8 = vadd.f32 %v3652_v26, %v2224_v28 }
 0x1e9   :  { %v2726_v49 = vpop.f32.mrf.mxu0  ;;  %v2763_v50 = vpop.f32.mrf.mxu1 }
 0x1ea   :  { %v2895_v18 = vadd.f32 %v2763_v50, %v2556_v43  ;;  %v2910_v33 = vadd.f32 %v3655_v22, %v2894_v46  ;;  %v2919_v58 = vmax.f32 %v2909_v48, 0.0 }
 0x1eb   :  { %v2727_v35 = vpop.f32.mrf.mxu0  ;;  %v2765_v53 = vpop.f32.mrf.mxu1 }
 0x1ec   :  { %v2911_v55 = vadd.f32 %v3655_v22, %v2895_v18  ;;  %v2896_v56 = vadd.f32 %v2765_v53, %v2557_v51  ;;  %v2920_v61 = vmax.f32 %v2910_v33, 0.0 }
 0x1ed   :  { %v2767_v30 = vpop.f32.mrf.mxu1  ;;  %v2804_v59 = vpop.f32.mrf.mxu0 }
 0x1ee   :  { %v2912_v3 = vadd.f32 %v3655_v22, %v2896_v56  ;;  %v3089_v60 = vpack.c.bf16 %v2920_v61, %v2919_v58  ;;  %v2897_v12 = vadd.f32 %v2804_v59, %v2558_v52  ;;  %v2921_v15 = vmax.f32 %v2911_v55, 0.0 }
 0x1ef   :  { %v2768_v13 = vpop.f32.mrf.mxu1  ;;  %v2806_v14 = vpop.f32.mrf.mxu0 }
 0x1f0   :  { %v2922_v24 = vmax.f32 %v2912_v3, 0.0  ;;  %2969 = vst [vmem:[%s3705_s3] sm:$0xff] %v3089_v60  ;;  %v2913_v63 = vadd.f32 %v3655_v22, %v2897_v12  ;;  %v2898_v25 = vadd.f32 %v2806_v14, %v2559_v0 }
 0x1f1   :  { %v2808_v2 = vpop.f32.mrf.mxu0  ;;  %v2845_v27 = vpop.f32.mrf.mxu1 }
 0x1f2   :  { %v3090_v4 = vpack.c.bf16 %v2922_v24, %v2921_v15  ;;  %v2914_v16 = vadd.f32 %v3655_v22, %v2898_v25  ;;  %v2899_v17 = vadd.f32 %v2845_v27, %v2560_v6  ;;  %v2923_v5 = vmax.f32 %v2913_v63, 0.0 }
 0x1f3   :  { %v2809_v34 = vpop.f32.mrf.mxu0  ;;  %v2847_v36 = vpop.f32.mrf.mxu1 }
 0x1f4   :  { %2970 = vst [vmem:[%s3705_s3 + $0x8] sm:$0xff] %v3090_v4  ;;  %v2924_v20 = vmax.f32 %v2914_v16, 0.0  ;;  %v2915_v44 = vadd.f32 %v3655_v22, %v2899_v17  ;;  %v2900_v37 = vadd.f32 %v2847_v36, %v2561_v32 }
 0x1f5   :  { %v2886_v9 = vpop.f32.mrf.mxu0  ;;  %v2849_v42 = vpop.f32.mrf.mxu1 }
 0x1f6   :  { %v3091_v39 = vpack.c.bf16 %v2924_v20, %v2923_v5  ;;  %v2916_v47 = vadd.f32 %v3655_v22, %v2900_v37  ;;  %v2901_v45 = vadd.f32 %v2886_v9, %v2562_v21  ;;  %v2925_v29 = vmax.f32 %v2915_v44, 0.0 }
 0x1f7   :  { %v2888_v19 = vpop.f32.mrf.mxu0  ;;  %v2850_v10 = vpop.f32.mrf.mxu1 }
 0x1f8   :  { %2971 = vst [vmem:[%s3705_s3 + $0x10] sm:$0xff] %v3091_v39  ;;  %v2926_v41 = vmax.f32 %v2916_v47, 0.0  ;;  %v2917_v43 = vadd.f32 %v3655_v22, %v2901_v45  ;;  %v2902_v46 = vadd.f32 %v2888_v19, %v2563_v8 }
 0x1f9   :  { %v2890_v48 = vpop.f32.mrf.mxu0 }
 0x1fa   :  { %v3092_v7 = vpack.c.bf16 %v2926_v41, %v2925_v29  ;;  %v2918_v31 = vadd.f32 %v3655_v22, %v2902_v46  ;;  %v2927_v49 = vmax.f32 %v2917_v43, 0.0 }
 0x1fb   :  { %v2891_v26 = vpop.f32.mrf.mxu0 }
 0x1fc   :  { %2972 = vst [vmem:[%s3705_s3 + $0x18] sm:$0xff] %v3092_v7  ;;  %v2928_v50 = vmax.f32 %v2918_v31, 0.0 }
 0x1fe   :  { %v3093_v51 = vpack.c.bf16 %v2928_v50, %v2927_v49 }
 0x200   :  { %2976 = vst.msk [vmem:[%s3705_s3 + $0x20] sm:$0xff] %vm2975_vm12, %v3093_v51 }

// kernel: _lambda_.7
= control target key start
LH: loop header
LB: loop body
LE: loop exit
PB: predicated region body
PF: predicated region fallthrough
CT: control target
= control target key end

     0   :  { %v1325_v2 = vmov 0.0   ;;  %vm1326_vm0 = vmmov 0   ;;  %s1327_s16 = smov 127   ;;  %v1328_v5 = vmov 0   ;;  %s1329_s17 = smov 126   ;;  %vm48_vm1 = vcmask 1043456   ;;  %s1542_s0 = inlined_call_operand.vmem [shape: bf16[8,400], index: 0, kind: input, shape index: {}]   ;;  %s1543_s1 = inlined_call_operand.vmem [shape: bf16[9,16,8], index: 1, kind: input, shape index: {}]   ;;  %s1544_s2 = inlined_call_operand.vmem [shape: f32[16,1], index: 2, kind: input, shape index: {}]   ;;  %s1545_s3 = inlined_call_operand.vmem [shape: bf16[16,378], index: 3, kind: output, shape index: {}]  }
   0x1   :  { %v1359_v0 = vld [vmem:[%s1542_s0 + $0x8] ss:$0 sps:$4 sm:$0xff]   ;;  %v365_v1 = vld [vmem:[%s1542_s0] sm:$0xff]  ;;  %1244 = vmatprep.subr.bf16.mxu1 %v1325_v2  ;;  %1246 = vmatprep.mubr.msk.bf16.mxu1 %vm1326_vm0, %v1325_v2  ;;  %s1330_s20 = smov 118   ;;  %s1331_s21 = smov 117   ;;  %vm44_vm2 = vcmask 64512  }
   0x2   :  { %v1367_v3 = vcombine.low %v365_v1, %v365_v1  ;;  %39 = vrot.lane.b32.xlu1 %v1359_v0, %s1327_s16  ;;  %v1370_v4 = vcombine.high %v365_v1, %v365_v1  ;;  %90 = vmatprep.mubr.bf16.mxu0 %v1328_v5  ;;  %v366_v6 = vld [vmem:[%s1542_s0 + $0x8] sm:$0xff]  ;;  %s1332_s22 = smov 116   ;;  %s1333_s0 = smov 108   ;;  %v1106_v9 = vld [vmem:[%s1544_s2] sm:$0xff]  ;;  %vm41_vm3 = vcmask 1039360   ;;  %v157_v15 = vsel %vm48_vm1, %v1359_v0, 0 }
   0x3   :  { %1309 = vset.pattern.permute.xlu0 %v1328_v5  ;;  %1310 = vset.pattern.permute.xlu1 %v1328_v5  ;;  %v1184_v7 = vcombine.high %v366_v6, %v366_v6  ;;  %v1183_v8 = vcombine.low %v366_v6, %v366_v6  ;;  %s1334_s23 = smov 107   ;;  %s1335_s24 = smov 106   ;;  %v1107_v10 = vld [vmem:[%s1544_s2 + $0x8] sm:$0xff]  ;;  %vm257_vm4 = vcmask 1031168   ;;  %v1317_v24 = vld [vmem:[%s1543_s1] sm:$0xff]   ;;  %vm390_vm5 = vcmask 965632  }
   0x4   :  { %35 = vrot.lane.b32.xlu0 %v1367_v3, %s1327_s16  ;;  %v1316_v14 = vld [vmem:[%s1543_s1 + $0x8] sm:$0xff]   ;;  %v151_v22 = vsel %vm48_vm1, %v1367_v3, 0  ;;  %v1318_v32 = vld [vmem:[%s1543_s1 + $0x10] sm:$0xff]   ;;  %vm512_vm6 = vcmask 957440   ;;  %v1319_v42 = vld [vmem:[%s1543_s1 + $0x18] sm:$0xff]   ;;  %vm634_vm7 = vcmask 949248  }
   0x5   :  { %v1320_v52 = vld [vmem:[%s1543_s1 + $0x20] sm:$0xff]   ;;  %vm756_vm8 = vcmask 883712   ;;  %v1321_v62 = vld [vmem:[%s1543_s1 + $0x28] sm:$0xff]   ;;  %vm878_vm9 = vcmask 875520   ;;  %vm1000_vm10 = vcmask 867328   ;;  %vm1151_vm11 = vcmask 994304  }
   0x6   :  { %251 = vrot.lane.b32.xlu1 %v1367_v3, %s1329_s17 }
   0x8   :  { %37 = vrot.lane.b32.xlu0 %v1370_v4, %s1327_s16 }
   0xa   :  { %255 = vrot.lane.b32.xlu1 %v1359_v0, %s1329_s17 }
   0xc   :  { %253 = vrot.lane.b32.xlu0 %v1370_v4, %s1329_s17 }
   0xe   :  { %384 = vrot.lane.b32.xlu1 %v1370_v4, %s1330_s20 }
  0x10   :  { %382 = vrot.lane.b32.xlu0 %v1367_v3, %s1330_s20 }
  0x12   :  { %388 = vrot.lane.b32.xlu1 %v1184_v7, %s1330_s20 }
  0x14   :  { %386 = vrot.lane.b32.xlu0 %v1183_v8, %s1330_s20 }
  0x16   :  { %506 = vrot.lane.b32.xlu1 %v1370_v4, %s1331_s21 }
  0x18   :  { %504 = vrot.lane.b32.xlu0 %v1367_v3, %s1331_s21 }
  0x1a   :  { %510 = vrot.lane.b32.xlu1 %v1184_v7, %s1331_s21 }
  0x1c   :  { %508 = vrot.lane.b32.xlu0 %v1183_v8, %s1331_s21 }
  0x1e   :  { %628 = vrot.lane.b32.xlu1 %v1370_v4, %s1332_s22 }
  0x20   :  { %626 = vrot.lane.b32.xlu0 %v1367_v3, %s1332_s22 }
  0x22   :  { %632 = vrot.lane.b32.xlu1 %v1184_v7, %s1332_s22 }
  0x24   :  { %630 = vrot.lane.b32.xlu0 %v1183_v8, %s1332_s22 }
  0x26   :  { %750 = vrot.lane.b32.xlu1 %v1370_v4, %s1333_s0 }
  0x28   :  { %748 = vrot.lane.b32.xlu0 %v1367_v3, %s1333_s0 }
  0x2a   :  { %754 = vrot.lane.b32.xlu1 %v1184_v7, %s1333_s0 }
  0x2c   :  { %752 = vrot.lane.b32.xlu0 %v1183_v8, %s1333_s0 }
  0x2e   :  { %872 = vrot.lane.b32.xlu1 %v1370_v4, %s1334_s23 }
  0x30   :  { %870 = vrot.lane.b32.xlu0 %v1367_v3, %s1334_s23 }
  0x32   :  { %876 = vrot.lane.b32.xlu1 %v1184_v7, %s1334_s23 }
  0x34   :  { %874 = vrot.lane.b32.xlu0 %v1183_v8, %s1334_s23 }
  0x36   :  { %994 = vrot.lane.b32.xlu1 %v1370_v4, %s1335_s24 }
  0x38   :  { %992 = vrot.lane.b32.xlu0 %v1367_v3, %s1335_s24 }
  0x3a   :  { %998 = vrot.lane.b32.xlu1 %v1184_v7, %s1335_s24 }
  0x3c   :  { %996 = vrot.lane.b32.xlu0 %v1183_v8, %s1335_s24 }
  0x3e   :  { %1115 = vperm.xlu1 %1310, %v1107_v10   ;;  %v1322_v10 = vld [vmem:[%s1543_s1 + $0x30] sm:$0xff]  }
  0x40   :  { %1110 = vperm.xlu0 %1309, %v1106_v9  }
  0x74   :  { %v40_v11 = vpop.permute.xlu1 %39 }
  0x75   :  { %v56_v13 = vsel %vm48_vm1, %v40_v11, 0 }
  0x76   :  { %v36_v12 = vpop.permute.xlu0 %35  ;;  %1245 = vmatpush3.bf16.msra.mxu1 %v56_v13 }
  0x77   :  { %1250 = vmatprep.subr.bf16.mxu1 %v1325_v2 }
  0x78   :  { %v252_v16 = vpop.permute.xlu1 %251 }
  0x79   :  { %1247 = vmatmul.mubr.msk.bf16.vlgmr.msra.gmra.mxu1 %vm44_vm2, %v1316_v14 }
  0x7a   :  { %v38_v17 = vpop.permute.xlu0 %37  ;;  %1251 = vmatpush3.bf16.msra.mxu1 %v157_v15  ;;  %1252 = vmatprep.mubr.msk.bf16.mxu1 %vm1326_vm0, %v1325_v2 }
  0x7b   :  { %v43_v18 = vsel %vm41_vm3, %v38_v17, %v40_v11  ;;  %v42_v19 = vsel %vm41_vm3, %v36_v12, %v38_v17  ;;  %1256 = vmatprep.subr.bf16.mxu1 %v1325_v2 }
  0x7c   :  { %1165 = vmatprep.subr.msk.bf16.mxu0 %vm48_vm1, %v43_v18  ;;  %v50_v20 = vsel %vm48_vm1, %v42_v19, 0  ;;  %v256_v21 = vpop.permute.xlu1 %255 }
  0x7d   :  { %73 = vmatpush1.bf16.msra.mxu0 %v50_v20  ;;  %v270_v26 = vsel %vm48_vm1, %v256_v21, 0  ;;  %v1323_v20 = vld [vmem:[%s1543_s1 + $0x38] sm:$0xff]  }
  0x7e   :  { %1169 = vmatprep.subr.msk.bf16.mxu0 %vm48_vm1, %v1370_v4  ;;  %v254_v23 = vpop.permute.xlu0 %253 }
  0x7f   :  { %v259_v25 = vsel %vm257_vm4, %v254_v23, %v256_v21  ;;  %v258_v29 = vsel %vm257_vm4, %v252_v16, %v254_v23 }
  0x80   :  { %1166 = vmatmul.mubr.msk.bf16.vlgmr.msra.gmra.mxu0 %vm44_vm2, %v1316_v14  ;;  %v385_v27 = vpop.permute.xlu1 %384  ;;  %v264_v31 = vsel %vm48_vm1, %v258_v29, 0 }
  0x81   :  { %174 = vmatpush1.bf16.msra.mxu0 %v151_v22  ;;  %191 = vmatprep.mubr.bf16.mxu0 %v1328_v5 }
  0x82   :  { %1253 = vmatmul.mubr.msk.bf16.vlgmr.msra.gmra.mxu1 %vm44_vm2, %v1317_v24  ;;  %1175 = vmatprep.subr.msk.bf16.mxu0 %vm48_vm1, %v259_v25  ;;  %v383_v28 = vpop.permute.xlu0 %382 }
  0x83   :  { %1257 = vmatpush3.bf16.msra.mxu1 %v270_v26  ;;  %1258 = vmatprep.mubr.msk.bf16.mxu1 %vm1326_vm0, %v1325_v2  ;;  %v391_v39 = vsel %vm390_vm5, %v383_v28, %v385_v27 }
  0x84   :  { %1262 = vmatprep.subr.bf16.mxu1 %v1325_v2  ;;  %v389_v30 = vpop.permute.xlu1 %388  ;;  %v398_v41 = vsel %vm48_vm1, %v391_v39, 0 }
  0x86   :  { %v387_v33 = vpop.permute.xlu0 %386 }
  0x87   :  { %v392_v34 = vsel %vm390_vm5, %v385_v27, %v387_v33  ;;  %v393_v35 = vsel %vm390_vm5, %v387_v33, %v389_v30  ;;  %v1324_v27 = vld [vmem:[%s1543_s1 + $0x40] sm:$0xff]  }
  0x88   :  { %1170 = vmatmul.mubr.msk.bf16.vlgmr.msra.gmra.mxu0 %vm44_vm2, %v1317_v24  ;;  %v404_v36 = vsel %vm48_vm1, %v393_v35, 0  ;;  %v507_v37 = vpop.permute.xlu1 %506 }
  0x89   :  { %287 = vmatpush1.bf16.msra.mxu0 %v264_v31  ;;  %304 = vmatprep.mubr.bf16.mxu0 %v1328_v5 }
  0x8a   :  { %1259 = vmatmul.mubr.msk.bf16.vlgmr.msra.gmra.mxu1 %vm44_vm2, %v1318_v32  ;;  %1185 = vmatprep.subr.msk.bf16.mxu0 %vm48_vm1, %v392_v34  ;;  %v505_v38 = vpop.permute.xlu0 %504 }
  0x8b   :  { %1263 = vmatpush3.bf16.msra.mxu1 %v404_v36  ;;  %1264 = vmatprep.mubr.msk.bf16.mxu1 %vm1326_vm0, %v1325_v2  ;;  %v513_v49 = vsel %vm512_vm6, %v505_v38, %v507_v37 }
  0x8c   :  { %1268 = vmatprep.subr.bf16.mxu1 %v1325_v2  ;;  %v511_v40 = vpop.permute.xlu1 %510  ;;  %v520_v51 = vsel %vm48_vm1, %v513_v49, 0 }
  0x8e   :  { %v509_v43 = vpop.permute.xlu0 %508 }
  0x8f   :  { %v514_v44 = vsel %vm512_vm6, %v507_v37, %v509_v43  ;;  %v515_v45 = vsel %vm512_vm6, %v509_v43, %v511_v40 }
  0x90   :  { %1176 = vmatmul.mubr.msk.bf16.vlgmr.msra.gmra.mxu0 %vm44_vm2, %v1318_v32  ;;  %v526_v46 = vsel %vm48_vm1, %v515_v45, 0  ;;  %v629_v47 = vpop.permute.xlu1 %628 }
  0x91   :  { %421 = vmatpush1.bf16.msra.mxu0 %v398_v41  ;;  %438 = vmatprep.mubr.bf16.mxu0 %v1328_v5 }
  0x92   :  { %1265 = vmatmul.mubr.msk.bf16.vlgmr.msra.gmra.mxu1 %vm44_vm2, %v1319_v42  ;;  %1191 = vmatprep.subr.msk.bf16.mxu0 %vm48_vm1, %v514_v44  ;;  %v627_v48 = vpop.permute.xlu0 %626 }
  0x93   :  { %1269 = vmatpush3.bf16.msra.mxu1 %v526_v46  ;;  %1270 = vmatprep.mubr.msk.bf16.mxu1 %vm1326_vm0, %v1325_v2  ;;  %v635_v59 = vsel %vm634_vm7, %v627_v48, %v629_v47 }
  0x94   :  { %1274 = vmatprep.subr.bf16.mxu1 %v1325_v2  ;;  %v633_v50 = vpop.permute.xlu1 %632  ;;  %v642_v61 = vsel %vm48_vm1, %v635_v59, 0 }
  0x96   :  { %v631_v53 = vpop.permute.xlu0 %630 }
  0x97   :  { %v636_v54 = vsel %vm634_vm7, %v629_v47, %v631_v53  ;;  %v637_v55 = vsel %vm634_vm7, %v631_v53, %v633_v50 }
  0x98   :  { %1186 = vmatmul.mubr.msk.bf16.vlgmr.msra.gmra.mxu0 %vm44_vm2, %v1319_v42  ;;  %v648_v56 = vsel %vm48_vm1, %v637_v55, 0  ;;  %v751_v57 = vpop.permute.xlu1 %750 }
  0x99   :  { %543 = vmatpush1.bf16.msra.mxu0 %v520_v51  ;;  %560 = vmatprep.mubr.bf16.mxu0 %v1328_v5 }
  0x9a   :  { %1271 = vmatmul.mubr.msk.bf16.vlgmr.msra.gmra.mxu1 %vm44_vm2, %v1320_v52  ;;  %1197 = vmatprep.subr.msk.bf16.mxu0 %vm48_vm1, %v636_v54  ;;  %v749_v58 = vpop.permute.xlu0 %748 }
  0x9b   :  { %1275 = vmatpush3.bf16.msra.mxu1 %v648_v56  ;;  %1276 = vmatprep.mubr.msk.bf16.mxu1 %vm1326_vm0, %v1325_v2  ;;  %v757_v7 = vsel %vm756_vm8, %v749_v58, %v751_v57 }
  0x9c   :  { %1280 = vmatprep.subr.bf16.mxu1 %v1325_v2  ;;  %v755_v60 = vpop.permute.xlu1 %754  ;;  %v764_v9 = vsel %vm48_vm1, %v757_v7, 0 }
  0x9e   :  { %v753_v63 = vpop.permute.xlu0 %752 }
  0x9f   :  { %v758_v0 = vsel %vm756_vm8, %v751_v57, %v753_v63  ;;  %v759_v1 = vsel %vm756_vm8, %v753_v63, %v755_v60 }
  0xa0   :  { %1192 = vmatmul.mubr.msk.bf16.vlgmr.msra.gmra.mxu0 %vm44_vm2, %v1320_v52  ;;  %v770_v3 = vsel %vm48_vm1, %v759_v1, 0  ;;  %v873_v4 = vpop.permute.xlu1 %872 }
  0xa1   :  { %665 = vmatpush1.bf16.msra.mxu0 %v642_v61  ;;  %682 = vmatprep.mubr.bf16.mxu0 %v1328_v5 }
  0xa2   :  { %1277 = vmatmul.mubr.msk.bf16.vlgmr.msra.gmra.mxu1 %vm44_vm2, %v1321_v62  ;;  %1203 = vmatprep.subr.msk.bf16.mxu0 %vm48_vm1, %v758_v0  ;;  %v871_v6 = vpop.permute.xlu0 %870 }
  0xa3   :  { %1281 = vmatpush3.bf16.msra.mxu1 %v770_v3  ;;  %1282 = vmatprep.mubr.msk.bf16.mxu1 %vm1326_vm0, %v1325_v2  ;;  %v879_v17 = vsel %vm878_vm9, %v871_v6, %v873_v4 }
  0xa4   :  { %1286 = vmatprep.subr.bf16.mxu1 %v1325_v2  ;;  %v877_v8 = vpop.permute.xlu1 %876  ;;  %v886_v19 = vsel %vm48_vm1, %v879_v17, 0 }
  0xa6   :  { %v875_v11 = vpop.permute.xlu0 %874 }
  0xa7   :  { %v880_v12 = vsel %vm878_vm9, %v873_v4, %v875_v11  ;;  %v881_v13 = vsel %vm878_vm9, %v875_v11, %v877_v8 }
  0xa8   :  { %1198 = vmatmul.mubr.msk.bf16.vlgmr.msra.gmra.mxu0 %vm44_vm2, %v1321_v62  ;;  %v892_v14 = vsel %vm48_vm1, %v881_v13, 0  ;;  %v995_v15 = vpop.permute.xlu1 %994 }
  0xa9   :  { %787 = vmatpush1.bf16.msra.mxu0 %v764_v9  ;;  %804 = vmatprep.mubr.bf16.mxu0 %v1328_v5 }
  0xaa   :  { %1283 = vmatmul.mubr.msk.bf16.vlgmr.msra.gmra.mxu1 %vm44_vm2, %v1322_v10  ;;  %1209 = vmatprep.subr.msk.bf16.mxu0 %vm48_vm1, %v880_v12  ;;  %v993_v16 = vpop.permute.xlu0 %992 }
  0xab   :  { %1287 = vmatpush3.bf16.msra.mxu1 %v892_v14  ;;  %1288 = vmatprep.mubr.msk.bf16.mxu1 %vm1326_vm0, %v1325_v2  ;;  %v1001_v25 = vsel %vm1000_vm10, %v993_v16, %v995_v15 }
  0xac   :  { %1292 = vmatprep.subr.bf16.mxu1 %v1325_v2  ;;  %v999_v18 = vpop.permute.xlu1 %998  ;;  %v1008_v26 = vsel %vm48_vm1, %v1001_v25, 0 }
  0xae   :  { %v997_v21 = vpop.permute.xlu0 %996 }
  0xaf   :  { %v1002_v22 = vsel %vm1000_vm10, %v995_v15, %v997_v21  ;;  %v1003_v23 = vsel %vm1000_vm10, %v997_v21, %v999_v18 }
  0xb0   :  { %1204 = vmatmul.mubr.msk.bf16.vlgmr.msra.gmra.mxu0 %vm44_vm2, %v1322_v10  ;;  %v1014_v24 = vsel %vm48_vm1, %v1003_v23, 0 }
  0xb1   :  { %909 = vmatpush1.bf16.msra.mxu0 %v886_v19  ;;  %926 = vmatprep.mubr.bf16.mxu0 %v1328_v5 }
  0xb2   :  { %1289 = vmatmul.mubr.msk.bf16.vlgmr.msra.gmra.mxu1 %vm44_vm2, %v1323_v20  ;;  %1215 = vmatprep.subr.msk.bf16.mxu0 %vm48_vm1, %v1002_v22 }
  0xb3   :  { %1293 = vmatpush3.bf16.msra.mxu1 %v1014_v24  ;;  %1294 = vmatprep.mubr.msk.bf16.mxu1 %vm1326_vm0, %v1325_v2 }
  0xb8   :  { %1210 = vmatmul.mubr.msk.bf16.vlgmr.msra.gmra.mxu0 %vm44_vm2, %v1323_v20 }
  0xb9   :  { %1031 = vmatpush1.bf16.msra.mxu0 %v1008_v26  ;;  %1048 = vmatprep.mubr.bf16.mxu0 %v1328_v5 }
  0xba   :  { %1295 = vmatmul.mubr.msk.bf16.vlgmr.msra.gmra.mxu1 %vm44_vm2, %v1324_v27 }
  0xc0   :  { %1216 = vmatmul.mubr.msk.bf16.vlgmr.msra.gmra.mxu0 %vm44_vm2, %v1324_v27 }
 0x139   :  { %v135_v28 = vpop.f32.mrf.mxu1 }
 0x13b   :  { %v1248_v29 = vpop.f32.mrf.mxu1 }
 0x13d   :  { %v138_v30 = vpop.f32.mrf.mxu1 }
 0x13f   :  { %v1249_v2 = vpop.f32.mrf.mxu1 }
 0x140   :  { %v92_v31 = vpop.f32.mrf.mxu0 }
 0x142   :  { %v94_v32 = vpop.f32.mrf.mxu0  ;;  %v236_v33 = vpop.f32.mrf.mxu1 }
 0x143   :  { %v237_v13 = vadd.f32 %v236_v33, %v135_v28 }
 0x144   :  { %v96_v34 = vpop.f32.mrf.mxu0  ;;  %v1254_v35 = vpop.f32.mrf.mxu1 }
 0x146   :  { %v1525_v36 = vpop.f32.mrf.mxu0  ;;  %v239_v37 = vpop.f32.mrf.mxu1 }
 0x147   :  { %v240_v19 = vadd.f32 %v239_v37, %v138_v30 }
 0x148   :  { %v193_v38 = vpop.f32.mrf.mxu0  ;;  %v1255_v39 = vpop.f32.mrf.mxu1 }
 0x149   :  { %v194_v23 = vadd.f32 %v193_v38, %v92_v31 }
 0x14a   :  { %v195_v40 = vpop.f32.mrf.mxu0  ;;  %v349_v5 = vpop.f32.mrf.mxu1 }
 0x14b   :  { %v358_v16 = vadd.f32 %v349_v5, %v237_v13  ;;  %v196_v29 = vadd.f32 %v195_v40, %v94_v32  ;;  %v1111_v32 = vpop.permute.xlu0 %1110 }
 0x14c   :  { %v197_v41 = vpop.f32.mrf.mxu0  ;;  %v1260_v42 = vpop.f32.mrf.mxu1 }
 0x14d   :  { %v198_v42 = vadd.f32 %v197_v41, %v96_v34 }
 0x14e   :  { %v199_v43 = vpop.f32.mrf.mxu0  ;;  %v352_v44 = vpop.f32.mrf.mxu1 }
 0x14f   :  { %v361_v24 = vadd.f32 %v352_v44, %v240_v19  ;;  %v200_v30 = vadd.f32 %v199_v43, %v1525_v36 }
 0x150   :  { %v306_v45 = vpop.f32.mrf.mxu0  ;;  %v1261_v46 = vpop.f32.mrf.mxu1 }
 0x151   :  { %v356_v2 = vadd.f32 %v306_v45, %v194_v23 }
 0x152   :  { %v308_v47 = vpop.f32.mrf.mxu0  ;;  %v483_v48 = vpop.f32.mrf.mxu1 }
 0x153   :  { %v492_v20 = vadd.f32 %v483_v48, %v358_v16  ;;  %v357_v46 = vadd.f32 %v308_v47, %v196_v29 }
 0x154   :  { %v310_v49 = vpop.f32.mrf.mxu0  ;;  %v1266_v50 = vpop.f32.mrf.mxu1 }
 0x155   :  { %v359_v37 = vadd.f32 %v310_v49, %v198_v42 }
 0x156   :  { %v312_v51 = vpop.f32.mrf.mxu0  ;;  %v486_v52 = vpop.f32.mrf.mxu1 }
 0x157   :  { %v495_v35 = vadd.f32 %v486_v52, %v361_v24  ;;  %v360_v40 = vadd.f32 %v312_v51, %v200_v30 }
 0x158   :  { %v440_v53 = vpop.f32.mrf.mxu0  ;;  %v1267_v54 = vpop.f32.mrf.mxu1 }
 0x159   :  { %v490_v5 = vadd.f32 %v440_v53, %v356_v2 }
 0x15a   :  { %v442_v55 = vpop.f32.mrf.mxu0  ;;  %v605_v56 = vpop.f32.mrf.mxu1 }
 0x15b   :  { %v614_v25 = vadd.f32 %v605_v56, %v492_v20  ;;  %v491_v38 = vadd.f32 %v442_v55, %v357_v46 }
 0x15c   :  { %v444_v57 = vpop.f32.mrf.mxu0  ;;  %v1272_v58 = vpop.f32.mrf.mxu1 }
 0x15d   :  { %v493_v45 = vadd.f32 %v444_v57, %v359_v37 }
 0x15e   :  { %v446_v59 = vpop.f32.mrf.mxu0  ;;  %v608_v60 = vpop.f32.mrf.mxu1 }
 0x15f   :  { %v617_v50 = vadd.f32 %v608_v60, %v495_v35  ;;  %v494_v60 = vadd.f32 %v446_v59, %v360_v40 }
 0x160   :  { %v562_v61 = vpop.f32.mrf.mxu0  ;;  %v1273_v62 = vpop.f32.mrf.mxu1 }
 0x161   :  { %v612_v44 = vadd.f32 %v562_v61, %v490_v5  ;;  %v1116_v61 = vpop.permute.xlu1 %1115 }
 0x162   :  { %v564_v63 = vpop.f32.mrf.mxu0  ;;  %v727_v0 = vpop.f32.mrf.mxu1 }
 0x163   :  { %v736_v39 = vadd.f32 %v727_v0, %v614_v25  ;;  %v613_v41 = vadd.f32 %v564_v63, %v491_v38 }
 0x164   :  { %v566_v1 = vpop.f32.mrf.mxu0  ;;  %v1278_v3 = vpop.f32.mrf.mxu1 }
 0x165   :  { %v615_v0 = vadd.f32 %v566_v1, %v493_v45 }
 0x166   :  { %v568_v4 = vpop.f32.mrf.mxu0  ;;  %v730_v6 = vpop.f32.mrf.mxu1 }
 0x167   :  { %v739_v56 = vadd.f32 %v730_v6, %v617_v50  ;;  %v616_v6 = vadd.f32 %v568_v4, %v494_v60 }
 0x168   :  { %v684_v7 = vpop.f32.mrf.mxu0  ;;  %v1279_v8 = vpop.f32.mrf.mxu1 }
 0x169   :  { %v734_v62 = vadd.f32 %v684_v7, %v612_v44 }
 0x16a   :  { %v686_v9 = vpop.f32.mrf.mxu0  ;;  %v849_v10 = vpop.f32.mrf.mxu1 }
 0x16b   :  { %v858_v54 = vadd.f32 %v849_v10, %v736_v39  ;;  %v735_v43 = vadd.f32 %v686_v9, %v613_v41 }
 0x16c   :  { %v688_v11 = vpop.f32.mrf.mxu0  ;;  %v1284_v12 = vpop.f32.mrf.mxu1 }
 0x16d   :  { %v737_v10 = vadd.f32 %v688_v11, %v615_v0 }
 0x16e   :  { %v690_v14 = vpop.f32.mrf.mxu0  ;;  %v852_v15 = vpop.f32.mrf.mxu1 }
 0x16f   :  { %v861_v47 = vadd.f32 %v852_v15, %v739_v56  ;;  %v738_v7 = vadd.f32 %v690_v14, %v616_v6 }
 0x170   :  { %v806_v17 = vpop.f32.mrf.mxu0  ;;  %v1285_v18 = vpop.f32.mrf.mxu1 }
 0x171   :  { %v856_v49 = vadd.f32 %v806_v17, %v734_v62 }
 0x172   :  { %v808_v21 = vpop.f32.mrf.mxu0  ;;  %v971_v22 = vpop.f32.mrf.mxu1 }
 0x173   :  { %v980_v58 = vadd.f32 %v971_v22, %v858_v54  ;;  %v857_v57 = vadd.f32 %v808_v21, %v735_v43 }
 0x174   :  { %v810_v26 = vpop.f32.mrf.mxu0  ;;  %v1290_v27 = vpop.f32.mrf.mxu1 }
 0x175   :  { %v859_v15 = vadd.f32 %v810_v26, %v737_v10 }
 0x176   :  { %v812_v28 = vpop.f32.mrf.mxu0  ;;  %v974_v33 = vpop.f32.mrf.mxu1 }
 0x177   :  { %v983_v8 = vadd.f32 %v974_v33, %v861_v47  ;;  %v860_v20 = vadd.f32 %v812_v28, %v738_v7 }
 0x178   :  { %v928_v48 = vpop.f32.mrf.mxu0  ;;  %v1291_v31 = vpop.f32.mrf.mxu1 }
 0x179   :  { %v978_v13 = vadd.f32 %v928_v48, %v856_v49 }
 0x17a   :  { %v930_v52 = vpop.f32.mrf.mxu0  ;;  %v1093_v34 = vpop.f32.mrf.mxu1 }
 0x17b   :  { %v1102_v53 = vadd.f32 %v1093_v34, %v980_v58  ;;  %v979_v18 = vadd.f32 %v930_v52, %v857_v57 }
 0x17c   :  { %v932_v3 = vpop.f32.mrf.mxu0  ;;  %v1296_v36 = vpop.f32.mrf.mxu1 }
 0x17d   :  { %v1120_v55 = vadd.f32 %v1111_v32, %v1102_v53  ;;  %v981_v23 = vadd.f32 %v932_v3, %v859_v15 }
 0x17e   :  { %v934_v12 = vpop.f32.mrf.mxu0  ;;  %v1096_v51 = vpop.f32.mrf.mxu1 }
 0x17f   :  { %v1126_v16 = vmax.f32 %v1120_v55, 0.0  ;;  %v1105_v63 = vadd.f32 %v1096_v51, %v983_v8  ;;  %v982_v24 = vadd.f32 %v934_v12, %v860_v20 }
 0x180   :  { %v1050_v59 = vpop.f32.mrf.mxu0  ;;  %v1297_v1 = vpop.f32.mrf.mxu1 }
 0x181   :  { %v1223_v19 = vpack.c.bf16 %v1126_v16, %v1126_v16  ;;  %v1100_v9 = vadd.f32 %v1050_v59, %v978_v13  ;;  %v1123_v17 = vadd.f32 %v1116_v61, %v1105_v63 }
 0x182   :  { %v1052_v22 = vpop.f32.mrf.mxu0 }
 0x183   :  { %1152 = vst.msk [vmem:[%s1545_s3 + $0x8] sm:$0xf] %vm1151_vm11, %v1223_v19  ;;  %v1118_v4 = vadd.f32 %v1111_v32, %v1100_v9  ;;  %v1129_v11 = vmax.f32 %v1123_v17, 0.0  ;;  %v1101_v21 = vadd.f32 %v1052_v22, %v979_v18 }
 0x184   :  { %v1054_v14 = vpop.f32.mrf.mxu0 }
 0x185   :  { %v1225_v25 = vpack.c.bf16 %v1129_v11, %v1129_v11  ;;  %v1119_v26 = vadd.f32 %v1111_v32, %v1101_v21  ;;  %v1103_v27 = vadd.f32 %v1054_v14, %v981_v23  ;;  %v1124_v2 = vmax.f32 %v1118_v4, 0.0 }
 0x186   :  { %v1056_v29 = vpop.f32.mrf.mxu0 }
 0x187   :  { %1154 = vst.msk [vmem:[%s1545_s3 + $0x14] sm:$0xf] %vm1151_vm11, %v1225_v25  ;;  %v1125_v35 = vmax.f32 %v1119_v26, 0.0  ;;  %v1121_v39 = vadd.f32 %v1116_v61, %v1103_v27  ;;  %v1104_v42 = vadd.f32 %v1056_v29, %v982_v24 }
 0x189   :  { %v1222_v28 = vpack.c.bf16 %v1125_v35, %v1124_v2  ;;  %v1122_v33 = vadd.f32 %v1116_v61, %v1104_v42  ;;  %v1127_v46 = vmax.f32 %v1121_v39, 0.0 }
 0x18b   :  { %1150 = vst [vmem:[%s1545_s3] sm:$0xff] %v1222_v28  ;;  %v1128_v5 = vmax.f32 %v1122_v33, 0.0 }
 0x18d   :  { %v1224_v50 = vpack.c.bf16 %v1128_v5, %v1127_v46 }
 0x18f   :  { %1153 = vst [vmem:[%s1545_s3 + $0xc] sm:$0xff] %v1224_v50 }

// kernel: _lambda_.9
= control target key start
LH: loop header
LB: loop body
LE: loop exit
PB: predicated region body
PF: predicated region fallthrough
CT: control target
= control target key end

     0   :  { %vm38_vm0 = vcmask 1043456   ;;  %v384_v2 = vmov 0   ;;  %vm34_vm1 = vcmask 64512   ;;  %s481_s0 = inlined_call_operand.vmem [shape: bf16[4,8,256], index: 0, kind: input, shape index: {}]   ;;  %s482_s2 = inlined_call_operand.vmem [shape: f32[4,1], index: 2, kind: input, shape index: {}]   ;;  %s483_s3 = inlined_call_operand.vmem [shape: f32[4,4,1], index: 3, kind: input, shape index: {}]   ;;  %s484_s1 = inlined_call_operand.vmem [shape: bf16[4,8], index: 1, kind: input, shape index: {}]   ;;  %s485_s4 = inlined_call_operand.vmem [shape: f32[4,4,1], index: 4, kind: input, shape index: {}]   ;;  %s486_s5 = inlined_call_operand.vmem [shape: f32[4,4,256], index: 5, kind: output, shape index: {}]  }
   0x1   :  { %v23_v0 = vld [vmem:[%s481_s0] sm:$0xff]  ;;  %v349_v1 = vld [vmem:[%s481_s0 + $0x8] sm:$0xff]  ;;  %77 = vmatprep.mubr.bf16.mxu0 %v384_v2  ;;  %152 = vmatprep.mubr.bf16.mxu1 %v384_v2  ;;  %v357_v7 = vld [vmem:[%s481_s0 + $0x10] sm:$0xff] }
   0x2   :  { %v346_v3 = vcombine.high %v23_v0, %v23_v0  ;;  %v351_v4 = vcombine.high %v349_v1, %v349_v1  ;;  %v345_v5 = vcombine.low %v23_v0, %v23_v0  ;;  %v350_v6 = vcombine.low %v349_v1, %v349_v1  ;;  %v365_v8 = vld [vmem:[%s481_s0 + $0x18] sm:$0xff]  ;;  %374 = vset.pattern.permute.xlu0 %v384_v2  ;;  %v22_v9 = vld [vmem:[%s482_s2] sm:$0xf]  ;;  %v354_v20 = vld [vmem:[%s483_s3 + $0x4] sm:$0xf] }
   0x3   :  { %v359_v10 = vcombine.high %v357_v7, %v357_v7  ;;  %v367_v11 = vcombine.high %v365_v8, %v365_v8  ;;  %v358_v12 = vcombine.low %v357_v7, %v357_v7  ;;  %v366_v13 = vcombine.low %v365_v8, %v365_v8  ;;  %26 = vperm.xlu0 %374, %v22_v9   ;;  %v86_v16 = vld [vmem:[%s483_s3] sm:$0xf]  ;;  %v370_v21 = vld [vmem:[%s483_s3 + $0xc] sm:$0xf]  ;;  %v362_v22 = vld [vmem:[%s483_s3 + $0x8] sm:$0xf] }
   0x4   :  { %347 = vmatprep.subr.msk.bf16.mxu0 %vm38_vm0, %v346_v3  ;;  %352 = vmatprep.subr.msk.bf16.mxu1 %vm38_vm0, %v351_v4  ;;  %v40_v14 = vsel %vm38_vm0, %v345_v5, 0  ;;  %v115_v15 = vsel %vm38_vm0, %v350_v6, 0  ;;  %v21_v17 = vld [vmem:[%s484_s1] sm:$0x3]  ;;  %v355_v23 = vld [vmem:[%s485_s4 + $0x4] sm:$0xf] }
   0x5   :  { %60 = vmatpush1.bf16.msra.mxu0 %v40_v14  ;;  %135 = vmatpush1.bf16.msra.mxu1 %v115_v15  ;;  %v193_v18 = vsel %vm38_vm0, %v358_v12, 0  ;;  %v271_v19 = vsel %vm38_vm0, %v366_v13, 0  ;;  %v94_v24 = vld [vmem:[%s485_s4] sm:$0xf]  ;;  %v371_v25 = vld [vmem:[%s485_s4 + $0xc] sm:$0xf] }
   0x6   :  { %360 = vmatprep.subr.msk.bf16.mxu0 %vm38_vm0, %v359_v10  ;;  %368 = vmatprep.subr.msk.bf16.mxu1 %vm38_vm0, %v367_v11  ;;  %v363_v26 = vld [vmem:[%s485_s4 + $0x8] sm:$0xf] }
   0x7   :  { %89 = vperm.xlu0 %374, %v86_v16   ;;  %375 = vset.pattern.permute.xlu1 %v384_v2 }
   0x8   :  { %348 = vmatmul.mubr.msk.bf16.vlgmr.msra.gmra.mxu0 %vm34_vm1, %v21_v17  ;;  %353 = vmatmul.mubr.msk.bf16.vlgmr.msra.gmra.mxu1 %vm34_vm1, %v21_v17 }
   0x9   :  { %213 = vmatpush1.bf16.msra.mxu0 %v193_v18  ;;  %291 = vmatpush1.bf16.msra.mxu1 %v271_v19 }
   0xa   :  { %230 = vmatprep.mubr.bf16.mxu0 %v384_v2  ;;  %308 = vmatprep.mubr.bf16.mxu1 %v384_v2 }
   0xb   :  { %165 = vperm.xlu1 %375, %v354_v20   ;;  %321 = vperm.xlu0 %374, %v370_v21  }
   0xf   :  { %243 = vperm.xlu1 %375, %v362_v22   ;;  %174 = vperm.xlu0 %374, %v355_v23  }
  0x10   :  { %361 = vmatmul.mubr.msk.bf16.vlgmr.msra.gmra.mxu0 %vm34_vm1, %v21_v17  ;;  %369 = vmatmul.mubr.msk.bf16.vlgmr.msra.gmra.mxu1 %vm34_vm1, %v21_v17 }
  0x13   :  { %97 = vperm.xlu1 %375, %v94_v24   ;;  %330 = vperm.xlu0 %374, %v371_v25  }
  0x17   :  { %252 = vperm.xlu1 %375, %v363_v26  }
  0x7e   :  { %v27_v27 = vpop.permute.xlu0 %26 }
  0x82   :  { %v90_v28 = vpop.permute.xlu0 %89 }
  0x86   :  { %v166_v29 = vpop.permute.xlu1 %165  ;;  %v322_v30 = vpop.permute.xlu0 %321 }
  0x8a   :  { %v244_v31 = vpop.permute.xlu1 %243  ;;  %v175_v44 = vpop.permute.xlu0 %174 }
  0x8e   :  { %v98_v45 = vpop.permute.xlu1 %97  ;;  %v331_v4 = vpop.permute.xlu0 %330 }
  0x92   :  { %v253_v5 = vpop.permute.xlu1 %252 }
  0xc8   :  { %v79_v32 = vpop.f32.mrf.mxu0  ;;  %v154_v33 = vpop.f32.mrf.mxu1 }
  0xc9   :  { %v80_v34 = vadd.f32 %v79_v32, %v27_v27  ;;  %v155_v35 = vadd.f32 %v154_v33, %v27_v27 }
  0xca   :  { %v81_v36 = vpop.f32.mrf.mxu0  ;;  %v156_v37 = vpop.f32.mrf.mxu1 }
  0xcb   :  { %v92_v38 = vmul.f32 %v90_v28, %v80_v34  ;;  %v168_v39 = vmul.f32 %v166_v29, %v155_v35  ;;  %v82_v40 = vadd.f32 %v81_v36, %v27_v27  ;;  %v157_v41 = vadd.f32 %v156_v37, %v27_v27 }
  0xcc   :  { %v83_v42 = vpop.f32.mrf.mxu0  ;;  %v158_v43 = vpop.f32.mrf.mxu1 }
  0xcd   :  { %v93_v46 = vmul.f32 %v90_v28, %v82_v40  ;;  %v169_v47 = vmul.f32 %v166_v29, %v157_v41  ;;  %v100_v50 = vadd.f32 %v98_v45, %v92_v38  ;;  %v177_v51 = vadd.f32 %v175_v44, %v168_v39 }
  0xce   :  { %v84_v48 = vpop.f32.mrf.mxu0  ;;  %v159_v49 = vpop.f32.mrf.mxu1 }
  0xcf   :  { %v101_v52 = vadd.f32 %v98_v45, %v93_v46  ;;  %v178_v53 = vadd.f32 %v175_v44, %v169_v47 }
  0xd0   :  { %v232_v54 = vpop.f32.mrf.mxu0  ;;  %v310_v55 = vpop.f32.mrf.mxu1 }
  0xd1   :  { %v104_v56 = vcombine.low %v100_v50, %v101_v52  ;;  %v181_v57 = vcombine.low %v177_v51, %v178_v53  ;;  %v233_v58 = vadd.f32 %v232_v54, %v27_v27  ;;  %v311_v59 = vadd.f32 %v310_v55, %v27_v27 }
  0xd2   :  { %v234_v60 = vpop.f32.mrf.mxu0  ;;  %v312_v61 = vpop.f32.mrf.mxu1 }
  0xd3   :  { %106 = vst [vmem:[%s486_s5] sm:$0xff] %v104_v56  ;;  %356 = vst [vmem:[%s486_s5 + $0x8] sm:$0xff] %v181_v57  ;;  %v246_v62 = vmul.f32 %v244_v31, %v233_v58  ;;  %v324_v63 = vmul.f32 %v322_v30, %v311_v59  ;;  %v235_v0 = vadd.f32 %v234_v60, %v27_v27 }
  0xd4   :  { %v313_v1 = vadd.f32 %v312_v61, %v27_v27  ;;  %v236_v2 = vpop.f32.mrf.mxu0  ;;  %v314_v3 = vpop.f32.mrf.mxu1 }
  0xd5   :  { %v247_v6 = vmul.f32 %v244_v31, %v235_v0  ;;  %v255_v10 = vadd.f32 %v253_v5, %v246_v62  ;;  %v333_v11 = vadd.f32 %v331_v4, %v324_v63 }
  0xd6   :  { %v325_v7 = vmul.f32 %v322_v30, %v313_v1  ;;  %v237_v8 = vpop.f32.mrf.mxu0  ;;  %v315_v9 = vpop.f32.mrf.mxu1 }
  0xd7   :  { %v256_v12 = vadd.f32 %v253_v5, %v247_v6 }
  0xd8   :  { %v334_v13 = vadd.f32 %v331_v4, %v325_v7 }
  0xd9   :  { %v259_v14 = vcombine.low %v255_v10, %v256_v12 }
  0xda   :  { %v337_v15 = vcombine.low %v333_v11, %v334_v13 }
  0xdb   :  { %364 = vst [vmem:[%s486_s5 + $0x10] sm:$0xff] %v259_v14 }
  0xdc   :  { %372 = vst [vmem:[%s486_s5 + $0x18] sm:$0xff] %v337_v15 }

// kernel: _lambda_.8
= control target key start
LH: loop header
LB: loop body
LE: loop exit
PB: predicated region body
PF: predicated region fallthrough
CT: control target
= control target key end

     0   :  { %v5310_v1 = vmov 0   ;;  %s5311_s22 = smov 127   ;;  %vm67_vm0 = vcmask 1043456   ;;  %vm63_vm1 = vcmask 64512   ;;  %vm353_vm2 = vcmask 130048   ;;  %s5312_s29 = smov 126   ;;  %s6623_s0 = inlined_call_operand.vmem [shape: bf16[16,1296], index: 0, kind: input, shape index: {}]   ;;  %s6624_s1 = inlined_call_operand.vmem [shape: bf16[8,1296], index: 1, kind: input, shape index: {}]   ;;  %s6625_s3 = inlined_call_operand.vmem [shape: bf16[9,8,8], index: 3, kind: input, shape index: {}]   ;;  %s6626_s2 = inlined_call_operand.vmem [shape: bf16[9,8,16], index: 2, kind: input, shape index: {}]   ;;  %s6627_s4 = inlined_call_operand.vmem [shape: f32[8,1], index: 4, kind: input, shape index: {}]   ;;  %s6628_s5 = inlined_call_operand.vmem [shape: bf16[8,1258], index: 5, kind: output, shape index: {}]  }
   0x1   :  { %v5352_v0 = vld [vmem:[%s6623_s0 + $0xc] ss:$44 sps:$4 sm:$0xff]   ;;  %130 = vmatprep.mubr.bf16.mxu0 %v5310_v1  ;;  %171 = vmatprep.mubr.bf16.mxu1 %v5310_v1  ;;  %v5359_v2 = vld [vmem:[%s6623_s0 + $0x4] ss:$44 sps:$4 sm:$0xff]   ;;  %v5374_v4 = vld [vmem:[%s6623_s0 + $0x8] ss:$44 sps:$4 sm:$0xff]  }
   0x2   :  { %5272 = vset.pattern.permute.xlu0 %v5310_v1  ;;  %570 = vrot.lane.b32.xlu1 %v5352_v0, %s5311_s22  ;;  %v5367_v3 = vld [vmem:[%s6623_s0 + $0x10] ss:$44 sps:$4 sm:$0xff]   ;;  %v33_v5 = vld [vmem:[%s6624_s1] sm:$0xff]  ;;  %v34_v7 = vld [vmem:[%s6624_s1 + $0x8] sm:$0xff]  ;;  %vm584_vm3 = vcmask 1039360   ;;  %s5314_s30 = smov 109  }
   0x3   :  { %566 = vrot.lane.b32.xlu0 %v5359_v2, %s5311_s22  ;;  %v5384_v6 = vld [vmem:[%s6623_s0 + $0x14] ss:$44 sps:$4 sm:$0xff]   ;;  %v5389_v8 = vcombine.high %v33_v5, %v33_v5  ;;  %v5398_v10 = vcombine.low %v33_v5, %v33_v5  ;;  %v5400_v11 = vcombine.low %v34_v7, %v34_v7  ;;  %v5402_v12 = vcombine.high %v34_v7, %v34_v7  ;;  %v36_v14 = vld [vmem:[%s6624_s1 + $0x18] sm:$0xff]  ;;  %v5488_v31 = vld [vmem:[%s6623_s0 + $0x24] ss:$44 sps:$4 sm:$0xff]   ;;  %s5315_s10 = smov 108  }
   0x4   :  { %v5396_v9 = vld [vmem:[%s6623_s0] ss:$44 sps:$4 sm:$0xff]   ;;  %v35_v13 = vld [vmem:[%s6624_s1 + $0x10] sm:$0xff]  ;;  %v5415_v15 = vld [vmem:[%s6623_s0 + $0x1c] ss:$44 sps:$4 sm:$0xff]   ;;  %v5439_v22 = vcombine.high %v36_v14, %v36_v14  ;;  %v5448_v25 = vcombine.low %v36_v14, %v36_v14  ;;  %vm1123_vm4 = vcmask 1031168  }
   0x5   :  { %5070 = vmatprep.subr.msk.bf16.mxu0 %vm67_vm0, %v5389_v8  ;;  %v5417_v16 = vcombine.high %v35_v13, %v35_v13  ;;  %v5419_v17 = vcombine.low %v35_v13, %v35_v13  ;;  %v69_v18 = vsel %vm67_vm0, %v5398_v10, 0  ;;  %5072 = vmatprep.subr.msk.bf16.mxu1 %vm67_vm0, %v5402_v12  ;;  %v75_v19 = vsel %vm67_vm0, %v5400_v11, 0  ;;  %v32_v20 = vld [vmem:[%s6625_s3] sm:$0xf]  ;;  %v5437_v21 = vld [vmem:[%s6623_s0 + $0x18] ss:$44 sps:$4 sm:$0xff]  }
   0x6   :  { %572 = vrot.lane.b32.xlu1 %v5367_v3, %s5311_s22  ;;  %113 = vmatpush1.bf16.msra.mxu0 %v69_v18  ;;  %v37_v23 = vld [vmem:[%s6624_s1 + $0x20] sm:$0xff]  ;;  %v87_v27 = vsel %vm67_vm0, %v5448_v25, 0  ;;  %vm1662_vm5 = vcmask 900096   ;;  %s5316_s15 = smov 92   ;;  %vm2201_vm6 = vcmask 891904   ;;  %s5317_s26 = smov 91  }
   0x7   :  { %568 = vrot.lane.b32.xlu0 %v5374_v4, %s5311_s22  ;;  %5074 = vmatprep.subr.msk.bf16.mxu0 %vm67_vm0, %v5417_v16  ;;  %v81_v24 = vsel %vm67_vm0, %v5419_v17, 0  ;;  %v5455_v26 = vcombine.high %v37_v23, %v37_v23  ;;  %v5464_v28 = vld [vmem:[%s6623_s0 + $0x20] ss:$44 sps:$4 sm:$0xff]   ;;  %v5470_v29 = vcombine.low %v37_v23, %v37_v23  ;;  %v5095_v42 = vld [vmem:[%s6626_s2 + $0x4] sm:$0xf]  ;;  %vm2740_vm7 = vcmask 883712  }
   0x8   :  { %154 = vmatpush1.bf16.msra.mxu1 %v75_v19  ;;  %v21_v32 = vld [vmem:[%s6626_s2] sm:$0xf]  ;;  %v5101_v61 = vld [vmem:[%s6625_s3 + $0x4] sm:$0xf]  ;;  %s5318_s24 = smov 90   ;;  %vm3338_vm8 = vcmask 752640  }
   0x9   :  { %5071 = vmatmul.mubr.msk.bf16.vlgmr.msra.gmra.mxu0 %vm63_vm1, %v32_v20  ;;  %5076 = vmatprep.subr.msk.bf16.mxu1 %vm67_vm0, %v5439_v22  ;;  %v93_v30 = vsel %vm67_vm0, %v5470_v29, 0  ;;  %vm3917_vm9 = vcmask 744448   ;;  %vm4462_vm10 = vcmask 736256   ;;  %vm5053_vm11 = vcmask 867332  }
   0xa   :  { %574 = vrot.lane.b32.xlu1 %v5384_v6, %s5311_s22  ;;  %195 = vmatpush1.bf16.msra.mxu0 %v81_v24  ;;  %vm5054_vm12 = vmor %vm5053_vm11, %vm67_vm0 }
   0xb   :  { %564 = vrot.lane.b32.xlu0 %v5396_v9, %s5311_s22  ;;  %212 = vmatprep.mubr.bf16.mxu0 %v5310_v1 }
   0xc   :  { %5073 = vmatmul.mubr.msk.bf16.vlgmr.msra.gmra.mxu1 %vm63_vm1, %v32_v20  ;;  %5078 = vmatprep.subr.msk.bf16.mxu0 %vm67_vm0, %v5455_v26 }
   0xd   :  { %236 = vmatpush1.bf16.msra.mxu1 %v87_v27  ;;  %253 = vmatprep.mubr.bf16.mxu1 %v5310_v1 }
   0xe   :  { %578 = vrot.lane.b32.xlu1 %v5415_v15, %s5311_s22  ;;  %371 = vmatprep.subr.bf16.mxu1 %v5359_v2 }
   0xf   :  { %576 = vrot.lane.b32.xlu0 %v5437_v21, %s5311_s22 }
  0x11   :  { %5075 = vmatmul.mubr.msk.bf16.vlgmr.msra.gmra.mxu0 %vm63_vm1, %v32_v20 }
  0x12   :  { %824 = vrot.lane.b32.xlu1 %v5398_v10, %s5311_s22  ;;  %277 = vmatpush1.bf16.msra.mxu0 %v93_v30 }
  0x13   :  { %580 = vrot.lane.b32.xlu0 %v5464_v28, %s5311_s22  ;;  %294 = vmatprep.mubr.bf16.mxu0 %v5310_v1 }
  0x14   :  { %5077 = vmatmul.mubr.msk.bf16.vlgmr.msra.gmra.mxu1 %vm63_vm1, %v32_v20  ;;  %412 = vmatprep.subr.bf16.mxu0 %v5352_v0 }
  0x15   :  { %372 = vmatpush1.bf16.msra.mxu1 %v5396_v9  ;;  %389 = vmatprep.mubr.bf16.mxu1 %v5310_v1 }
  0x16   :  { %828 = vrot.lane.b32.xlu1 %v5400_v11, %s5311_s22  ;;  %453 = vmatprep.subr.bf16.mxu1 %v5384_v6 }
  0x17   :  { %826 = vrot.lane.b32.xlu0 %v5389_v8, %s5311_s22 }
  0x19   :  { %5079 = vmatmul.mubr.msk.bf16.vlgmr.msra.gmra.mxu0 %vm63_vm1, %v32_v20 }
  0x1a   :  { %830 = vrot.lane.b32.xlu1 %v5402_v12, %s5311_s22  ;;  %413 = vmatpush1.bf16.msra.mxu0 %v5374_v4 }
  0x1b   :  { %582 = vrot.lane.b32.xlu0 %v5488_v31, %s5311_s22  ;;  %430 = vmatprep.mubr.bf16.mxu0 %v5310_v1 }
  0x1c   :  { %5090 = vmatmul.mubr.msk.bf16.vlgmr.msra.gmra.mxu1 %vm353_vm2, %v21_v32  ;;  %494 = vmatprep.subr.bf16.mxu0 %v5415_v15 }
  0x1d   :  { %454 = vmatpush1.bf16.msra.mxu1 %v5367_v3  ;;  %471 = vmatprep.mubr.bf16.mxu1 %v5310_v1 }
  0x1e   :  { %834 = vrot.lane.b32.xlu1 %v5417_v16, %s5311_s22  ;;  %535 = vmatprep.subr.bf16.mxu1 %v5488_v31 }
  0x1f   :  { %832 = vrot.lane.b32.xlu0 %v5419_v17, %s5311_s22 }
  0x21   :  { %5091 = vmatmul.mubr.msk.bf16.vlgmr.msra.gmra.mxu0 %vm353_vm2, %v21_v32 }
  0x22   :  { %838 = vrot.lane.b32.xlu1 %v5439_v22, %s5311_s22  ;;  %495 = vmatpush1.bf16.msra.mxu0 %v5437_v21 }
  0x23   :  { %836 = vrot.lane.b32.xlu0 %v5448_v25, %s5311_s22  ;;  %512 = vmatprep.mubr.bf16.mxu0 %v5310_v1 }
  0x24   :  { %5092 = vmatmul.mubr.msk.bf16.vlgmr.msra.gmra.mxu1 %vm353_vm2, %v21_v32 }
  0x25   :  { %536 = vmatpush1.bf16.msra.mxu1 %v5464_v28  ;;  %553 = vmatprep.mubr.bf16.mxu1 %v5310_v1 }
  0x26   :  { %842 = vrot.lane.b32.xlu1 %v5455_v26, %s5311_s22 }
  0x27   :  { %840 = vrot.lane.b32.xlu0 %v5470_v29, %s5311_s22  ;;  %s5313_s22 = smov 110  }
  0x29   :  { %5093 = vmatmul.mubr.msk.bf16.vlgmr.msra.gmra.mxu0 %vm353_vm2, %v21_v32 }
  0x2a   :  { %1107 = vrot.lane.b32.xlu1 %v5374_v4, %s5312_s29  ;;  %639 = vmatprep.mubr.bf16.mxu0 %v5310_v1 }
  0x2b   :  { %1105 = vrot.lane.b32.xlu0 %v5359_v2, %s5312_s29 }
  0x2c   :  { %5094 = vmatmul.mubr.msk.bf16.vlgmr.msra.gmra.mxu1 %vm353_vm2, %v21_v32 }
  0x2d   :  { %680 = vmatprep.mubr.bf16.mxu1 %v5310_v1 }
  0x2e   :  { %1111 = vrot.lane.b32.xlu1 %v5367_v3, %s5312_s29 }
  0x2f   :  { %1109 = vrot.lane.b32.xlu0 %v5352_v0, %s5312_s29 }
  0x32   :  { %1113 = vrot.lane.b32.xlu1 %v5384_v6, %s5312_s29 }
  0x33   :  { %1103 = vrot.lane.b32.xlu0 %v5396_v9, %s5312_s29 }
  0x36   :  { %1117 = vrot.lane.b32.xlu1 %v5415_v15, %s5312_s29 }
  0x37   :  { %1115 = vrot.lane.b32.xlu0 %v5437_v21, %s5312_s29 }
  0x3a   :  { %1363 = vrot.lane.b32.xlu1 %v5398_v10, %s5312_s29 }
  0x3b   :  { %1119 = vrot.lane.b32.xlu0 %v5464_v28, %s5312_s29 }
  0x3e   :  { %1367 = vrot.lane.b32.xlu1 %v5400_v11, %s5312_s29 }
  0x3f   :  { %1365 = vrot.lane.b32.xlu0 %v5389_v8, %s5312_s29 }
  0x42   :  { %1369 = vrot.lane.b32.xlu1 %v5402_v12, %s5312_s29 }
  0x43   :  { %1121 = vrot.lane.b32.xlu0 %v5488_v31, %s5312_s29 }
  0x46   :  { %1373 = vrot.lane.b32.xlu1 %v5417_v16, %s5312_s29 }
  0x47   :  { %1371 = vrot.lane.b32.xlu0 %v5419_v17, %s5312_s29 }
  0x4a   :  { %1377 = vrot.lane.b32.xlu1 %v5439_v22, %s5312_s29 }
  0x4b   :  { %1375 = vrot.lane.b32.xlu0 %v5448_v25, %s5312_s29 }
  0x4e   :  { %1381 = vrot.lane.b32.xlu1 %v5455_v26, %s5312_s29 }
  0x4f   :  { %1379 = vrot.lane.b32.xlu0 %v5470_v29, %s5312_s29 }
  0x52   :  { %1646 = vrot.lane.b32.xlu1 %v5374_v4, %s5313_s22 }
  0x53   :  { %1644 = vrot.lane.b32.xlu0 %v5359_v2, %s5313_s22 }
  0x56   :  { %1650 = vrot.lane.b32.xlu1 %v5367_v3, %s5313_s22 }
  0x57   :  { %1648 = vrot.lane.b32.xlu0 %v5352_v0, %s5313_s22 }
  0x5a   :  { %1652 = vrot.lane.b32.xlu1 %v5384_v6, %s5313_s22 }
  0x5b   :  { %1642 = vrot.lane.b32.xlu0 %v5396_v9, %s5313_s22 }
  0x5e   :  { %1656 = vrot.lane.b32.xlu1 %v5415_v15, %s5313_s22 }
  0x5f   :  { %1654 = vrot.lane.b32.xlu0 %v5437_v21, %s5313_s22 }
  0x62   :  { %1902 = vrot.lane.b32.xlu1 %v5398_v10, %s5313_s22 }
  0x63   :  { %1658 = vrot.lane.b32.xlu0 %v5464_v28, %s5313_s22 }
  0x66   :  { %1906 = vrot.lane.b32.xlu1 %v5400_v11, %s5313_s22 }
  0x67   :  { %1904 = vrot.lane.b32.xlu0 %v5389_v8, %s5313_s22 }
  0x6a   :  { %1908 = vrot.lane.b32.xlu1 %v5402_v12, %s5313_s22 }
  0x6b   :  { %1660 = vrot.lane.b32.xlu0 %v5488_v31, %s5313_s22 }
  0x6e   :  { %1912 = vrot.lane.b32.xlu1 %v5417_v16, %s5313_s22 }
  0x6f   :  { %1910 = vrot.lane.b32.xlu0 %v5419_v17, %s5313_s22 }
  0x72   :  { %1916 = vrot.lane.b32.xlu1 %v5439_v22, %s5313_s22 }
  0x73   :  { %1914 = vrot.lane.b32.xlu0 %v5448_v25, %s5313_s22 }
  0x74   :  { %v571_v33 = vpop.permute.xlu1 %570 }
  0x75   :  { %v567_v34 = vpop.permute.xlu0 %566 }
  0x76   :  { %1920 = vrot.lane.b32.xlu1 %v5455_v26, %s5313_s22 }
  0x77   :  { %1918 = vrot.lane.b32.xlu0 %v5470_v29, %s5313_s22 }
  0x78   :  { %v573_v35 = vpop.permute.xlu1 %572 }
  0x79   :  { %v569_v36 = vpop.permute.xlu0 %568  ;;  %v588_v37 = vsel %vm584_vm3, %v571_v33, %v573_v35 }
  0x7a   :  { %2185 = vrot.lane.b32.xlu1 %v5374_v4, %s5314_s30  ;;  %v586_v38 = vsel %vm584_vm3, %v567_v34, %v569_v36  ;;  %662 = vmatprep.subr.bf16.mxu1 %v588_v37  ;;  %v587_v39 = vsel %vm584_vm3, %v569_v36, %v571_v33 }
  0x7b   :  { %621 = vmatprep.subr.bf16.mxu0 %v586_v38  ;;  %2183 = vrot.lane.b32.xlu0 %v5359_v2, %s5314_s30 }
  0x7c   :  { %663 = vmatpush1.bf16.msra.mxu1 %v587_v39  ;;  %v575_v40 = vpop.permute.xlu1 %574 }
  0x7d   :  { %v565_v41 = vpop.permute.xlu0 %564  ;;  %v589_v47 = vsel %vm584_vm3, %v573_v35, %v575_v40 }
  0x7e   :  { %v585_v43 = vsel %vm584_vm3, %v565_v41, %v567_v34  ;;  %2189 = vrot.lane.b32.xlu1 %v5367_v3, %s5314_s30 }
  0x7f   :  { %2187 = vrot.lane.b32.xlu0 %v5352_v0, %s5314_s30  ;;  %622 = vmatpush1.bf16.msra.mxu0 %v585_v43 }
  0x80   :  { %5097 = vmatmul.mubr.msk.bf16.vlgmr.msra.gmra.mxu1 %vm353_vm2, %v5095_v42  ;;  %v579_v44 = vpop.permute.xlu1 %578 }
  0x81   :  { %v577_v45 = vpop.permute.xlu0 %576  ;;  %762 = vmatprep.mubr.bf16.mxu1 %v5310_v1 }
  0x82   :  { %5096 = vmatmul.mubr.msk.bf16.vlgmr.msra.gmra.mxu0 %vm353_vm2, %v5095_v42  ;;  %2191 = vrot.lane.b32.xlu1 %v5384_v6, %s5314_s30  ;;  %v590_v46 = vsel %vm584_vm3, %v575_v40, %v577_v45  ;;  %v591_v51 = vsel %vm584_vm3, %v577_v45, %v579_v44  ;;  %v5112_v45 = vld [vmem:[%s6626_s2 + $0x8] sm:$0xf] }
  0x83   :  { %2181 = vrot.lane.b32.xlu0 %v5396_v9, %s5314_s30  ;;  %703 = vmatprep.subr.bf16.mxu0 %v590_v46 }
  0x84   :  { %704 = vmatpush1.bf16.msra.mxu0 %v589_v47  ;;  %v825_v48 = vpop.permute.xlu1 %824  ;;  %721 = vmatprep.mubr.bf16.mxu0 %v5310_v1 }
  0x85   :  { %v581_v49 = vpop.permute.xlu0 %580 }
  0x86   :  { %2195 = vrot.lane.b32.xlu1 %v5415_v15, %s5314_s30  ;;  %v592_v50 = vsel %vm584_vm3, %v579_v44, %v581_v49 }
  0x87   :  { %2193 = vrot.lane.b32.xlu0 %v5437_v21, %s5314_s30  ;;  %744 = vmatprep.subr.bf16.mxu1 %v592_v50 }
  0x88   :  { %745 = vmatpush1.bf16.msra.mxu1 %v591_v51  ;;  %v829_v52 = vpop.permute.xlu1 %828 }
  0x89   :  { %v827_v53 = vpop.permute.xlu0 %826 }
  0x8a   :  { %v844_v54 = vsel %vm584_vm3, %v825_v48, %v827_v53  ;;  %5098 = vmatmul.mubr.msk.bf16.vlgmr.msra.gmra.mxu0 %vm353_vm2, %v5095_v42  ;;  %2441 = vrot.lane.b32.xlu1 %v5398_v10, %s5314_s30  ;;  %v845_v55 = vsel %vm584_vm3, %v827_v53, %v829_v52 }
  0x8b   :  { %2197 = vrot.lane.b32.xlu0 %v5464_v28, %s5314_s30  ;;  %5099 = vmatmul.mubr.msk.bf16.vlgmr.msra.gmra.mxu1 %vm353_vm2, %v5095_v42  ;;  %v857_v56 = vsel %vm67_vm0, %v844_v54, 0 }
  0x8c   :  { %5102 = vmatprep.subr.msk.bf16.mxu1 %vm67_vm0, %v845_v55  ;;  %v831_v57 = vpop.permute.xlu1 %830  ;;  %803 = vmatprep.mubr.bf16.mxu0 %v5310_v1 }
  0x8d   :  { %901 = vmatpush1.bf16.msra.mxu1 %v857_v56  ;;  %v583_v58 = vpop.permute.xlu0 %582  ;;  %918 = vmatprep.mubr.bf16.mxu1 %v5310_v1  ;;  %v846_v62 = vsel %vm584_vm3, %v829_v52, %v831_v57 }
  0x8e   :  { %785 = vmatprep.subr.bf16.mxu0 %v583_v58  ;;  %2445 = vrot.lane.b32.xlu1 %v5400_v11, %s5314_s30  ;;  %v593_v59 = vsel %vm584_vm3, %v581_v49, %v583_v58  ;;  %v863_v13 = vsel %vm67_vm0, %v846_v62, 0 }
  0x8f   :  { %2443 = vrot.lane.b32.xlu0 %v5389_v8, %s5314_s30  ;;  %786 = vmatpush1.bf16.msra.mxu0 %v593_v59 }
  0x90   :  { %v835_v60 = vpop.permute.xlu1 %834 }
  0x91   :  { %v833_v63 = vpop.permute.xlu0 %832 }
  0x92   :  { %5100 = vmatmul.mubr.msk.bf16.vlgmr.msra.gmra.mxu0 %vm353_vm2, %v5095_v42  ;;  %2447 = vrot.lane.b32.xlu1 %v5402_v12, %s5314_s30  ;;  %v847_v5 = vsel %vm584_vm3, %v831_v57, %v833_v63  ;;  %v848_v7 = vsel %vm584_vm3, %v833_v63, %v835_v60  ;;  %v5118_v63 = vld [vmem:[%s6625_s3 + $0x8] sm:$0xf] }
  0x93   :  { %2199 = vrot.lane.b32.xlu0 %v5488_v31, %s5314_s30  ;;  %5103 = vmatmul.mubr.msk.bf16.vlgmr.msra.gmra.mxu1 %vm63_vm1, %v5101_v61  ;;  %v869_v20 = vsel %vm67_vm0, %v848_v7, 0 }
  0x94   :  { %5104 = vmatprep.subr.msk.bf16.mxu0 %vm67_vm0, %v847_v5  ;;  %v839_v14 = vpop.permute.xlu1 %838  ;;  %959 = vmatprep.mubr.bf16.mxu0 %v5310_v1 }
  0x95   :  { %942 = vmatpush1.bf16.msra.mxu0 %v863_v13  ;;  %v837_v18 = vpop.permute.xlu0 %836  ;;  %1000 = vmatprep.mubr.bf16.mxu1 %v5310_v1 }
  0x96   :  { %2451 = vrot.lane.b32.xlu1 %v5417_v16, %s5314_s30  ;;  %v849_v19 = vsel %vm584_vm3, %v835_v60, %v837_v18  ;;  %v850_v24 = vsel %vm584_vm3, %v837_v18, %v839_v14 }
  0x97   :  { %2449 = vrot.lane.b32.xlu0 %v5419_v17, %s5314_s30  ;;  %5106 = vmatprep.subr.msk.bf16.mxu1 %vm67_vm0, %v849_v19  ;;  %v875_v34 = vsel %vm67_vm0, %v850_v24, 0 }
  0x98   :  { %983 = vmatpush1.bf16.msra.mxu1 %v869_v20  ;;  %v843_v23 = vpop.permute.xlu1 %842 }
  0x99   :  { %v841_v27 = vpop.permute.xlu0 %840  ;;  %5110 = vmatprep.subr.msk.bf16.mxu1 %vm67_vm0, %v843_v23 }
  0x9a   :  { %v852_v30 = vsel %vm584_vm3, %v841_v27, %v843_v23  ;;  %5105 = vmatmul.mubr.msk.bf16.vlgmr.msra.gmra.mxu0 %vm63_vm1, %v5101_v61  ;;  %2455 = vrot.lane.b32.xlu1 %v5439_v22, %s5314_s30  ;;  %v851_v32 = vsel %vm584_vm3, %v839_v14, %v841_v27 }
  0x9b   :  { %2453 = vrot.lane.b32.xlu0 %v5448_v25, %s5314_s30  ;;  %5107 = vmatmul.mubr.msk.bf16.vlgmr.msra.gmra.mxu1 %vm63_vm1, %v5101_v61  ;;  %v881_v33 = vsel %vm67_vm0, %v852_v30, 0 }
  0x9c   :  { %5108 = vmatprep.subr.msk.bf16.mxu0 %vm67_vm0, %v851_v32  ;;  %1065 = vmatpush1.bf16.msra.mxu1 %v881_v33  ;;  %v1108_v35 = vpop.permute.xlu1 %1107 }
  0x9d   :  { %1024 = vmatpush1.bf16.msra.mxu0 %v875_v34  ;;  %v1106_v36 = vpop.permute.xlu0 %1105  ;;  %1041 = vmatprep.mubr.bf16.mxu0 %v5310_v1 }
  0x9e   :  { %2459 = vrot.lane.b32.xlu1 %v5455_v26, %s5314_s30  ;;  %v1125_v37 = vsel %vm1123_vm4, %v1106_v36, %v1108_v35  ;;  %1082 = vmatprep.mubr.bf16.mxu1 %v5310_v1 }
  0x9f   :  { %2457 = vrot.lane.b32.xlu0 %v5470_v29, %s5314_s30  ;;  %1160 = vmatprep.subr.bf16.mxu0 %v1125_v37 }
  0xa0   :  { %v1112_v38 = vpop.permute.xlu1 %1111 }
  0xa1   :  { %v1110_v39 = vpop.permute.xlu0 %1109 }
  0xa2   :  { %5109 = vmatmul.mubr.msk.bf16.vlgmr.msra.gmra.mxu0 %vm63_vm1, %v5101_v61  ;;  %2724 = vrot.lane.b32.xlu1 %v5374_v4, %s5315_s10  ;;  %v1127_v40 = vsel %vm1123_vm4, %v1110_v39, %v1112_v38  ;;  %v1126_v41 = vsel %vm1123_vm4, %v1108_v35, %v1110_v39 }
  0xa3   :  { %2722 = vrot.lane.b32.xlu0 %v5359_v2, %s5315_s10  ;;  %5111 = vmatmul.mubr.msk.bf16.vlgmr.msra.gmra.mxu1 %vm63_vm1, %v5101_v61 }
  0xa4   :  { %1201 = vmatprep.subr.bf16.mxu1 %v1127_v40  ;;  %v1114_v42 = vpop.permute.xlu1 %1113  ;;  %1178 = vmatprep.mubr.bf16.mxu0 %v5310_v1 }
  0xa5   :  { %1202 = vmatpush1.bf16.msra.mxu1 %v1126_v41  ;;  %v1104_v43 = vpop.permute.xlu0 %1103  ;;  %1219 = vmatprep.mubr.bf16.mxu1 %v5310_v1  ;;  %v1128_v49 = vsel %vm1123_vm4, %v1112_v38, %v1114_v42 }
  0xa6   :  { %v1124_v44 = vsel %vm1123_vm4, %v1104_v43, %v1106_v36  ;;  %2728 = vrot.lane.b32.xlu1 %v5367_v3, %s5315_s10 }
  0xa7   :  { %2726 = vrot.lane.b32.xlu0 %v5352_v0, %s5315_s10  ;;  %1161 = vmatpush1.bf16.msra.mxu0 %v1124_v44 }
  0xa8   :  { %v1118_v46 = vpop.permute.xlu1 %1117 }
  0xa9   :  { %v1116_v47 = vpop.permute.xlu0 %1115 }
  0xaa   :  { %5113 = vmatmul.mubr.msk.bf16.vlgmr.msra.gmra.mxu0 %vm353_vm2, %v5112_v45  ;;  %2730 = vrot.lane.b32.xlu1 %v5384_v6, %s5315_s10  ;;  %v1129_v48 = vsel %vm1123_vm4, %v1114_v42, %v1116_v47  ;;  %v1130_v53 = vsel %vm1123_vm4, %v1116_v47, %v1118_v46 }
  0xab   :  { %2720 = vrot.lane.b32.xlu0 %v5396_v9, %s5315_s10  ;;  %5114 = vmatmul.mubr.msk.bf16.vlgmr.msra.gmra.mxu1 %vm353_vm2, %v5112_v45 }
  0xac   :  { %1242 = vmatprep.subr.bf16.mxu0 %v1129_v48  ;;  %v1364_v50 = vpop.permute.xlu1 %1363  ;;  %1260 = vmatprep.mubr.bf16.mxu0 %v5310_v1 }
  0xad   :  { %1243 = vmatpush1.bf16.msra.mxu0 %v1128_v49  ;;  %v1120_v51 = vpop.permute.xlu0 %1119  ;;  %1301 = vmatprep.mubr.bf16.mxu1 %v5310_v1 }
  0xae   :  { %2734 = vrot.lane.b32.xlu1 %v5415_v15, %s5315_s10  ;;  %v1131_v52 = vsel %vm1123_vm4, %v1118_v46, %v1120_v51 }
  0xaf   :  { %2732 = vrot.lane.b32.xlu0 %v5437_v21, %s5315_s10  ;;  %1283 = vmatprep.subr.bf16.mxu1 %v1131_v52 }
  0xb0   :  { %1284 = vmatpush1.bf16.msra.mxu1 %v1130_v53  ;;  %v1368_v54 = vpop.permute.xlu1 %1367 }
  0xb1   :  { %v1366_v55 = vpop.permute.xlu0 %1365 }
  0xb2   :  { %v1383_v56 = vsel %vm1123_vm4, %v1364_v50, %v1366_v55  ;;  %5115 = vmatmul.mubr.msk.bf16.vlgmr.msra.gmra.mxu0 %vm353_vm2, %v5112_v45  ;;  %2980 = vrot.lane.b32.xlu1 %v5398_v10, %s5315_s10  ;;  %v1384_v57 = vsel %vm1123_vm4, %v1366_v55, %v1368_v54 }
  0xb3   :  { %2736 = vrot.lane.b32.xlu0 %v5464_v28, %s5315_s10  ;;  %5116 = vmatmul.mubr.msk.bf16.vlgmr.msra.gmra.mxu1 %vm353_vm2, %v5112_v45  ;;  %v1396_v58 = vsel %vm67_vm0, %v1383_v56, 0 }
  0xb4   :  { %5119 = vmatprep.subr.msk.bf16.mxu1 %vm67_vm0, %v1384_v57  ;;  %v1370_v59 = vpop.permute.xlu1 %1369  ;;  %1342 = vmatprep.mubr.bf16.mxu0 %v5310_v1 }
  0xb5   :  { %1440 = vmatpush1.bf16.msra.mxu1 %v1396_v58  ;;  %v1122_v60 = vpop.permute.xlu0 %1121  ;;  %1457 = vmatprep.mubr.bf16.mxu1 %v5310_v1  ;;  %v1385_v5 = vsel %vm1123_vm4, %v1368_v54, %v1370_v59 }
  0xb6   :  { %1324 = vmatprep.subr.bf16.mxu0 %v1122_v60  ;;  %2984 = vrot.lane.b32.xlu1 %v5400_v11, %s5315_s10  ;;  %v1132_v61 = vsel %vm1123_vm4, %v1120_v51, %v1122_v60  ;;  %v1402_v18 = vsel %vm67_vm0, %v1385_v5, 0 }
  0xb7   :  { %2982 = vrot.lane.b32.xlu0 %v5389_v8, %s5315_s10  ;;  %1325 = vmatpush1.bf16.msra.mxu0 %v1132_v61 }
  0xb8   :  { %v1374_v62 = vpop.permute.xlu1 %1373 }
  0xb9   :  { %v1372_v7 = vpop.permute.xlu0 %1371 }
  0xba   :  { %5117 = vmatmul.mubr.msk.bf16.vlgmr.msra.gmra.mxu0 %vm353_vm2, %v5112_v45  ;;  %2986 = vrot.lane.b32.xlu1 %v5402_v12, %s5315_s10  ;;  %v1386_v13 = vsel %vm1123_vm4, %v1370_v59, %v1372_v7  ;;  %v1387_v14 = vsel %vm1123_vm4, %v1372_v7, %v1374_v62 }
  0xbb   :  { %2738 = vrot.lane.b32.xlu0 %v5488_v31, %s5315_s10  ;;  %5120 = vmatmul.mubr.msk.bf16.vlgmr.msra.gmra.mxu1 %vm63_vm1, %v5118_v63  ;;  %v1408_v24 = vsel %vm67_vm0, %v1387_v14, 0 }
  0xbc   :  { %5121 = vmatprep.subr.msk.bf16.mxu0 %vm67_vm0, %v1386_v13  ;;  %v1378_v19 = vpop.permute.xlu1 %1377  ;;  %1498 = vmatprep.mubr.bf16.mxu0 %v5310_v1  ;;  %v5826_v13 = vld [vmem:[%s6623_s0 + $0x28] ss:$44 sps:$4 sm:$0xff]  }
  0xbd   :  { %1481 = vmatpush1.bf16.msra.mxu0 %v1402_v18  ;;  %v1376_v20 = vpop.permute.xlu0 %1375  ;;  %1539 = vmatprep.mubr.bf16.mxu1 %v5310_v1 }
  0xbe   :  { %2990 = vrot.lane.b32.xlu1 %v5417_v16, %s5315_s10  ;;  %v1388_v23 = vsel %vm1123_vm4, %v1374_v62, %v1376_v20  ;;  %v1389_v30 = vsel %vm1123_vm4, %v1376_v20, %v1378_v19 }
  0xbf   :  { %2988 = vrot.lane.b32.xlu0 %v5419_v17, %s5315_s10  ;;  %5123 = vmatprep.subr.msk.bf16.mxu1 %vm67_vm0, %v1388_v23  ;;  %v1414_v36 = vsel %vm67_vm0, %v1389_v30, 0 }
  0xc0   :  { %1522 = vmatpush1.bf16.msra.mxu1 %v1408_v24  ;;  %v1382_v27 = vpop.permute.xlu1 %1381 }
  0xc1   :  { %v1380_v32 = vpop.permute.xlu0 %1379  ;;  %5127 = vmatprep.subr.msk.bf16.mxu1 %vm67_vm0, %v1382_v27 }
  0xc2   :  { %v1391_v33 = vsel %vm1123_vm4, %v1380_v32, %v1382_v27  ;;  %5122 = vmatmul.mubr.msk.bf16.vlgmr.msra.gmra.mxu0 %vm63_vm1, %v5118_v63  ;;  %2994 = vrot.lane.b32.xlu1 %v5439_v22, %s5315_s10  ;;  %v1390_v34 = vsel %vm1123_vm4, %v1378_v19, %v1380_v32  ;;  %v5843_v32 = vld [vmem:[%s6625_s3 + $0xc] sm:$0xf] }
  0xc3   :  { %2992 = vrot.lane.b32.xlu0 %v5448_v25, %s5315_s10  ;;  %5124 = vmatmul.mubr.msk.bf16.vlgmr.msra.gmra.mxu1 %vm63_vm1, %v5118_v63  ;;  %v1420_v35 = vsel %vm67_vm0, %v1391_v33, 0 }
  0xc4   :  { %5125 = vmatprep.subr.msk.bf16.mxu0 %vm67_vm0, %v1390_v34  ;;  %1604 = vmatpush1.bf16.msra.mxu1 %v1420_v35  ;;  %v1647_v37 = vpop.permute.xlu1 %1646 }
  0xc5   :  { %1563 = vmatpush1.bf16.msra.mxu0 %v1414_v36  ;;  %v1645_v38 = vpop.permute.xlu0 %1644  ;;  %1580 = vmatprep.mubr.bf16.mxu0 %v5310_v1 }
  0xc6   :  { %2998 = vrot.lane.b32.xlu1 %v5455_v26, %s5315_s10  ;;  %v1664_v39 = vsel %vm1662_vm5, %v1645_v38, %v1647_v37  ;;  %1621 = vmatprep.mubr.bf16.mxu1 %v5310_v1 }
  0xc7   :  { %2996 = vrot.lane.b32.xlu0 %v5470_v29, %s5315_s10  ;;  %1699 = vmatprep.subr.bf16.mxu0 %v1664_v39 }
  0xc8   :  { %v1651_v40 = vpop.permute.xlu1 %1650 }
  0xc9   :  { %v1649_v41 = vpop.permute.xlu0 %1648  ;;  %v5768_v46 = vpop.f32.mrf.mxu0 }
  0xca   :  { %5126 = vmatmul.mubr.msk.bf16.vlgmr.msra.gmra.mxu0 %vm63_vm1, %v5118_v63  ;;  %3320 = vrot.lane.b32.xlu1 %v5374_v4, %s5316_s15  ;;  %v1666_v42 = vsel %vm1662_vm5, %v1649_v41, %v1651_v40  ;;  %v1665_v43 = vsel %vm1662_vm5, %v1647_v37, %v1649_v41 }
  0xcb   :  { %3318 = vrot.lane.b32.xlu0 %v5359_v2, %s5316_s15  ;;  %5128 = vmatmul.mubr.msk.bf16.vlgmr.msra.gmra.mxu1 %vm63_vm1, %v5118_v63  ;;  %v5778_v2 = vld [vmem:[%s6626_s2 + $0xc] sm:$0xf]  ;;  %v5780_v47 = vpop.f32.mrf.mxu0 }
  0xcc   :  { %1740 = vmatprep.subr.bf16.mxu1 %v1666_v42  ;;  %v1653_v44 = vpop.permute.xlu1 %1652  ;;  %1717 = vmatprep.mubr.bf16.mxu0 %v5310_v1  ;;  %v5782_v49 = vpop.f32.mrf.mxu1 }
  0xcd   :  { %1741 = vmatpush1.bf16.msra.mxu1 %v1665_v43  ;;  %v1643_v45 = vpop.permute.xlu0 %1642  ;;  %1758 = vmatprep.mubr.bf16.mxu1 %v5310_v1  ;;  %v136_v51 = vpop.f32.mrf.mxu0  ;;  %v1667_v53 = vsel %vm1662_vm5, %v1651_v40, %v1653_v44 }
  0xce   :  { %v1663_v4 = vsel %vm1662_vm5, %v1643_v45, %v1645_v38  ;;  %3324 = vrot.lane.b32.xlu1 %v5367_v3, %s5316_s15  ;;  %v5789_v3 = vpop.f32.mrf.mxu1 }
  0xcf   :  { %3322 = vrot.lane.b32.xlu0 %v5352_v0, %s5316_s15  ;;  %1700 = vmatpush1.bf16.msra.mxu0 %v1663_v4  ;;  %v137_v52 = vpop.f32.mrf.mxu0 }
  0xd0   :  { %v1657_v48 = vpop.permute.xlu1 %1656  ;;  %v177_v55 = vpop.f32.mrf.mxu1 }
  0xd1   :  { %v1655_v50 = vpop.permute.xlu0 %1654  ;;  %v5798_v56 = vpop.f32.mrf.mxu0 }
  0xd2   :  { %5130 = vmatmul.mubr.msk.bf16.vlgmr.msra.gmra.mxu0 %vm353_vm2, %v5778_v2  ;;  %3326 = vrot.lane.b32.xlu1 %v5384_v6, %s5316_s15  ;;  %v1668_v0 = vsel %vm1662_vm5, %v1653_v44, %v1655_v50  ;;  %v178_v57 = vpop.f32.mrf.mxu1  ;;  %v1669_v58 = vsel %vm1662_vm5, %v1655_v50, %v1657_v48 }
  0xd3   :  { %3316 = vrot.lane.b32.xlu0 %v5396_v9, %s5316_s15  ;;  %5131 = vmatmul.mubr.msk.bf16.vlgmr.msra.gmra.mxu1 %vm353_vm2, %v5778_v2  ;;  %v5806_v59 = vpop.f32.mrf.mxu0 }
  0xd4   :  { %1781 = vmatprep.subr.bf16.mxu0 %v1668_v0  ;;  %v1903_v54 = vpop.permute.xlu1 %1902  ;;  %1799 = vmatprep.mubr.bf16.mxu0 %v5310_v1  ;;  %v5808_v61 = vpop.f32.mrf.mxu1 }
  0xd5   :  { %1782 = vmatpush1.bf16.msra.mxu0 %v1667_v53  ;;  %v1659_v6 = vpop.permute.xlu0 %1658  ;;  %1840 = vmatprep.mubr.bf16.mxu1 %v5310_v1  ;;  %v218_v63 = vpop.f32.mrf.mxu0 }
  0xd6   :  { %3330 = vrot.lane.b32.xlu1 %v5415_v15, %s5316_s15  ;;  %v1670_v9 = vsel %vm1662_vm5, %v1657_v48, %v1659_v6 }
  0xd7   :  { %3328 = vrot.lane.b32.xlu0 %v5437_v21, %s5316_s15  ;;  %1822 = vmatprep.subr.bf16.mxu1 %v1670_v9  ;;  %v5816_v21 = vpop.f32.mrf.mxu1  ;;  %v219_v14 = vpop.f32.mrf.mxu0 }
  0xd8   :  { %1823 = vmatpush1.bf16.msra.mxu1 %v1669_v58  ;;  %v1907_v60 = vpop.permute.xlu1 %1906 }
  0xd9   :  { %v1905_v62 = vpop.permute.xlu0 %1904  ;;  %v259_v19 = vpop.f32.mrf.mxu1 }
  0xda   :  { %v1922_v5 = vsel %vm1662_vm5, %v1903_v54, %v1905_v62  ;;  %5132 = vmatmul.mubr.msk.bf16.vlgmr.msra.gmra.mxu0 %vm353_vm2, %v5778_v2  ;;  %3334 = vrot.lane.b32.xlu1 %v5488_v31, %s5316_s15  ;;  %v1923_v15 = vsel %vm1662_vm5, %v1905_v62, %v1907_v60 }
  0xdb   :  { %3332 = vrot.lane.b32.xlu0 %v5464_v28, %s5316_s15  ;;  %5133 = vmatmul.mubr.msk.bf16.vlgmr.msra.gmra.mxu1 %vm353_vm2, %v5778_v2  ;;  %v1935_v7 = vsel %vm67_vm0, %v1922_v5, 0  ;;  %v5831_v28 = vpop.f32.mrf.mxu0  ;;  %v260_v24 = vpop.f32.mrf.mxu1 }
  0xdc   :  { %5136 = vmatprep.subr.msk.bf16.mxu1 %vm67_vm0, %v1923_v15  ;;  %v1909_v18 = vpop.permute.xlu1 %1908  ;;  %1881 = vmatprep.mubr.bf16.mxu0 %v5310_v1 }
  0xdd   :  { %1979 = vmatpush1.bf16.msra.mxu1 %v1935_v7  ;;  %v1661_v20 = vpop.permute.xlu0 %1660  ;;  %1996 = vmatprep.mubr.bf16.mxu1 %v5310_v1  ;;  %v5838_v27 = vpop.f32.mrf.mxu0  ;;  %v1924_v34 = vsel %vm1662_vm5, %v1907_v60, %v1909_v18 }
  0xde   :  { %1863 = vmatprep.subr.bf16.mxu0 %v1661_v20  ;;  %3613 = vrot.lane.b32.xlu1 %v5398_v10, %s5316_s15  ;;  %v1671_v23 = vsel %vm1662_vm5, %v1659_v6, %v1661_v20  ;;  %v391_v33 = vpop.f32.mrf.mxu1  ;;  %v1941_v43 = vsel %vm67_vm0, %v1924_v34, 0 }
  0xdf   :  { %3336 = vrot.lane.b32.xlu0 %v5826_v13, %s5316_s15  ;;  %1864 = vmatpush1.bf16.msra.mxu0 %v1671_v23  ;;  %v300_v36 = vpop.f32.mrf.mxu0  ;;  %v5847_v37 = vadd.f32 %v391_v33, %v5768_v46 }
  0xe0   :  { %v1913_v30 = vpop.permute.xlu1 %1912  ;;  %v393_v39 = vpop.f32.mrf.mxu1 }
  0xe1   :  { %v1911_v35 = vpop.permute.xlu0 %1910  ;;  %v301_v40 = vpop.f32.mrf.mxu0  ;;  %v5859_v41 = vadd.f32 %v393_v39, %v5780_v47 }
  0xe2   :  { %5134 = vmatmul.mubr.msk.bf16.vlgmr.msra.gmra.mxu0 %vm353_vm2, %v5778_v2  ;;  %3617 = vrot.lane.b32.xlu1 %v5400_v11, %s5316_s15  ;;  %v1925_v38 = vsel %vm1662_vm5, %v1909_v18, %v1911_v35  ;;  %v1926_v42 = vsel %vm1662_vm5, %v1911_v35, %v1913_v30  ;;  %v395_v45 = vpop.f32.mrf.mxu1 }
  0xe3   :  { %3615 = vrot.lane.b32.xlu0 %v5389_v8, %s5316_s15  ;;  %5137 = vmatmul.mubr.msk.bf16.vlgmr.msra.gmra.mxu1 %vm63_vm1, %v5843_v32  ;;  %v432_v4 = vpop.f32.mrf.mxu0  ;;  %v1947_v50 = vsel %vm67_vm0, %v1926_v42, 0  ;;  %v5146_v45 = vld [vmem:[%s6626_s2 + $0x10] sm:$0xf] }
  0xe4   :  { %5138 = vmatprep.subr.msk.bf16.mxu0 %vm67_vm0, %v1925_v38  ;;  %v1917_v44 = vpop.permute.xlu1 %1916  ;;  %2037 = vmatprep.mubr.bf16.mxu0 %v5310_v1  ;;  %v5870_v47 = vadd.f32 %v432_v4, %v5782_v49  ;;  %v396_v48 = vpop.f32.mrf.mxu1 }
  0xe5   :  { %2020 = vmatpush1.bf16.msra.mxu0 %v1941_v43  ;;  %v1915_v46 = vpop.permute.xlu0 %1914  ;;  %2078 = vmatprep.mubr.bf16.mxu1 %v5310_v1  ;;  %v434_v51 = vpop.f32.mrf.mxu0 }
  0xe6   :  { %3621 = vrot.lane.b32.xlu1 %v5419_v17, %s5316_s15  ;;  %v1927_v2 = vsel %vm1662_vm5, %v1913_v30, %v1915_v46  ;;  %v5877_v52 = vadd.f32 %v434_v51, %v5789_v3  ;;  %v473_v53 = vpop.f32.mrf.mxu1  ;;  %v1928_v54 = vsel %vm1662_vm5, %v1915_v46, %v1917_v44 }
  0xe7   :  { %3619 = vrot.lane.b32.xlu0 %v5402_v12, %s5316_s15  ;;  %5140 = vmatprep.subr.msk.bf16.mxu1 %vm67_vm0, %v1927_v2  ;;  %v436_v49 = vpop.f32.mrf.mxu0  ;;  %v5882_v6 = vadd.f32 %v473_v53, %v5798_v56  ;;  %v1953_v62 = vsel %vm67_vm0, %v1928_v54, 0  ;;  %v5958_v2 = vld [vmem:[%s6623_s0 + $0x10] ss:$44 sps:$4 sm:$0xff]   ;;  %v5977_v54 = vld [vmem:[%s6623_s0 + $0x14] ss:$44 sps:$4 sm:$0xff]  }
  0xe8   :  { %2061 = vmatpush1.bf16.msra.mxu1 %v1947_v50  ;;  %v1921_v0 = vpop.permute.xlu1 %1920  ;;  %v475_v57 = vpop.f32.mrf.mxu1  ;;  %v5966_v50 = vld [vmem:[%s6623_s0 + $0xc] ss:$44 sps:$4 sm:$0xff]  }
  0xe9   :  { %v1919_v55 = vpop.permute.xlu0 %1918  ;;  %5144 = vmatprep.subr.msk.bf16.mxu1 %vm67_vm0, %v1921_v0  ;;  %v437_v58 = vpop.f32.mrf.mxu0  ;;  %v5896_v60 = vadd.f32 %v475_v57, %v5806_v59  ;;  %v5908_v59 = vld [vmem:[%s6624_s1 + $0x28] ss:$0 sps:$4 sm:$0xff]   ;;  %v5985_v49 = vld [vmem:[%s6623_s0] ss:$44 sps:$4 sm:$0xff]  }
  0xea   :  { %v1930_v9 = vsel %vm1662_vm5, %v1919_v55, %v1921_v0  ;;  %5139 = vmatmul.mubr.msk.bf16.vlgmr.msra.gmra.mxu0 %vm63_vm1, %v5843_v32  ;;  %3625 = vrot.lane.b32.xlu1 %v5448_v25, %s5316_s15  ;;  %v1929_v3 = vsel %vm1662_vm5, %v1917_v44, %v1919_v55  ;;  %v477_v5 = vpop.f32.mrf.mxu1  ;;  %v5940_v44 = vld [vmem:[%s6623_s0 + $0x8] ss:$44 sps:$4 sm:$0xff]  }
  0xeb   :  { %3623 = vrot.lane.b32.xlu0 %v5417_v16, %s5316_s15  ;;  %5141 = vmatmul.mubr.msk.bf16.vlgmr.msra.gmra.mxu1 %vm63_vm1, %v5843_v32  ;;  %v1959_v56 = vsel %vm67_vm0, %v1930_v9, 0  ;;  %v514_v7 = vpop.f32.mrf.mxu0  ;;  %v6004_v5 = vld [vmem:[%s6623_s0 + $0x18] ss:$44 sps:$4 sm:$0xff]  }
  0xec   :  { %5142 = vmatprep.subr.msk.bf16.mxu0 %vm67_vm0, %v1929_v3  ;;  %2143 = vmatpush1.bf16.msra.mxu1 %v1959_v56  ;;  %v2186_v63 = vpop.permute.xlu1 %2185  ;;  %v5911_v18 = vadd.f32 %v514_v7, %v5808_v61  ;;  %v478_v19 = vpop.f32.mrf.mxu1 }
  0xed   :  { %2102 = vmatpush1.bf16.msra.mxu0 %v1953_v62  ;;  %v2184_v15 = vpop.permute.xlu0 %2183  ;;  %2119 = vmatprep.mubr.bf16.mxu0 %v5310_v1  ;;  %v516_v20 = vpop.f32.mrf.mxu0  ;;  %v5996_v62 = vld [vmem:[%s6623_s0 + $0x1c] ss:$44 sps:$4 sm:$0xff]   ;;  %v6018_v19 = vld [vmem:[%s6623_s0 + $0x20] ss:$44 sps:$4 sm:$0xff]  }
  0xee   :  { %3629 = vrot.lane.b32.xlu1 %v5470_v29, %s5316_s15  ;;  %v2203_v14 = vsel %vm2201_vm6, %v2184_v15, %v2186_v63  ;;  %2160 = vmatprep.mubr.bf16.mxu1 %v5310_v1  ;;  %v5916_v24 = vadd.f32 %v516_v20, %v5816_v21  ;;  %v555_v30 = vpop.f32.mrf.mxu1 }
  0xef   :  { %3627 = vrot.lane.b32.xlu0 %v5439_v22, %s5316_s15  ;;  %2238 = vmatprep.subr.bf16.mxu0 %v2203_v14  ;;  %v5919_v34 = vadd.f32 %v555_v30, %v5831_v28  ;;  %v518_v35 = vpop.f32.mrf.mxu0 }
  0xf0   :  { %v2190_v23 = vpop.permute.xlu1 %2189  ;;  %v557_v38 = vpop.f32.mrf.mxu1 }
  0xf1   :  { %v2188_v33 = vpop.permute.xlu0 %2187  ;;  %v5932_v21 = vadd.f32 %v557_v38, %v5838_v27  ;;  %v519_v28 = vpop.f32.mrf.mxu0 }
  0xf2   :  { %5143 = vmatmul.mubr.msk.bf16.vlgmr.msra.gmra.mxu0 %vm63_vm1, %v5843_v32  ;;  %3633 = vrot.lane.b32.xlu1 %v5908_v59, %s5316_s15  ;;  %v2205_v61 = vsel %vm2201_vm6, %v2188_v33, %v2190_v23  ;;  %v2204_v36 = vsel %vm2201_vm6, %v2186_v63, %v2188_v33  ;;  %v559_v40 = vpop.f32.mrf.mxu1 }
  0xf3   :  { %3631 = vrot.lane.b32.xlu0 %v5455_v26, %s5316_s15  ;;  %5145 = vmatmul.mubr.msk.bf16.vlgmr.msra.gmra.mxu1 %vm63_vm1, %v5843_v32  ;;  %v5947_v32 = vld [vmem:[%s6623_s0 + $0x4] ss:$44 sps:$4 sm:$0xff]  }
  0xf4   :  { %2279 = vmatprep.subr.bf16.mxu1 %v2205_v61  ;;  %v2192_v39 = vpop.permute.xlu1 %2191  ;;  %2256 = vmatprep.mubr.bf16.mxu0 %v5310_v1  ;;  %v560_v27 = vpop.f32.mrf.mxu1 }
  0xf5   :  { %2280 = vmatpush1.bf16.msra.mxu1 %v2204_v36  ;;  %v2182_v42 = vpop.permute.xlu0 %2181  ;;  %2297 = vmatprep.mubr.bf16.mxu1 %v5310_v1  ;;  %v2206_v51 = vsel %vm2201_vm6, %v2190_v23, %v2192_v39  ;;  %v5152_v23 = vld [vmem:[%s6625_s3 + $0x10] sm:$0xf] }
  0xf6   :  { %v2202_v43 = vsel %vm2201_vm6, %v2182_v42, %v2184_v15  ;;  %3899 = vrot.lane.b32.xlu1 %v5940_v44, %s5317_s26 }
  0xf7   :  { %3897 = vrot.lane.b32.xlu0 %v5947_v32, %s5317_s26  ;;  %2239 = vmatpush1.bf16.msra.mxu0 %v2202_v43 }
  0xf8   :  { %v2196_v46 = vpop.permute.xlu1 %2195 }
  0xf9   :  { %v2194_v4 = vpop.permute.xlu0 %2193 }
  0xfa   :  { %5147 = vmatmul.mubr.msk.bf16.vlgmr.msra.gmra.mxu0 %vm353_vm2, %v5146_v45  ;;  %3903 = vrot.lane.b32.xlu1 %v5958_v2, %s5317_s26  ;;  %v2207_v48 = vsel %vm2201_vm6, %v2192_v39, %v2194_v4  ;;  %v2208_v9 = vsel %vm2201_vm6, %v2194_v4, %v2196_v46 }
  0xfb   :  { %3901 = vrot.lane.b32.xlu0 %v5966_v50, %s5317_s26  ;;  %5148 = vmatmul.mubr.msk.bf16.vlgmr.msra.gmra.mxu1 %vm353_vm2, %v5146_v45 }
  0xfc   :  { %2320 = vmatprep.subr.bf16.mxu0 %v2207_v48  ;;  %v2442_v0 = vpop.permute.xlu1 %2441  ;;  %2338 = vmatprep.mubr.bf16.mxu0 %v5310_v1 }
  0xfd   :  { %2321 = vmatpush1.bf16.msra.mxu0 %v2206_v51  ;;  %v2198_v53 = vpop.permute.xlu0 %2197  ;;  %2379 = vmatprep.mubr.bf16.mxu1 %v5310_v1 }
  0xfe   :  { %3905 = vrot.lane.b32.xlu1 %v5977_v54, %s5317_s26  ;;  %v2209_v55 = vsel %vm2201_vm6, %v2196_v46, %v2198_v53 }
  0xff   :  { %3895 = vrot.lane.b32.xlu0 %v5985_v49, %s5317_s26  ;;  %2361 = vmatprep.subr.bf16.mxu1 %v2209_v55 }
 0x100   :  { %2362 = vmatpush1.bf16.msra.mxu1 %v2208_v9  ;;  %v2446_v3 = vpop.permute.xlu1 %2445 }
 0x101   :  { %v2444_v57 = vpop.permute.xlu0 %2443 }
 0x102   :  { %v2461_v56 = vsel %vm2201_vm6, %v2442_v0, %v2444_v57  ;;  %v2462_v58 = vsel %vm2201_vm6, %v2444_v57, %v2446_v3  ;;  %5149 = vmatmul.mubr.msk.bf16.vlgmr.msra.gmra.mxu0 %vm353_vm2, %v5146_v45  ;;  %3909 = vrot.lane.b32.xlu1 %v5996_v62, %s5317_s26 }
 0x103   :  { %v2474_v63 = vsel %vm67_vm0, %v2461_v56, 0  ;;  %3907 = vrot.lane.b32.xlu0 %v6004_v5, %s5317_s26  ;;  %5150 = vmatmul.mubr.msk.bf16.vlgmr.msra.gmra.mxu1 %vm353_vm2, %v5146_v45 }
 0x104   :  { %5153 = vmatprep.subr.msk.bf16.mxu1 %vm67_vm0, %v2462_v58  ;;  %v2448_v15 = vpop.permute.xlu1 %2447  ;;  %2420 = vmatprep.mubr.bf16.mxu0 %v5310_v1 }
 0x105   :  { %2518 = vmatpush1.bf16.msra.mxu1 %v2474_v63  ;;  %v2200_v7 = vpop.permute.xlu0 %2199  ;;  %2535 = vmatprep.mubr.bf16.mxu1 %v5310_v1  ;;  %v2463_v30 = vsel %vm2201_vm6, %v2446_v3, %v2448_v15  ;;  %v5163_v63 = vld [vmem:[%s6626_s2 + $0x14] sm:$0xf] }
 0x106   :  { %v2210_v14 = vsel %vm2201_vm6, %v2198_v53, %v2200_v7  ;;  %2402 = vmatprep.subr.bf16.mxu0 %v2200_v7  ;;  %3913 = vrot.lane.b32.xlu1 %v5488_v31, %s5317_s26  ;;  %v2480_v31 = vsel %vm67_vm0, %v2463_v30, 0 }
 0x107   :  { %3911 = vrot.lane.b32.xlu0 %v6018_v19, %s5317_s26  ;;  %2403 = vmatpush1.bf16.msra.mxu0 %v2210_v14 }
 0x108   :  { %v2452_v20 = vpop.permute.xlu1 %2451 }
 0x109   :  { %v2450_v33 = vpop.permute.xlu0 %2449 }
 0x10a   :  { %v2464_v35 = vsel %vm2201_vm6, %v2448_v15, %v2450_v33  ;;  %5151 = vmatmul.mubr.msk.bf16.vlgmr.msra.gmra.mxu0 %vm353_vm2, %v5146_v45  ;;  %4158 = vrot.lane.b32.xlu1 %v5398_v10, %s5317_s26  ;;  %v2465_v61 = vsel %vm2201_vm6, %v2450_v33, %v2452_v20 }
 0x10b   :  { %3915 = vrot.lane.b32.xlu0 %v5826_v13, %s5317_s26  ;;  %5154 = vmatmul.mubr.msk.bf16.vlgmr.msra.gmra.mxu1 %vm63_vm1, %v5152_v23  ;;  %v2486_v39 = vsel %vm67_vm0, %v2465_v61, 0 }
 0x10c   :  { %5155 = vmatprep.subr.msk.bf16.mxu0 %vm67_vm0, %v2464_v35  ;;  %v2456_v36 = vpop.permute.xlu1 %2455  ;;  %2576 = vmatprep.mubr.bf16.mxu0 %v5310_v1 }
 0x10d   :  { %2559 = vmatpush1.bf16.msra.mxu0 %v2480_v31  ;;  %v2454_v38 = vpop.permute.xlu0 %2453  ;;  %2617 = vmatprep.mubr.bf16.mxu1 %v5310_v1 }
 0x10e   :  { %v2466_v28 = vsel %vm2201_vm6, %v2452_v20, %v2454_v38  ;;  %4162 = vrot.lane.b32.xlu1 %v5400_v11, %s5317_s26  ;;  %v2467_v42 = vsel %vm2201_vm6, %v2454_v38, %v2456_v36 }
 0x10f   :  { %4160 = vrot.lane.b32.xlu0 %v5389_v8, %s5317_s26  ;;  %5157 = vmatprep.subr.msk.bf16.mxu1 %vm67_vm0, %v2466_v28  ;;  %v2492_v4 = vsel %vm67_vm0, %v2467_v42, 0 }
 0x110   :  { %2600 = vmatpush1.bf16.msra.mxu1 %v2486_v39  ;;  %v2460_v40 = vpop.permute.xlu1 %2459 }
 0x111   :  { %v2458_v43 = vpop.permute.xlu0 %2457  ;;  %5161 = vmatprep.subr.msk.bf16.mxu1 %vm67_vm0, %v2460_v40 }
 0x112   :  { %v2468_v27 = vsel %vm2201_vm6, %v2456_v36, %v2458_v43  ;;  %v2469_v45 = vsel %vm2201_vm6, %v2458_v43, %v2460_v40  ;;  %5156 = vmatmul.mubr.msk.bf16.vlgmr.msra.gmra.mxu0 %vm63_vm1, %v5152_v23  ;;  %4166 = vrot.lane.b32.xlu1 %v5419_v17, %s5317_s26 }
 0x113   :  { %v2498_v46 = vsel %vm67_vm0, %v2469_v45, 0  ;;  %4164 = vrot.lane.b32.xlu0 %v5402_v12, %s5317_s26  ;;  %5158 = vmatmul.mubr.msk.bf16.vlgmr.msra.gmra.mxu1 %vm63_vm1, %v5152_v23 }
 0x114   :  { %5159 = vmatprep.subr.msk.bf16.mxu0 %vm67_vm0, %v2468_v27  ;;  %2682 = vmatpush1.bf16.msra.mxu1 %v2498_v46  ;;  %v2725_v48 = vpop.permute.xlu1 %2724 }
 0x115   :  { %2641 = vmatpush1.bf16.msra.mxu0 %v2492_v4  ;;  %v2723_v51 = vpop.permute.xlu0 %2722  ;;  %2658 = vmatprep.mubr.bf16.mxu0 %v5310_v1 }
 0x116   :  { %4170 = vrot.lane.b32.xlu1 %v5448_v25, %s5317_s26  ;;  %v2742_v0 = vsel %vm2740_vm7, %v2723_v51, %v2725_v48  ;;  %2699 = vmatprep.mubr.bf16.mxu1 %v5310_v1 }
 0x117   :  { %4168 = vrot.lane.b32.xlu0 %v5417_v16, %s5317_s26  ;;  %2777 = vmatprep.subr.bf16.mxu0 %v2742_v0 }
 0x118   :  { %v2729_v53 = vpop.permute.xlu1 %2728 }
 0x119   :  { %v2727_v55 = vpop.permute.xlu0 %2726 }
 0x11a   :  { %v2743_v9 = vsel %vm2740_vm7, %v2725_v48, %v2727_v55  ;;  %5160 = vmatmul.mubr.msk.bf16.vlgmr.msra.gmra.mxu0 %vm63_vm1, %v5152_v23  ;;  %4174 = vrot.lane.b32.xlu1 %v5470_v29, %s5317_s26  ;;  %v2744_v3 = vsel %vm2740_vm7, %v2727_v55, %v2729_v53 }
 0x11b   :  { %4172 = vrot.lane.b32.xlu0 %v5439_v22, %s5317_s26  ;;  %5162 = vmatmul.mubr.msk.bf16.vlgmr.msra.gmra.mxu1 %vm63_vm1, %v5152_v23 }
 0x11c   :  { %2818 = vmatprep.subr.bf16.mxu1 %v2744_v3  ;;  %v2731_v57 = vpop.permute.xlu1 %2730  ;;  %2795 = vmatprep.mubr.bf16.mxu0 %v5310_v1 }
 0x11d   :  { %2819 = vmatpush1.bf16.msra.mxu1 %v2743_v9  ;;  %v2721_v56 = vpop.permute.xlu0 %2720  ;;  %2836 = vmatprep.mubr.bf16.mxu1 %v5310_v1  ;;  %v2745_v20 = vsel %vm2740_vm7, %v2729_v53, %v2731_v57 }
 0x11e   :  { %v2741_v58 = vsel %vm2740_vm7, %v2721_v56, %v2723_v51  ;;  %4178 = vrot.lane.b32.xlu1 %v5908_v59, %s5317_s26 }
 0x11f   :  { %4176 = vrot.lane.b32.xlu0 %v5455_v26, %s5317_s26  ;;  %2778 = vmatpush1.bf16.msra.mxu0 %v2741_v58 }
 0x120   :  { %v2735_v15 = vpop.permute.xlu1 %2734 }
 0x121   :  { %v2733_v7 = vpop.permute.xlu0 %2732 }
 0x122   :  { %5164 = vmatmul.mubr.msk.bf16.vlgmr.msra.gmra.mxu0 %vm353_vm2, %v5163_v63  ;;  %4444 = vrot.lane.b32.xlu1 %v5940_v44, %s5318_s24  ;;  %v2746_v14 = vsel %vm2740_vm7, %v2731_v57, %v2733_v7  ;;  %v2747_v33 = vsel %vm2740_vm7, %v2733_v7, %v2735_v15 }
 0x123   :  { %4442 = vrot.lane.b32.xlu0 %v5947_v32, %s5318_s24  ;;  %5165 = vmatmul.mubr.msk.bf16.vlgmr.msra.gmra.mxu1 %vm353_vm2, %v5163_v63 }
 0x124   :  { %2859 = vmatprep.subr.bf16.mxu0 %v2746_v14  ;;  %v2981_v23 = vpop.permute.xlu1 %2980  ;;  %2877 = vmatprep.mubr.bf16.mxu0 %v5310_v1 }
 0x125   :  { %2860 = vmatpush1.bf16.msra.mxu0 %v2745_v20  ;;  %v2737_v30 = vpop.permute.xlu0 %2736  ;;  %2918 = vmatprep.mubr.bf16.mxu1 %v5310_v1 }
 0x126   :  { %4448 = vrot.lane.b32.xlu1 %v5958_v2, %s5318_s24  ;;  %v2748_v44 = vsel %vm2740_vm7, %v2735_v15, %v2737_v30 }
 0x127   :  { %4446 = vrot.lane.b32.xlu0 %v5966_v50, %s5318_s24  ;;  %2900 = vmatprep.subr.bf16.mxu1 %v2748_v44 }
 0x128   :  { %2901 = vmatpush1.bf16.msra.mxu1 %v2747_v33  ;;  %v2985_v32 = vpop.permute.xlu1 %2984 }
 0x129   :  { %v2983_v35 = vpop.permute.xlu0 %2982 }
 0x12a   :  { %v3000_v31 = vsel %vm2740_vm7, %v2981_v23, %v2983_v35  ;;  %v3001_v61 = vsel %vm2740_vm7, %v2983_v35, %v2985_v32  ;;  %5166 = vmatmul.mubr.msk.bf16.vlgmr.msra.gmra.mxu0 %vm353_vm2, %v5163_v63  ;;  %4450 = vrot.lane.b32.xlu1 %v5977_v54, %s5318_s24 }
 0x12b   :  { %v3013_v2 = vsel %vm67_vm0, %v3000_v31, 0  ;;  %4440 = vrot.lane.b32.xlu0 %v5985_v49, %s5318_s24  ;;  %5167 = vmatmul.mubr.msk.bf16.vlgmr.msra.gmra.mxu1 %vm353_vm2, %v5163_v63  ;;  %v5169_v49 = vld [vmem:[%s6625_s3 + $0x14] sm:$0xf] }
 0x12c   :  { %5170 = vmatprep.subr.msk.bf16.mxu1 %vm67_vm0, %v3001_v61  ;;  %v2987_v50 = vpop.permute.xlu1 %2986  ;;  %2959 = vmatprep.mubr.bf16.mxu0 %v5310_v1 }
 0x12d   :  { %3057 = vmatpush1.bf16.msra.mxu1 %v3013_v2  ;;  %v2739_v36 = vpop.permute.xlu0 %2738  ;;  %3074 = vmatprep.mubr.bf16.mxu1 %v5310_v1  ;;  %v3002_v28 = vsel %vm2740_vm7, %v2985_v32, %v2987_v50 }
 0x12e   :  { %v2749_v38 = vsel %vm2740_vm7, %v2737_v30, %v2739_v36  ;;  %2941 = vmatprep.subr.bf16.mxu0 %v2739_v36  ;;  %4454 = vrot.lane.b32.xlu1 %v5996_v62, %s5318_s24  ;;  %v5309_v62 = vld [vmem:[%s6623_s0 + $0x24] ss:$44 sps:$4 sm:$0xff]  }
 0x12f   :  { %4452 = vrot.lane.b32.xlu0 %v6004_v5, %s5318_s24  ;;  %2942 = vmatpush1.bf16.msra.mxu0 %v2749_v38  ;;  %v3019_v5 = vsel %vm67_vm0, %v3002_v28, 0 }
 0x130   :  { %v2991_v54 = vpop.permute.xlu1 %2990 }
 0x131   :  { %v2989_v39 = vpop.permute.xlu0 %2988 }
 0x132   :  { %v3003_v40 = vsel %vm2740_vm7, %v2987_v50, %v2989_v39  ;;  %5168 = vmatmul.mubr.msk.bf16.vlgmr.msra.gmra.mxu0 %vm353_vm2, %v5163_v63  ;;  %4458 = vrot.lane.b32.xlu1 %v5309_v62, %s5318_s24  ;;  %v3004_v42 = vsel %vm2740_vm7, %v2989_v39, %v2991_v54 }
 0x133   :  { %4456 = vrot.lane.b32.xlu0 %v6018_v19, %s5318_s24  ;;  %5171 = vmatmul.mubr.msk.bf16.vlgmr.msra.gmra.mxu1 %vm63_vm1, %v5169_v49  ;;  %v3025_v19 = vsel %vm67_vm0, %v3004_v42, 0 }
 0x134   :  { %5172 = vmatprep.subr.msk.bf16.mxu0 %vm67_vm0, %v3003_v40  ;;  %v2995_v43 = vpop.permute.xlu1 %2994  ;;  %3115 = vmatprep.mubr.bf16.mxu0 %v5310_v1 }
 0x135   :  { %3098 = vmatpush1.bf16.msra.mxu0 %v3019_v5  ;;  %v2993_v27 = vpop.permute.xlu0 %2992  ;;  %3156 = vmatprep.mubr.bf16.mxu1 %v5310_v1 }
 0x136   :  { %v3005_v45 = vsel %vm2740_vm7, %v2991_v54, %v2993_v27  ;;  %4703 = vrot.lane.b32.xlu1 %v5398_v10, %s5318_s24  ;;  %v3006_v4 = vsel %vm2740_vm7, %v2993_v27, %v2995_v43 }
 0x137   :  { %4460 = vrot.lane.b32.xlu0 %v5826_v13, %s5318_s24  ;;  %5174 = vmatprep.subr.msk.bf16.mxu1 %vm67_vm0, %v3005_v45  ;;  %v3031_v13 = vsel %vm67_vm0, %v3006_v4, 0 }
 0x138   :  { %3139 = vmatpush1.bf16.msra.mxu1 %v3025_v19  ;;  %v2999_v46 = vpop.permute.xlu1 %2998 }
 0x139   :  { %v2997_v48 = vpop.permute.xlu0 %2996  ;;  %5178 = vmatprep.subr.msk.bf16.mxu1 %vm67_vm0, %v2999_v46 }
 0x13a   :  { %v3007_v51 = vsel %vm2740_vm7, %v2995_v43, %v2997_v48  ;;  %v3008_v0 = vsel %vm2740_vm7, %v2997_v48, %v2999_v46  ;;  %5173 = vmatmul.mubr.msk.bf16.vlgmr.msra.gmra.mxu0 %vm63_vm1, %v5169_v49  ;;  %4707 = vrot.lane.b32.xlu1 %v5400_v11, %s5318_s24 }
 0x13b   :  { %v3037_v10 = vsel %vm67_vm0, %v3008_v0, 0  ;;  %4705 = vrot.lane.b32.xlu0 %v5389_v8, %s5318_s24  ;;  %5175 = vmatmul.mubr.msk.bf16.vlgmr.msra.gmra.mxu1 %vm63_vm1, %v5169_v49 }
 0x13c   :  { %5176 = vmatprep.subr.msk.bf16.mxu0 %vm67_vm0, %v3007_v51  ;;  %3221 = vmatpush1.bf16.msra.mxu1 %v3037_v10  ;;  %v3321_v53 = vpop.permute.xlu1 %3320 }
 0x13d   :  { %3180 = vmatpush1.bf16.msra.mxu0 %v3031_v13  ;;  %v3319_v55 = vpop.permute.xlu0 %3318  ;;  %3197 = vmatprep.mubr.bf16.mxu0 %v5310_v1 }
 0x13e   :  { %4711 = vrot.lane.b32.xlu1 %v5419_v17, %s5318_s24  ;;  %v3340_v11 = vsel %vm3338_vm8, %v3319_v55, %v3321_v53  ;;  %3238 = vmatprep.mubr.bf16.mxu1 %v5310_v1 }
 0x13f   :  { %4709 = vrot.lane.b32.xlu0 %v5402_v12, %s5318_s24  ;;  %3376 = vmatprep.subr.bf16.mxu0 %v3340_v11 }
 0x140   :  { %v682_v8 = vpop.f32.mrf.mxu1  ;;  %v3325_v9 = vpop.permute.xlu1 %3324 }
 0x141   :  { %v6162_v3 = vadd.f32 %v682_v8, %v5870_v47  ;;  %v3323_v57 = vpop.permute.xlu0 %3322 }
 0x142   :  { %v3341_v56 = vsel %vm3338_vm8, %v3321_v53, %v3323_v57  ;;  %v684_v58 = vpop.f32.mrf.mxu1  ;;  %v641_v63 = vpop.f32.mrf.mxu0  ;;  %5177 = vmatmul.mubr.msk.bf16.vlgmr.msra.gmra.mxu0 %vm63_vm1, %v5169_v49  ;;  %4715 = vrot.lane.b32.xlu1 %v5448_v25, %s5318_s24  ;;  %v3342_v17 = vsel %vm3338_vm8, %v3323_v57, %v3325_v9 }
 0x143   :  { %v6170_v12 = vadd.f32 %v684_v58, %v5877_v52  ;;  %v812_v15 = vadd.f32 %v641_v63, %v5847_v37  ;;  %4713 = vrot.lane.b32.xlu0 %v5417_v16, %s5318_s24  ;;  %5179 = vmatmul.mubr.msk.bf16.vlgmr.msra.gmra.mxu1 %vm63_vm1, %v5169_v49 }
 0x144   :  { %3417 = vmatprep.subr.bf16.mxu1 %v3342_v17  ;;  %v643_v47 = vpop.f32.mrf.mxu0  ;;  %v3327_v7 = vpop.permute.xlu1 %3326  ;;  %3394 = vmatprep.mubr.bf16.mxu0 %v5310_v1 }
 0x145   :  { %v6178_v14 = vadd.f32 %v643_v47, %v5859_v41  ;;  %3418 = vmatpush1.bf16.msra.mxu1 %v3341_v56  ;;  %v3317_v25 = vpop.permute.xlu0 %3316  ;;  %v686_v20 = vpop.f32.mrf.mxu1  ;;  %3435 = vmatprep.mubr.bf16.mxu1 %v5310_v1  ;;  %v6189_v41 = vld [vmem:[%s6626_s2 + $0x18] sm:$0xf]  ;;  %v3343_v35 = vsel %vm3338_vm8, %v3325_v9, %v3327_v7 }
 0x146   :  { %v3339_v37 = vsel %vm3338_vm8, %v3317_v25, %v3319_v55  ;;  %v645_v52 = vpop.f32.mrf.mxu0  ;;  %4719 = vrot.lane.b32.xlu1 %v5470_v29, %s5318_s24  ;;  %v6243_v55 = vld [vmem:[%s6625_s3 + $0x18] sm:$0xf] }
 0x147   :  { %4717 = vrot.lane.b32.xlu0 %v5439_v22, %s5318_s24  ;;  %3377 = vmatpush1.bf16.msra.mxu0 %v3339_v37  ;;  %v687_v16 = vpop.f32.mrf.mxu1 }
 0x148   :  { %v646_v23 = vpop.f32.mrf.mxu0  ;;  %v3331_v30 = vpop.permute.xlu1 %3330 }
 0x149   :  { %v3329_v44 = vpop.permute.xlu0 %3328 }
 0x14a   :  { %v723_v33 = vpop.f32.mrf.mxu0  ;;  %5192 = vmatmul.mubr.msk.bf16.vlgmr.msra.gmra.mxu0 %vm353_vm2, %v6189_v41  ;;  %4723 = vrot.lane.b32.xlu1 %v5908_v59, %s5318_s24  ;;  %v3344_v29 = vsel %vm3338_vm8, %v3327_v7, %v3329_v44  ;;  %v3345_v38 = vsel %vm3338_vm8, %v3329_v44, %v3331_v30 }
 0x14b   :  { %v6197_v22 = vadd.f32 %v723_v33, %v5882_v6  ;;  %4721 = vrot.lane.b32.xlu0 %v5455_v26, %s5318_s24  ;;  %v764_v32 = vpop.f32.mrf.mxu1  ;;  %5193 = vmatmul.mubr.msk.bf16.vlgmr.msra.gmra.mxu1 %vm353_vm2, %v6189_v41 }
 0x14c   :  { %v6205_v31 = vadd.f32 %v764_v32, %v5911_v18  ;;  %3458 = vmatprep.subr.bf16.mxu0 %v3344_v29  ;;  %v725_v61 = vpop.f32.mrf.mxu0  ;;  %v3335_v59 = vpop.permute.xlu1 %3334  ;;  %3476 = vmatprep.mubr.bf16.mxu0 %v5310_v1 }
 0x14d   :  { %v6209_v6 = vadd.f32 %v725_v61, %v5896_v60  ;;  %3459 = vmatpush1.bf16.msra.mxu0 %v3343_v35  ;;  %v3333_v2 = vpop.permute.xlu0 %3332  ;;  %v766_v26 = vpop.f32.mrf.mxu1  ;;  %3517 = vmatprep.mubr.bf16.mxu1 %v5310_v1 }
 0x14e   :  { %v6213_v50 = vadd.f32 %v766_v26, %v5916_v24  ;;  %v727_v36 = vpop.f32.mrf.mxu0  ;;  %v3346_v18 = vsel %vm3338_vm8, %v3331_v30, %v3333_v2  ;;  %v3347_v24 = vsel %vm3338_vm8, %v3333_v2, %v3335_v59 }
 0x14f   :  { %v768_v54 = vpop.f32.mrf.mxu1  ;;  %3499 = vmatprep.subr.bf16.mxu1 %v3346_v18 }
 0x150   :  { %v728_v49 = vpop.f32.mrf.mxu0  ;;  %3500 = vmatpush1.bf16.msra.mxu1 %v3345_v38  ;;  %v3614_v28 = vpop.permute.xlu1 %3613 }
 0x151   :  { %v3337_v60 = vpop.permute.xlu0 %3336  ;;  %v769_v39 = vpop.f32.mrf.mxu1 }
 0x152   :  { %v805_v40 = vpop.f32.mrf.mxu0  ;;  %5194 = vmatmul.mubr.msk.bf16.vlgmr.msra.gmra.mxu0 %vm353_vm2, %v6189_v41  ;;  %v3348_v62 = vsel %vm3338_vm8, %v3335_v59, %v3337_v60 }
 0x153   :  { %v6222_v5 = vadd.f32 %v805_v40, %v5919_v34  ;;  %v920_v42 = vpop.f32.mrf.mxu1  ;;  %5195 = vmatmul.mubr.msk.bf16.vlgmr.msra.gmra.mxu1 %vm353_vm2, %v6189_v41  ;;  %3540 = vmatprep.subr.bf16.mxu0 %v3348_v62 }
 0x154   :  { %v6226_v43 = vadd.f32 %v920_v42, %v812_v15  ;;  %v807_v27 = vpop.f32.mrf.mxu0  ;;  %3541 = vmatpush1.bf16.msra.mxu0 %v3347_v24  ;;  %v3618_v45 = vpop.permute.xlu1 %3617  ;;  %3558 = vmatprep.mubr.bf16.mxu0 %v5310_v1 }
 0x155   :  { %v6230_v19 = vadd.f32 %v807_v27, %v5932_v21  ;;  %v3616_v46 = vpop.permute.xlu0 %3615  ;;  %v922_v4 = vpop.f32.mrf.mxu1  ;;  %3710 = vmatprep.mubr.bf16.mxu1 %v5310_v1 }
 0x156   :  { %v3635_v34 = vsel %vm3338_vm8, %v3614_v28, %v3616_v46  ;;  %v3636_v48 = vsel %vm3338_vm8, %v3616_v46, %v3618_v45  ;;  %v6236_v51 = vadd.f32 %v922_v4, %v6178_v14  ;;  %v809_v0 = vpop.f32.mrf.mxu0 }
 0x157   :  { %v3649_v10 = vsel %vm67_vm0, %v3635_v34, 0  ;;  %v924_v13 = vpop.f32.mrf.mxu1  ;;  %5209 = vmatprep.subr.msk.bf16.mxu1 %vm67_vm0, %v3636_v48 }
 0x158   :  { %v810_v53 = vpop.f32.mrf.mxu0  ;;  %3693 = vmatpush1.bf16.msra.mxu1 %v3649_v10  ;;  %v3622_v21 = vpop.permute.xlu1 %3621 }
 0x159   :  { %v3620_v11 = vpop.permute.xlu0 %3619  ;;  %v925_v8 = vpop.f32.mrf.mxu1 }
 0x15a   :  { %v3637_v9 = vsel %vm3338_vm8, %v3618_v45, %v3620_v11  ;;  %v3638_v57 = vsel %vm3338_vm8, %v3620_v11, %v3622_v21  ;;  %v961_v56 = vpop.f32.mrf.mxu0  ;;  %5196 = vmatmul.mubr.msk.bf16.vlgmr.msra.gmra.mxu0 %vm353_vm2, %v6189_v41  ;;  %v6313_v8 = vld [vmem:[%s6626_s2 + $0x1c] sm:$0xf] }
 0x15b   :  { %v3655_v58 = vsel %vm67_vm0, %v3637_v9, 0  ;;  %v6251_v63 = vadd.f32 %v961_v56, %v6162_v3  ;;  %v1002_v17 = vpop.f32.mrf.mxu1  ;;  %5210 = vmatmul.mubr.msk.bf16.vlgmr.msra.gmra.mxu1 %vm63_vm1, %v6243_v55  ;;  %5211 = vmatprep.subr.msk.bf16.mxu0 %vm67_vm0, %v3638_v57 }
 0x15c   :  { %v6257_v15 = vadd.f32 %v1002_v17, %v6197_v22  ;;  %v963_v47 = vpop.f32.mrf.mxu0  ;;  %3734 = vmatpush1.bf16.msra.mxu0 %v3655_v58  ;;  %v3626_v7 = vpop.permute.xlu1 %3625  ;;  %3751 = vmatprep.mubr.bf16.mxu0 %v5310_v1 }
 0x15d   :  { %v6261_v14 = vadd.f32 %v963_v47, %v6170_v12  ;;  %v3624_v25 = vpop.permute.xlu0 %3623  ;;  %v1004_v3 = vpop.f32.mrf.mxu1  ;;  %3792 = vmatprep.mubr.bf16.mxu1 %v5310_v1 }
 0x15e   :  { %v3639_v20 = vsel %vm3338_vm8, %v3622_v21, %v3624_v25  ;;  %v3640_v37 = vsel %vm3338_vm8, %v3624_v25, %v3626_v7  ;;  %v6267_v52 = vadd.f32 %v1004_v3, %v6209_v6  ;;  %v965_v16 = vpop.f32.mrf.mxu0 }
 0x15f   :  { %v3661_v41 = vsel %vm67_vm0, %v3639_v20, 0  ;;  %v1006_v23 = vpop.f32.mrf.mxu1  ;;  %5213 = vmatprep.subr.msk.bf16.mxu1 %vm67_vm0, %v3640_v37 }
 0x160   :  { %v966_v30 = vpop.f32.mrf.mxu0  ;;  %3775 = vmatpush1.bf16.msra.mxu1 %v3661_v41  ;;  %v3630_v12 = vpop.permute.xlu1 %3629 }
 0x161   :  { %v3628_v44 = vpop.permute.xlu0 %3627  ;;  %v1007_v33 = vpop.f32.mrf.mxu1 }
 0x162   :  { %v3641_v29 = vsel %vm3338_vm8, %v3626_v7, %v3628_v44  ;;  %v3642_v22 = vsel %vm3338_vm8, %v3628_v44, %v3630_v12  ;;  %v1043_v32 = vpop.f32.mrf.mxu0  ;;  %5212 = vmatmul.mubr.msk.bf16.vlgmr.msra.gmra.mxu0 %vm63_vm1, %v6243_v55 }
 0x163   :  { %v3667_v35 = vsel %vm67_vm0, %v3641_v29, 0  ;;  %v1097_v61 = vadd.f32 %v1043_v32, %v6205_v31  ;;  %v1084_v59 = vpop.f32.mrf.mxu1  ;;  %5214 = vmatmul.mubr.msk.bf16.vlgmr.msra.gmra.mxu1 %vm63_vm1, %v6243_v55  ;;  %5215 = vmatprep.subr.msk.bf16.mxu0 %vm67_vm0, %v3642_v22  ;;  %v4983_v29 = vld [vmem:[%s6627_s4] sm:$0xff] }
 0x164   :  { %v6281_v6 = vadd.f32 %v1084_v59, %v6222_v5  ;;  %v1045_v2 = vpop.f32.mrf.mxu0  ;;  %3816 = vmatpush1.bf16.msra.mxu0 %v3667_v35  ;;  %v3634_v26 = vpop.permute.xlu1 %3633  ;;  %3833 = vmatprep.mubr.bf16.mxu0 %v5310_v1 }
 0x165   :  { %v1098_v36 = vadd.f32 %v1045_v2, %v6213_v50  ;;  %v3632_v18 = vpop.permute.xlu0 %3631  ;;  %v1086_v38 = vpop.f32.mrf.mxu1  ;;  %3874 = vmatprep.mubr.bf16.mxu1 %v5310_v1  ;;  %4986 = vperm.xlu0 %5272, %v4983_v29  }
 0x166   :  { %v3643_v31 = vsel %vm3338_vm8, %v3630_v12, %v3632_v18  ;;  %v3644_v54 = vsel %vm3338_vm8, %v3632_v18, %v3634_v26  ;;  %v6289_v49 = vadd.f32 %v1086_v38, %v6230_v19  ;;  %v1047_v28 = vpop.f32.mrf.mxu0 }
 0x167   :  { %v3673_v60 = vsel %vm67_vm0, %v3643_v31, 0  ;;  %v1088_v39 = vpop.f32.mrf.mxu1  ;;  %5217 = vmatprep.subr.msk.bf16.mxu1 %vm67_vm0, %v3644_v54 }
 0x168   :  { %v1048_v40 = vpop.f32.mrf.mxu0  ;;  %3857 = vmatpush1.bf16.msra.mxu1 %v3673_v60  ;;  %v3900_v50 = vpop.permute.xlu1 %3899 }
 0x169   :  { %v3898_v62 = vpop.permute.xlu0 %3897  ;;  %v1089_v24 = vpop.f32.mrf.mxu1 }
 0x16a   :  { %v1180_v5 = vpop.f32.mrf.mxu0  ;;  %5216 = vmatmul.mubr.msk.bf16.vlgmr.msra.gmra.mxu0 %vm63_vm1, %v6243_v55  ;;  %v3919_v42 = vsel %vm3917_vm9, %v3898_v62, %v3900_v50 }
 0x16b   :  { %v1351_v27 = vadd.f32 %v1180_v5, %v6226_v43  ;;  %v1221_v45 = vpop.f32.mrf.mxu1  ;;  %5218 = vmatmul.mubr.msk.bf16.vlgmr.msra.gmra.mxu1 %vm63_vm1, %v6243_v55  ;;  %3955 = vmatprep.subr.bf16.mxu0 %v3919_v42 }
 0x16c   :  { %v6300_v19 = vadd.f32 %v1221_v45, %v6251_v63  ;;  %v1182_v46 = vpop.f32.mrf.mxu0  ;;  %v3904_v4 = vpop.permute.xlu1 %3903  ;;  %4014 = vmatprep.mubr.bf16.mxu1 %v5310_v1  ;;  %3973 = vmatprep.mubr.bf16.mxu0 %v5310_v1 }
 0x16d   :  { %v1352_v34 = vadd.f32 %v1182_v46, %v6236_v51  ;;  %v3902_v48 = vpop.permute.xlu0 %3901  ;;  %v1223_v0 = vpop.f32.mrf.mxu1 }
 0x16e   :  { %v3920_v43 = vsel %vm3917_vm9, %v3900_v50, %v3902_v48  ;;  %v6307_v10 = vadd.f32 %v1223_v0, %v6261_v14  ;;  %v1184_v13 = vpop.f32.mrf.mxu0  ;;  %v3921_v53 = vsel %vm3917_vm9, %v3902_v48, %v3904_v4 }
 0x16f   :  { %v1225_v21 = vpop.f32.mrf.mxu1  ;;  %3996 = vmatprep.subr.bf16.mxu1 %v3921_v53 }
 0x170   :  { %v1185_v55 = vpop.f32.mrf.mxu0  ;;  %3997 = vmatpush1.bf16.msra.mxu1 %v3920_v43  ;;  %v3906_v11 = vpop.permute.xlu1 %3905 }
 0x171   :  { %v3896_v51 = vpop.permute.xlu0 %3895  ;;  %v1226_v9 = vpop.f32.mrf.mxu1  ;;  %v3922_v16 = vsel %vm3917_vm9, %v3904_v4, %v3906_v11 }
 0x172   :  { %v3918_v57 = vsel %vm3917_vm9, %v3896_v51, %v3898_v62  ;;  %v1262_v56 = vpop.f32.mrf.mxu0 }
 0x173   :  { %v1355_v58 = vadd.f32 %v1262_v56, %v6257_v15  ;;  %v1303_v63 = vpop.f32.mrf.mxu1  ;;  %3956 = vmatpush1.bf16.msra.mxu0 %v3918_v57  ;;  %5221 = vmatmul.mubr.msk.bf16.vlgmr.msra.gmra.mxu1 %vm353_vm2, %v6313_v8 }
 0x174   :  { %v6319_v17 = vadd.f32 %v1303_v63, %v1097_v61  ;;  %v1264_v47 = vpop.f32.mrf.mxu0  ;;  %v3910_v7 = vpop.permute.xlu1 %3909  ;;  %4096 = vmatprep.mubr.bf16.mxu1 %v5310_v1 }
 0x175   :  { %v6323_v14 = vadd.f32 %v1264_v47, %v6267_v52  ;;  %v3908_v25 = vpop.permute.xlu0 %3907  ;;  %v1305_v3 = vpop.f32.mrf.mxu1 }
 0x176   :  { %v6325_v20 = vadd.f32 %v1305_v3, %v1098_v36  ;;  %v1266_v37 = vpop.f32.mrf.mxu0  ;;  %5220 = vmatmul.mubr.msk.bf16.vlgmr.msra.gmra.mxu0 %vm353_vm2, %v6313_v8  ;;  %v3923_v15 = vsel %vm3917_vm9, %v3906_v11, %v3908_v25  ;;  %v3924_v22 = vsel %vm3917_vm9, %v3908_v25, %v3910_v7 }
 0x177   :  { %v1307_v41 = vpop.f32.mrf.mxu1  ;;  %4037 = vmatprep.subr.bf16.mxu0 %v3923_v15  ;;  %4055 = vmatprep.mubr.bf16.mxu0 %v5310_v1 }
 0x178   :  { %v1267_v23 = vpop.f32.mrf.mxu0  ;;  %4038 = vmatpush1.bf16.msra.mxu0 %v3922_v16  ;;  %v3914_v52 = vpop.permute.xlu1 %3913 }
 0x179   :  { %v3912_v30 = vpop.permute.xlu0 %3911  ;;  %v1308_v12 = vpop.f32.mrf.mxu1 }
 0x17a   :  { %v1344_v44 = vpop.f32.mrf.mxu0  ;;  %v3925_v33 = vsel %vm3917_vm9, %v3910_v7, %v3912_v30  ;;  %v3926_v54 = vsel %vm3917_vm9, %v3912_v30, %v3914_v52 }
 0x17b   :  { %v6338_v32 = vadd.f32 %v1344_v44, %v6281_v6  ;;  %v1459_v35 = vpop.f32.mrf.mxu1  ;;  %4078 = vmatprep.subr.bf16.mxu1 %v3925_v33 }
 0x17c   :  { %v6340_v61 = vadd.f32 %v1459_v35, %v1351_v27  ;;  %v1346_v59 = vpop.f32.mrf.mxu0  ;;  %4079 = vmatpush1.bf16.msra.mxu1 %v3924_v22  ;;  %v4159_v2 = vpop.permute.xlu1 %4158 }
 0x17d   :  { %v6343_v26 = vadd.f32 %v1346_v59, %v6289_v49  ;;  %v3916_v36 = vpop.permute.xlu0 %3915  ;;  %v1461_v18 = vpop.f32.mrf.mxu1 }
 0x17e   :  { %v6345_v38 = vadd.f32 %v1461_v18, %v1352_v34  ;;  %v1348_v31 = vpop.f32.mrf.mxu0  ;;  %5222 = vmatmul.mubr.msk.bf16.vlgmr.msra.gmra.mxu0 %vm353_vm2, %v6313_v8  ;;  %v3927_v6 = vsel %vm3917_vm9, %v3914_v52, %v3916_v36  ;;  %v6367_v34 = vld [vmem:[%s6625_s3 + $0x1c] sm:$0xf] }
 0x17f   :  { %v1463_v28 = vpop.f32.mrf.mxu1  ;;  %5223 = vmatmul.mubr.msk.bf16.vlgmr.msra.gmra.mxu1 %vm353_vm2, %v6313_v8  ;;  %4119 = vmatprep.subr.bf16.mxu0 %v3927_v6 }
 0x180   :  { %v1349_v60 = vpop.f32.mrf.mxu0  ;;  %4120 = vmatpush1.bf16.msra.mxu0 %v3926_v54  ;;  %v4163_v49 = vpop.permute.xlu1 %4162  ;;  %4137 = vmatprep.mubr.bf16.mxu0 %v5310_v1 }
 0x181   :  { %v4161_v39 = vpop.permute.xlu0 %4160  ;;  %v1464_v40 = vpop.f32.mrf.mxu1  ;;  %4255 = vmatprep.mubr.bf16.mxu1 %v5310_v1 }
 0x182   :  { %v4180_v50 = vsel %vm3917_vm9, %v4159_v2, %v4161_v39  ;;  %v4181_v62 = vsel %vm3917_vm9, %v4161_v39, %v4163_v49  ;;  %v1500_v24 = vpop.f32.mrf.mxu0 }
 0x183   :  { %v4194_v5 = vsel %vm67_vm0, %v4180_v50, 0  ;;  %v6359_v42 = vadd.f32 %v1500_v24, %v6300_v19  ;;  %v1541_v27 = vpop.f32.mrf.mxu1  ;;  %5226 = vmatprep.subr.msk.bf16.mxu1 %vm67_vm0, %v4181_v62 }
 0x184   :  { %v6362_v45 = vadd.f32 %v1541_v27, %v1355_v58  ;;  %v1502_v46 = vpop.f32.mrf.mxu0  ;;  %4238 = vmatpush1.bf16.msra.mxu1 %v4194_v5  ;;  %v4167_v4 = vpop.permute.xlu1 %4166 }
 0x185   :  { %v6370_v48 = vadd.f32 %v1502_v46, %v6307_v10  ;;  %v4165_v0 = vpop.permute.xlu0 %4164  ;;  %v1543_v43 = vpop.f32.mrf.mxu1 }
 0x186   :  { %v4182_v19 = vsel %vm3917_vm9, %v4163_v49, %v4165_v0  ;;  %v4183_v13 = vsel %vm3917_vm9, %v4165_v0, %v4167_v4  ;;  %v6375_v53 = vadd.f32 %v1543_v43, %v6323_v14  ;;  %v1504_v21 = vpop.f32.mrf.mxu0  ;;  %5224 = vmatmul.mubr.msk.bf16.vlgmr.msra.gmra.mxu0 %vm353_vm2, %v6313_v8  ;;  %v6436_v0 = vld [vmem:[%s6626_s2 + $0x20] sm:$0xf] }
 0x187   :  { %v4200_v55 = vsel %vm67_vm0, %v4182_v19, 0  ;;  %v1545_v11 = vpop.f32.mrf.mxu1  ;;  %5227 = vmatmul.mubr.msk.bf16.vlgmr.msra.gmra.mxu1 %vm63_vm1, %v6367_v34  ;;  %5228 = vmatprep.subr.msk.bf16.mxu0 %vm67_vm0, %v4183_v13 }
 0x188   :  { %v1505_v10 = vpop.f32.mrf.mxu0  ;;  %4279 = vmatpush1.bf16.msra.mxu0 %v4200_v55  ;;  %v4171_v51 = vpop.permute.xlu1 %4170  ;;  %4296 = vmatprep.mubr.bf16.mxu0 %v5310_v1 }
 0x189   :  { %v4169_v9 = vpop.permute.xlu0 %4168  ;;  %v1546_v57 = vpop.f32.mrf.mxu1  ;;  %4337 = vmatprep.mubr.bf16.mxu1 %v5310_v1 }
 0x18a   :  { %v4184_v56 = vsel %vm3917_vm9, %v4167_v4, %v4169_v9  ;;  %v4185_v8 = vsel %vm3917_vm9, %v4169_v9, %v4171_v51  ;;  %v1582_v58 = vpop.f32.mrf.mxu0 }
 0x18b   :  { %v4206_v63 = vsel %vm67_vm0, %v4184_v56, 0  ;;  %v1636_v47 = vadd.f32 %v1582_v58, %v6319_v17  ;;  %v1623_v7 = vpop.f32.mrf.mxu1  ;;  %5230 = vmatprep.subr.msk.bf16.mxu1 %vm67_vm0, %v4185_v8 }
 0x18c   :  { %v6391_v14 = vadd.f32 %v1623_v7, %v6338_v32  ;;  %v1584_v25 = vpop.f32.mrf.mxu0  ;;  %4320 = vmatpush1.bf16.msra.mxu1 %v4206_v63  ;;  %v4175_v3 = vpop.permute.xlu1 %4174 }
 0x18d   :  { %v6394_v37 = vadd.f32 %v1584_v25, %v6325_v20  ;;  %v4173_v15 = vpop.permute.xlu0 %4172  ;;  %v1625_v16 = vpop.f32.mrf.mxu1 }
 0x18e   :  { %v4186_v41 = vsel %vm3917_vm9, %v4171_v51, %v4173_v15  ;;  %v4187_v23 = vsel %vm3917_vm9, %v4173_v15, %v4175_v3  ;;  %v6399_v17 = vadd.f32 %v1625_v16, %v6343_v26  ;;  %v1586_v52 = vpop.f32.mrf.mxu0  ;;  %5229 = vmatmul.mubr.msk.bf16.vlgmr.msra.gmra.mxu0 %vm63_vm1, %v6367_v34 }
 0x18f   :  { %v4212_v30 = vsel %vm67_vm0, %v4186_v41, 0  ;;  %v1627_v12 = vpop.f32.mrf.mxu1  ;;  %5231 = vmatmul.mubr.msk.bf16.vlgmr.msra.gmra.mxu1 %vm63_vm1, %v6367_v34  ;;  %5232 = vmatprep.subr.msk.bf16.mxu0 %vm67_vm0, %v4187_v23 }
 0x190   :  { %v1587_v20 = vpop.f32.mrf.mxu0  ;;  %4361 = vmatpush1.bf16.msra.mxu0 %v4212_v30  ;;  %v4179_v44 = vpop.permute.xlu1 %4178  ;;  %4378 = vmatprep.mubr.bf16.mxu0 %v5310_v1 }
 0x191   :  { %v4177_v33 = vpop.permute.xlu0 %4176  ;;  %v1628_v29 = vpop.f32.mrf.mxu1  ;;  %4419 = vmatprep.mubr.bf16.mxu1 %v5310_v1 }
 0x192   :  { %v4188_v22 = vsel %vm3917_vm9, %v4175_v3, %v4177_v33  ;;  %v4189_v32 = vsel %vm3917_vm9, %v4177_v33, %v4179_v44  ;;  %v1719_v35 = vpop.f32.mrf.mxu0 }
 0x193   :  { %v4218_v59 = vsel %vm67_vm0, %v4188_v22, 0  ;;  %v1890_v2 = vadd.f32 %v1719_v35, %v6340_v61  ;;  %v1760_v26 = vpop.f32.mrf.mxu1  ;;  %5234 = vmatprep.subr.msk.bf16.mxu1 %vm67_vm0, %v4189_v32 }
 0x194   :  { %v6415_v36 = vadd.f32 %v1760_v26, %v6359_v42  ;;  %v1721_v18 = vpop.f32.mrf.mxu0  ;;  %4402 = vmatpush1.bf16.msra.mxu1 %v4218_v59  ;;  %v4445_v31 = vpop.permute.xlu1 %4444 }
 0x195   :  { %v1891_v6 = vadd.f32 %v1721_v18, %v6345_v38  ;;  %v4443_v54 = vpop.permute.xlu0 %4442  ;;  %v1762_v28 = vpop.f32.mrf.mxu1 }
 0x196   :  { %v6419_v60 = vadd.f32 %v1762_v28, %v6370_v48  ;;  %v1723_v49 = vpop.f32.mrf.mxu0  ;;  %5233 = vmatmul.mubr.msk.bf16.vlgmr.msra.gmra.mxu0 %vm63_vm1, %v6367_v34  ;;  %v4464_v61 = vsel %vm4462_vm10, %v4443_v54, %v4445_v31 }
 0x197   :  { %v1764_v39 = vpop.f32.mrf.mxu1  ;;  %5235 = vmatmul.mubr.msk.bf16.vlgmr.msra.gmra.mxu1 %vm63_vm1, %v6367_v34  ;;  %4500 = vmatprep.subr.bf16.mxu0 %v4464_v61 }
 0x198   :  { %v1724_v40 = vpop.f32.mrf.mxu0  ;;  %v4449_v50 = vpop.permute.xlu1 %4448  ;;  %4559 = vmatprep.mubr.bf16.mxu1 %v5310_v1  ;;  %4518 = vmatprep.mubr.bf16.mxu0 %v5310_v1 }
 0x199   :  { %v4447_v38 = vpop.permute.xlu0 %4446  ;;  %v1765_v62 = vpop.f32.mrf.mxu1  ;;  %v6486_v40 = vld [vmem:[%s6625_s3 + $0x20] sm:$0xf] }
 0x19a   :  { %v4465_v24 = vsel %vm4462_vm10, %v4445_v31, %v4447_v38  ;;  %v1801_v5 = vpop.f32.mrf.mxu0  ;;  %v4466_v42 = vsel %vm4462_vm10, %v4447_v38, %v4449_v50 }
 0x19b   :  { %v1894_v27 = vadd.f32 %v1801_v5, %v6362_v45  ;;  %v1842_v46 = vpop.f32.mrf.mxu1  ;;  %4541 = vmatprep.subr.bf16.mxu1 %v4466_v42 }
 0x19c   :  { %v6431_v4 = vadd.f32 %v1842_v46, %v1636_v47  ;;  %v1803_v34 = vpop.f32.mrf.mxu0  ;;  %4542 = vmatpush1.bf16.msra.mxu1 %v4465_v24  ;;  %v4451_v48 = vpop.permute.xlu1 %4450 }
 0x19d   :  { %v1895_v43 = vadd.f32 %v1803_v34, %v6375_v53  ;;  %v4441_v19 = vpop.permute.xlu0 %4440  ;;  %v1844_v13 = vpop.f32.mrf.mxu1  ;;  %v4467_v8 = vsel %vm4462_vm10, %v4449_v50, %v4451_v48 }
 0x19e   :  { %v4463_v21 = vsel %vm4462_vm10, %v4441_v19, %v4443_v54  ;;  %v6441_v45 = vadd.f32 %v1844_v13, %v6394_v37  ;;  %v1805_v55 = vpop.f32.mrf.mxu0 }
 0x19f   :  { %v1846_v11 = vpop.f32.mrf.mxu1  ;;  %4501 = vmatpush1.bf16.msra.mxu0 %v4463_v21  ;;  %5238 = vmatmul.mubr.msk.bf16.vlgmr.msra.gmra.mxu1 %vm353_vm2, %v6436_v0 }
 0x1a0   :  { %v1806_v10 = vpop.f32.mrf.mxu0  ;;  %v4455_v51 = vpop.permute.xlu1 %4454  ;;  %4641 = vmatprep.mubr.bf16.mxu1 %v5310_v1 }
 0x1a1   :  { %v4453_v9 = vpop.permute.xlu0 %4452  ;;  %v1847_v57 = vpop.f32.mrf.mxu1 }
 0x1a2   :  { %v1883_v53 = vpop.f32.mrf.mxu0  ;;  %5237 = vmatmul.mubr.msk.bf16.vlgmr.msra.gmra.mxu0 %vm353_vm2, %v6436_v0  ;;  %v4468_v56 = vsel %vm4462_vm10, %v4451_v48, %v4453_v9 }
 0x1a3   :  { %v1898_v58 = vadd.f32 %v1883_v53, %v6391_v14  ;;  %v1998_v63 = vpop.f32.mrf.mxu1  ;;  %4582 = vmatprep.subr.bf16.mxu0 %v4468_v56  ;;  %4600 = vmatprep.mubr.bf16.mxu0 %v5310_v1  ;;  %v4469_v14 = vsel %vm4462_vm10, %v4453_v9, %v4455_v51 }
 0x1a4   :  { %v6452_v47 = vadd.f32 %v1998_v63, %v1890_v2  ;;  %v1885_v7 = vpop.f32.mrf.mxu0  ;;  %4583 = vmatpush1.bf16.msra.mxu0 %v4467_v8  ;;  %v4459_v25 = vpop.permute.xlu1 %4458 }
 0x1a5   :  { %v6455_v3 = vadd.f32 %v1885_v7, %v6399_v17  ;;  %v4457_v37 = vpop.permute.xlu0 %4456  ;;  %v2000_v15 = vpop.f32.mrf.mxu1 }
 0x1a6   :  { %v6457_v16 = vadd.f32 %v2000_v15, %v1891_v6  ;;  %v1887_v41 = vpop.f32.mrf.mxu0  ;;  %v4470_v23 = vsel %vm4462_vm10, %v4455_v51, %v4457_v37  ;;  %v4471_v29 = vsel %vm4462_vm10, %v4457_v37, %v4459_v25 }
 0x1a7   :  { %v2002_v52 = vpop.f32.mrf.mxu1  ;;  %4623 = vmatprep.subr.bf16.mxu1 %v4470_v23 }
 0x1a8   :  { %v1888_v30 = vpop.f32.mrf.mxu0  ;;  %4624 = vmatpush1.bf16.msra.mxu1 %v4469_v14  ;;  %v4704_v12 = vpop.permute.xlu1 %4703 }
 0x1a9   :  { %v4461_v20 = vpop.permute.xlu0 %4460  ;;  %v2003_v44 = vpop.f32.mrf.mxu1 }
 0x1aa   :  { %v2039_v33 = vpop.f32.mrf.mxu0  ;;  %5239 = vmatmul.mubr.msk.bf16.vlgmr.msra.gmra.mxu0 %vm353_vm2, %v6436_v0  ;;  %v4472_v17 = vsel %vm4462_vm10, %v4459_v25, %v4461_v20 }
 0x1ab   :  { %v6466_v22 = vadd.f32 %v2039_v33, %v6415_v36  ;;  %v2080_v32 = vpop.f32.mrf.mxu1  ;;  %5240 = vmatmul.mubr.msk.bf16.vlgmr.msra.gmra.mxu1 %vm353_vm2, %v6436_v0  ;;  %4664 = vmatprep.subr.bf16.mxu0 %v4472_v17 }
 0x1ac   :  { %v6470_v35 = vadd.f32 %v2080_v32, %v1894_v27  ;;  %v2041_v59 = vpop.f32.mrf.mxu0  ;;  %4665 = vmatpush1.bf16.msra.mxu0 %v4471_v29  ;;  %v4708_v2 = vpop.permute.xlu1 %4707  ;;  %4682 = vmatprep.mubr.bf16.mxu0 %v5310_v1 }
 0x1ad   :  { %v6474_v26 = vadd.f32 %v2041_v59, %v6419_v60  ;;  %v4706_v18 = vpop.permute.xlu0 %4705  ;;  %v2082_v31 = vpop.f32.mrf.mxu1  ;;  %4800 = vmatprep.mubr.bf16.mxu1 %v5310_v1 }
 0x1ae   :  { %v4725_v36 = vsel %vm4462_vm10, %v4704_v12, %v4706_v18  ;;  %v4726_v6 = vsel %vm4462_vm10, %v4706_v18, %v4708_v2  ;;  %v6479_v54 = vadd.f32 %v2082_v31, %v1895_v43  ;;  %v2043_v28 = vpop.f32.mrf.mxu0 }
 0x1af   :  { %v4739_v49 = vsel %vm67_vm0, %v4725_v36, 0  ;;  %v2084_v61 = vpop.f32.mrf.mxu1  ;;  %5243 = vmatprep.subr.msk.bf16.mxu1 %vm67_vm0, %v4726_v6 }
 0x1b0   :  { %v2044_v39 = vpop.f32.mrf.mxu0  ;;  %4783 = vmatpush1.bf16.msra.mxu1 %v4739_v49  ;;  %v4712_v60 = vpop.permute.xlu1 %4711 }
 0x1b1   :  { %v4710_v50 = vpop.permute.xlu0 %4709  ;;  %v2085_v38 = vpop.f32.mrf.mxu1 }
 0x1b2   :  { %v4727_v62 = vsel %vm4462_vm10, %v4708_v2, %v4710_v50  ;;  %v4728_v24 = vsel %vm4462_vm10, %v4710_v50, %v4712_v60  ;;  %v2121_v5 = vpop.f32.mrf.mxu0  ;;  %5241 = vmatmul.mubr.msk.bf16.vlgmr.msra.gmra.mxu0 %vm353_vm2, %v6436_v0 }
 0x1b3   :  { %v4745_v42 = vsel %vm67_vm0, %v4727_v62, 0  ;;  %v2175_v27 = vadd.f32 %v2121_v5, %v6431_v4  ;;  %v2162_v46 = vpop.f32.mrf.mxu1  ;;  %5244 = vmatmul.mubr.msk.bf16.vlgmr.msra.gmra.mxu1 %vm63_vm1, %v6486_v40  ;;  %5245 = vmatprep.subr.msk.bf16.mxu0 %vm67_vm0, %v4728_v24 }
 0x1b4   :  { %v6497_v34 = vadd.f32 %v2162_v46, %v1898_v58  ;;  %v2123_v48 = vpop.f32.mrf.mxu0  ;;  %4824 = vmatpush1.bf16.msra.mxu0 %v4745_v42  ;;  %v4716_v43 = vpop.permute.xlu1 %4715  ;;  %4841 = vmatprep.mubr.bf16.mxu0 %v5310_v1 }
 0x1b5   :  { %v2176_v19 = vadd.f32 %v2123_v48, %v6441_v45  ;;  %v4714_v0 = vpop.permute.xlu0 %4713  ;;  %v2164_v13 = vpop.f32.mrf.mxu1  ;;  %4882 = vmatprep.mubr.bf16.mxu1 %v5310_v1 }
 0x1b6   :  { %v4729_v4 = vsel %vm4462_vm10, %v4712_v60, %v4714_v0  ;;  %v4730_v21 = vsel %vm4462_vm10, %v4714_v0, %v4716_v43  ;;  %v2178_v55 = vadd.f32 %v2164_v13, %v6455_v3  ;;  %v2125_v11 = vpop.f32.mrf.mxu0 }
 0x1b7   :  { %v4751_v10 = vsel %vm67_vm0, %v4729_v4, 0  ;;  %v2166_v51 = vpop.f32.mrf.mxu1  ;;  %5247 = vmatprep.subr.msk.bf16.mxu1 %vm67_vm0, %v4730_v21 }
 0x1b8   :  { %v2126_v9 = vpop.f32.mrf.mxu0  ;;  %4865 = vmatpush1.bf16.msra.mxu1 %v4751_v10  ;;  %v4720_v57 = vpop.permute.xlu1 %4719 }
 0x1b9   :  { %v4718_v45 = vpop.permute.xlu0 %4717  ;;  %v2167_v53 = vpop.f32.mrf.mxu1 }
 0x1ba   :  { %v4731_v56 = vsel %vm4462_vm10, %v4716_v43, %v4718_v45  ;;  %v4732_v8 = vsel %vm4462_vm10, %v4718_v45, %v4720_v57  ;;  %v2258_v58 = vpop.f32.mrf.mxu0  ;;  %5246 = vmatmul.mubr.msk.bf16.vlgmr.msra.gmra.mxu0 %vm63_vm1, %v6486_v40 }
 0x1bb   :  { %v4757_v63 = vsel %vm67_vm0, %v4731_v56, 0  ;;  %v2429_v7 = vadd.f32 %v2258_v58, %v6452_v47  ;;  %v2299_v25 = vpop.f32.mrf.mxu1  ;;  %5248 = vmatmul.mubr.msk.bf16.vlgmr.msra.gmra.mxu1 %vm63_vm1, %v6486_v40  ;;  %5249 = vmatprep.subr.msk.bf16.mxu0 %vm67_vm0, %v4732_v8 }
 0x1bc   :  { %v2431_v3 = vadd.f32 %v2299_v25, %v6466_v22  ;;  %v2260_v37 = vpop.f32.mrf.mxu0  ;;  %4906 = vmatpush1.bf16.msra.mxu0 %v4757_v63  ;;  %v4724_v15 = vpop.permute.xlu1 %4723  ;;  %4923 = vmatprep.mubr.bf16.mxu0 %v5310_v1 }
 0x1bd   :  { %v2430_v41 = vadd.f32 %v2260_v37, %v6457_v16  ;;  %v4722_v23 = vpop.permute.xlu0 %4721  ;;  %v2301_v14 = vpop.f32.mrf.mxu1  ;;  %4964 = vmatprep.mubr.bf16.mxu1 %v5310_v1 }
 0x1be   :  { %v4733_v47 = vsel %vm4462_vm10, %v4720_v57, %v4722_v23  ;;  %v4734_v52 = vsel %vm4462_vm10, %v4722_v23, %v4724_v15  ;;  %v2432_v30 = vadd.f32 %v2301_v14, %v6474_v26  ;;  %v2262_v12 = vpop.f32.mrf.mxu0 }
 0x1bf   :  { %v4763_v20 = vsel %vm67_vm0, %v4733_v47, 0  ;;  %v2303_v44 = vpop.f32.mrf.mxu1  ;;  %5251 = vmatprep.subr.msk.bf16.mxu1 %vm67_vm0, %v4734_v52 }
 0x1c0   :  { %v2263_v33 = vpop.f32.mrf.mxu0  ;;  %4947 = vmatpush1.bf16.msra.mxu1 %v4763_v20 }
 0x1c1   :  { %v2304_v17 = vpop.f32.mrf.mxu1 }
 0x1c2   :  { %v2340_v16 = vpop.f32.mrf.mxu0  ;;  %5250 = vmatmul.mubr.msk.bf16.vlgmr.msra.gmra.mxu0 %vm63_vm1, %v6486_v40 }
 0x1c3   :  { %v2433_v1 = vadd.f32 %v2340_v16, %v6470_v35  ;;  %v2381_v29 = vpop.f32.mrf.mxu1  ;;  %5252 = vmatmul.mubr.msk.bf16.vlgmr.msra.gmra.mxu1 %vm63_vm1, %v6486_v40 }
 0x1c4   :  { %v2435_v22 = vadd.f32 %v2381_v29, %v2175_v27  ;;  %v2342_v32 = vpop.f32.mrf.mxu0 }
 0x1c5   :  { %v2434_v59 = vadd.f32 %v2342_v32, %v6479_v54  ;;  %v2383_v2 = vpop.f32.mrf.mxu1 }
 0x1c6   :  { %v2436_v26 = vadd.f32 %v2383_v2, %v2176_v19  ;;  %v2344_v18 = vpop.f32.mrf.mxu0 }
 0x1c7   :  { %v2385_v31 = vpop.f32.mrf.mxu1 }
 0x1c8   :  { %v2345_v36 = vpop.f32.mrf.mxu0 }
 0x1c9   :  { %v2386_v6 = vpop.f32.mrf.mxu1 }
 0x1ca   :  { %v2422_v28 = vpop.f32.mrf.mxu0 }
 0x1cb   :  { %v2437_v49 = vadd.f32 %v2422_v28, %v6497_v34  ;;  %v2537_v61 = vpop.f32.mrf.mxu1 }
 0x1cc   :  { %v2708_v39 = vadd.f32 %v2537_v61, %v2429_v7  ;;  %v2424_v35 = vpop.f32.mrf.mxu0 }
 0x1cd   :  { %v2438_v60 = vadd.f32 %v2424_v35, %v2178_v55  ;;  %v2539_v50 = vpop.f32.mrf.mxu1 }
 0x1ce   :  { %v2709_v38 = vadd.f32 %v2539_v50, %v2430_v41  ;;  %v2426_v40 = vpop.f32.mrf.mxu0 }
 0x1cf   :  { %v2541_v62 = vpop.f32.mrf.mxu1 }
 0x1d0   :  { %v2427_v24 = vpop.f32.mrf.mxu0 }
 0x1d1   :  { %v2542_v5 = vpop.f32.mrf.mxu1 }
 0x1d2   :  { %v2578_v54 = vpop.f32.mrf.mxu0 }
 0x1d3   :  { %v2710_v42 = vadd.f32 %v2578_v54, %v2431_v3  ;;  %v2619_v27 = vpop.f32.mrf.mxu1 }
 0x1d4   :  { %v2712_v46 = vadd.f32 %v2619_v27, %v2433_v1  ;;  %v2580_v48 = vpop.f32.mrf.mxu0 }
 0x1d5   :  { %v2711_v43 = vadd.f32 %v2580_v48, %v2432_v30  ;;  %v2621_v19 = vpop.f32.mrf.mxu1 }
 0x1d6   :  { %v2713_v0 = vadd.f32 %v2621_v19, %v2434_v59  ;;  %v2582_v13 = vpop.f32.mrf.mxu0 }
 0x1d7   :  { %v2623_v34 = vpop.f32.mrf.mxu1 }
 0x1d8   :  { %v2583_v4 = vpop.f32.mrf.mxu0 }
 0x1d9   :  { %v2624_v21 = vpop.f32.mrf.mxu1 }
 0x1da   :  { %v2660_v11 = vpop.f32.mrf.mxu0 }
 0x1db   :  { %v2714_v55 = vadd.f32 %v2660_v11, %v2435_v22  ;;  %v2701_v10 = vpop.f32.mrf.mxu1 }
 0x1dc   :  { %v2716_v51 = vadd.f32 %v2701_v10, %v2437_v49  ;;  %v2662_v9 = vpop.f32.mrf.mxu0 }
 0x1dd   :  { %v2715_v57 = vadd.f32 %v2662_v9, %v2436_v26  ;;  %v2703_v45 = vpop.f32.mrf.mxu1 }
 0x1de   :  { %v2717_v53 = vadd.f32 %v2703_v45, %v2438_v60  ;;  %v2664_v56 = vpop.f32.mrf.mxu0 }
 0x1df   :  { %v2705_v8 = vpop.f32.mrf.mxu1 }
 0x1e0   :  { %v2665_v58 = vpop.f32.mrf.mxu0 }
 0x1e1   :  { %v2706_v63 = vpop.f32.mrf.mxu1 }
 0x1e2   :  { %v2797_v7 = vpop.f32.mrf.mxu0 }
 0x1e3   :  { %v2968_v25 = vadd.f32 %v2797_v7, %v2708_v39  ;;  %v2838_v3 = vpop.f32.mrf.mxu1 }
 0x1e4   :  { %v2970_v37 = vadd.f32 %v2838_v3, %v2710_v42  ;;  %v2799_v15 = vpop.f32.mrf.mxu0 }
 0x1e5   :  { %v2969_v41 = vadd.f32 %v2799_v15, %v2709_v38  ;;  %v2840_v23 = vpop.f32.mrf.mxu1 }
 0x1e6   :  { %v2971_v14 = vadd.f32 %v2840_v23, %v2711_v43  ;;  %v2801_v47 = vpop.f32.mrf.mxu0 }
 0x1e7   :  { %v2842_v52 = vpop.f32.mrf.mxu1 }
 0x1e8   :  { %v2802_v30 = vpop.f32.mrf.mxu0 }
 0x1e9   :  { %v2843_v12 = vpop.f32.mrf.mxu1 }
 0x1ea   :  { %v2879_v20 = vpop.f32.mrf.mxu0 }
 0x1eb   :  { %v2972_v44 = vadd.f32 %v2879_v20, %v2712_v46  ;;  %v2920_v33 = vpop.f32.mrf.mxu1 }
 0x1ec   :  { %v2974_v17 = vadd.f32 %v2920_v33, %v2714_v55  ;;  %v2881_v16 = vpop.f32.mrf.mxu0 }
 0x1ed   :  { %v2973_v1 = vadd.f32 %v2881_v16, %v2713_v0  ;;  %v2922_v29 = vpop.f32.mrf.mxu1 }
 0x1ee   :  { %v2975_v22 = vadd.f32 %v2922_v29, %v2715_v57  ;;  %v2883_v32 = vpop.f32.mrf.mxu0 }
 0x1ef   :  { %v2924_v59 = vpop.f32.mrf.mxu1 }
 0x1f0   :  { %v2884_v2 = vpop.f32.mrf.mxu0 }
 0x1f1   :  { %v2925_v26 = vpop.f32.mrf.mxu1 }
 0x1f2   :  { %v2961_v18 = vpop.f32.mrf.mxu0 }
 0x1f3   :  { %v2976_v31 = vadd.f32 %v2961_v18, %v2716_v51  ;;  %v3076_v36 = vpop.f32.mrf.mxu1 }
 0x1f4   :  { %v3247_v6 = vadd.f32 %v3076_v36, %v2968_v25  ;;  %v2963_v28 = vpop.f32.mrf.mxu0 }
 0x1f5   :  { %v2977_v49 = vadd.f32 %v2963_v28, %v2717_v53  ;;  %v3078_v61 = vpop.f32.mrf.mxu1 }
 0x1f6   :  { %v3248_v39 = vadd.f32 %v3078_v61, %v2969_v41  ;;  %v2965_v35 = vpop.f32.mrf.mxu0 }
 0x1f7   :  { %v3080_v60 = vpop.f32.mrf.mxu1 }
 0x1f8   :  { %v2966_v50 = vpop.f32.mrf.mxu0 }
 0x1f9   :  { %v3081_v38 = vpop.f32.mrf.mxu1 }
 0x1fa   :  { %v3117_v40 = vpop.f32.mrf.mxu0 }
 0x1fb   :  { %v3249_v62 = vadd.f32 %v3117_v40, %v2970_v37  ;;  %v3158_v24 = vpop.f32.mrf.mxu1 }
 0x1fc   :  { %v3251_v5 = vadd.f32 %v3158_v24, %v2972_v44  ;;  %v3119_v54 = vpop.f32.mrf.mxu0 }
 0x1fd   :  { %v3250_v42 = vadd.f32 %v3119_v54, %v2971_v14  ;;  %v3160_v27 = vpop.f32.mrf.mxu1 }
 0x1fe   :  { %v3252_v46 = vadd.f32 %v3160_v27, %v2973_v1  ;;  %v3121_v48 = vpop.f32.mrf.mxu0 }
 0x1ff   :  { %v3162_v43 = vpop.f32.mrf.mxu1 }
 0x200   :  { %v3122_v19 = vpop.f32.mrf.mxu0 }
 0x201   :  { %v3163_v0 = vpop.f32.mrf.mxu1 }
 0x202   :  { %v3199_v13 = vpop.f32.mrf.mxu0 }
 0x203   :  { %v3253_v34 = vadd.f32 %v3199_v13, %v2974_v17  ;;  %v3240_v4 = vpop.f32.mrf.mxu1 }
 0x204   :  { %v3255_v21 = vadd.f32 %v3240_v4, %v2976_v31  ;;  %v3201_v11 = vpop.f32.mrf.mxu0 }
 0x205   :  { %v3254_v55 = vadd.f32 %v3201_v11, %v2975_v22  ;;  %v3242_v10 = vpop.f32.mrf.mxu1 }
 0x206   :  { %v3256_v51 = vadd.f32 %v3242_v10, %v2977_v49  ;;  %v3203_v9 = vpop.f32.mrf.mxu0 }
 0x207   :  { %v3244_v57 = vpop.f32.mrf.mxu1 }
 0x208   :  { %v3204_v45 = vpop.f32.mrf.mxu0 }
 0x209   :  { %v3245_v53 = vpop.f32.mrf.mxu1 }
 0x20a   :  { %v3396_v56 = vpop.f32.mrf.mxu0 }
 0x20b   :  { %v3567_v8 = vadd.f32 %v3396_v56, %v3247_v6  ;;  %v3437_v58 = vpop.f32.mrf.mxu1 }
 0x20c   :  { %v3569_v63 = vadd.f32 %v3437_v58, %v3249_v62  ;;  %v3398_v7 = vpop.f32.mrf.mxu0 }
 0x20d   :  { %v3568_v25 = vadd.f32 %v3398_v7, %v3248_v39  ;;  %v3439_v3 = vpop.f32.mrf.mxu1 }
 0x20e   :  { %v3570_v37 = vadd.f32 %v3439_v3, %v3250_v42  ;;  %v3400_v15 = vpop.f32.mrf.mxu0 }
 0x20f   :  { %v3441_v41 = vpop.f32.mrf.mxu1 }
 0x210   :  { %v3401_v23 = vpop.f32.mrf.mxu0 }
 0x211   :  { %v3442_v14 = vpop.f32.mrf.mxu1 }
 0x212   :  { %v3478_v47 = vpop.f32.mrf.mxu0 }
 0x213   :  { %v3571_v52 = vadd.f32 %v3478_v47, %v3251_v5  ;;  %v3519_v30 = vpop.f32.mrf.mxu1 }
 0x214   :  { %v3573_v12 = vadd.f32 %v3519_v30, %v3253_v34  ;;  %v3480_v20 = vpop.f32.mrf.mxu0 }
 0x215   :  { %v3572_v44 = vadd.f32 %v3480_v20, %v3252_v46  ;;  %v3521_v33 = vpop.f32.mrf.mxu1 }
 0x216   :  { %v3574_v17 = vadd.f32 %v3521_v33, %v3254_v55  ;;  %v3482_v16 = vpop.f32.mrf.mxu0 }
 0x217   :  { %v3523_v1 = vpop.f32.mrf.mxu1 }
 0x218   :  { %v3483_v29 = vpop.f32.mrf.mxu0 }
 0x219   :  { %v3524_v22 = vpop.f32.mrf.mxu1 }
 0x21a   :  { %v3560_v32 = vpop.f32.mrf.mxu0 }
 0x21b   :  { %v3575_v59 = vadd.f32 %v3560_v32, %v3255_v21  ;;  %v3712_v2 = vpop.f32.mrf.mxu1 }
 0x21c   :  { %v6532_v26 = vadd.f32 %v3712_v2, %v3567_v8  ;;  %v3562_v18 = vpop.f32.mrf.mxu0 }
 0x21d   :  { %v3576_v31 = vadd.f32 %v3562_v18, %v3256_v51  ;;  %v3714_v36 = vpop.f32.mrf.mxu1 }
 0x21e   :  { %v6534_v6 = vadd.f32 %v3714_v36, %v3568_v25  ;;  %v3564_v28 = vpop.f32.mrf.mxu0 }
 0x21f   :  { %v3716_v49 = vpop.f32.mrf.mxu1 }
 0x220   :  { %v3565_v61 = vpop.f32.mrf.mxu0 }
 0x221   :  { %v3717_v39 = vpop.f32.mrf.mxu1 }
 0x222   :  { %v3753_v35 = vpop.f32.mrf.mxu0 }
 0x223   :  { %v3885_v60 = vadd.f32 %v3753_v35, %v3569_v63  ;;  %v3794_v50 = vpop.f32.mrf.mxu1 }
 0x224   :  { %v6536_v38 = vadd.f32 %v3794_v50, %v3571_v52  ;;  %v3755_v40 = vpop.f32.mrf.mxu0 }
 0x225   :  { %v3886_v62 = vadd.f32 %v3755_v40, %v3570_v37  ;;  %v3796_v24 = vpop.f32.mrf.mxu1 }
 0x226   :  { %v6538_v5 = vadd.f32 %v3796_v24, %v3572_v44  ;;  %v3757_v54 = vpop.f32.mrf.mxu0 }
 0x227   :  { %v3798_v42 = vpop.f32.mrf.mxu1 }
 0x228   :  { %v3758_v27 = vpop.f32.mrf.mxu0 }
 0x229   :  { %v3799_v46 = vpop.f32.mrf.mxu1 }
 0x22a   :  { %v3835_v48 = vpop.f32.mrf.mxu0 }
 0x22b   :  { %v6540_v43 = vadd.f32 %v3835_v48, %v3573_v12  ;;  %v3876_v19 = vpop.f32.mrf.mxu1 }
 0x22c   :  { %v6542_v0 = vadd.f32 %v3876_v19, %v3575_v59  ;;  %v3837_v13 = vpop.f32.mrf.mxu0 }
 0x22d   :  { %v6544_v34 = vadd.f32 %v3837_v13, %v3574_v17  ;;  %v3878_v4 = vpop.f32.mrf.mxu1 }
 0x22e   :  { %v6546_v21 = vadd.f32 %v3878_v4, %v3576_v31  ;;  %v3839_v11 = vpop.f32.mrf.mxu0 }
 0x22f   :  { %v3880_v55 = vpop.f32.mrf.mxu1 }
 0x230   :  { %v3840_v10 = vpop.f32.mrf.mxu0 }
 0x231   :  { %v3881_v51 = vpop.f32.mrf.mxu1 }
 0x233   :  { %v4016_v9 = vpop.f32.mrf.mxu1 }
 0x234   :  { %v6548_v57 = vadd.f32 %v4016_v9, %v3885_v60 }
 0x235   :  { %v4018_v45 = vpop.f32.mrf.mxu1 }
 0x236   :  { %v6550_v53 = vadd.f32 %v4018_v45, %v3886_v62  ;;  %v3975_v56 = vpop.f32.mrf.mxu0 }
 0x237   :  { %v4020_v8 = vpop.f32.mrf.mxu1  ;;  %v4146_v10 = vadd.f32 %v3975_v56, %v6532_v26 }
 0x238   :  { %v3977_v58 = vpop.f32.mrf.mxu0 }
 0x239   :  { %v4021_v63 = vpop.f32.mrf.mxu1  ;;  %v4147_v45 = vadd.f32 %v3977_v58, %v6534_v6 }
 0x23a   :  { %v3979_v7 = vpop.f32.mrf.mxu0 }
 0x23c   :  { %v3980_v25 = vpop.f32.mrf.mxu0 }
 0x23e   :  { %v4057_v3 = vpop.f32.mrf.mxu0 }
 0x23f   :  { %v6552_v37 = vpop.f32.mrf.mxu1 }
 0x240   :  { %v6554_v15 = vpop.f32.mrf.mxu0 }
 0x241   :  { %v6556_v41 = vpop.f32.mrf.mxu1 }
 0x242   :  { %v4061_v23 = vpop.f32.mrf.mxu0 }
 0x243   :  { %v4102_v14 = vpop.f32.mrf.mxu1 }
 0x244   :  { %v4062_v47 = vpop.f32.mrf.mxu0 }
 0x245   :  { %v4103_v52 = vpop.f32.mrf.mxu1 }
 0x246   :  { %v6558_v30 = vpop.f32.mrf.mxu0  ;;  %v6576_v52 = vpop.permute.xlu0 %4986 }
 0x247   :  { %v4257_v12 = vpop.f32.mrf.mxu1 }
 0x248   :  { %v6560_v20 = vpop.f32.mrf.mxu0  ;;  %v4428_v8 = vadd.f32 %v4257_v12, %v4146_v10  ;;  %v4151_v12 = vadd.f32 %v6554_v15, %v6538_v5  ;;  %v4152_v15 = vadd.f32 %v6552_v37, %v6540_v43 }
 0x249   :  { %v4259_v44 = vpop.f32.mrf.mxu1 }
 0x24a   :  { %v4143_v33 = vpop.f32.mrf.mxu0  ;;  %v4429_v25 = vadd.f32 %v4259_v44, %v4147_v45 }
 0x24b   :  { %v4261_v17 = vpop.f32.mrf.mxu1 }
 0x24c   :  { %v4144_v16 = vpop.f32.mrf.mxu0 }
 0x24d   :  { %v4262_v1 = vpop.f32.mrf.mxu1 }
 0x24e   :  { %v4298_v29 = vpop.f32.mrf.mxu0 }
 0x24f   :  { %v4339_v22 = vpop.f32.mrf.mxu1  ;;  %v4430_v6 = vadd.f32 %v4298_v29, %v6548_v57 }
 0x250   :  { %v4300_v32 = vpop.f32.mrf.mxu0 }
 0x251   :  { %v4341_v59 = vpop.f32.mrf.mxu1 }
 0x252   :  { %v4302_v2 = vpop.f32.mrf.mxu0 }
 0x253   :  { %v4343_v18 = vpop.f32.mrf.mxu1  ;;  %v4150_v2 = vadd.f32 %v4057_v3, %v6536_v38 }
 0x254   :  { %v4303_v31 = vpop.f32.mrf.mxu0 }
 0x255   :  { %v4344_v36 = vpop.f32.mrf.mxu1  ;;  %v4432_v44 = vadd.f32 %v4339_v22, %v4150_v2 }
 0x256   :  { %v6562_v28 = vpop.f32.mrf.mxu0 }
 0x257   :  { %v6564_v49 = vpop.f32.mrf.mxu1  ;;  %v4434_v43 = vadd.f32 %v6562_v28, %v4152_v15 }
 0x258   :  { %v6566_v61 = vpop.f32.mrf.mxu0 }
 0x259   :  { %v6568_v39 = vpop.f32.mrf.mxu1 }
 0x25a   :  { %v4384_v35 = vpop.f32.mrf.mxu0 }
 0x25b   :  { %v4425_v60 = vpop.f32.mrf.mxu1  ;;  %v4431_v35 = vadd.f32 %v4300_v32, %v6550_v53 }
 0x25c   :  { %v4385_v50 = vpop.f32.mrf.mxu0 }
 0x25d   :  { %v4426_v40 = vpop.f32.mrf.mxu1 }
 0x25e   :  { %v4433_v40 = vadd.f32 %v4341_v59, %v4151_v12  ;;  %v4154_v59 = vadd.f32 %v6558_v30, %v6542_v0 }
 0x25f   :  { %v4561_v62 = vpop.f32.mrf.mxu1 }
 0x260   :  { %v4693_v60 = vadd.f32 %v4561_v62, %v4430_v6  ;;  %v4436_v0 = vadd.f32 %v6564_v49, %v4154_v59 }
 0x261   :  { %v4563_v24 = vpop.f32.mrf.mxu1 }
 0x262   :  { %v4520_v54 = vpop.f32.mrf.mxu0 }
 0x263   :  { %v4565_v42 = vpop.f32.mrf.mxu1  ;;  %v4691_v23 = vadd.f32 %v4520_v54, %v4428_v8 }
 0x264   :  { %v4522_v27 = vpop.f32.mrf.mxu0 }
 0x265   :  { %v4566_v46 = vpop.f32.mrf.mxu1  ;;  %v4692_v33 = vadd.f32 %v4522_v27, %v4429_v25  ;;  %v4694_v27 = vadd.f32 %v4563_v24, %v4431_v35 }
 0x266   :  { %v4524_v48 = vpop.f32.mrf.mxu0 }
 0x268   :  { %v4525_v19 = vpop.f32.mrf.mxu0 }
 0x26a   :  { %v4602_v13 = vpop.f32.mrf.mxu0 }
 0x26b   :  { %v6570_v4 = vpop.f32.mrf.mxu1  ;;  %v4695_v38 = vadd.f32 %v4602_v13, %v4432_v44 }
 0x26c   :  { %v4604_v11 = vpop.f32.mrf.mxu0  ;;  %v4697_v8 = vadd.f32 %v6570_v4, %v4434_v43 }
 0x26d   :  { %v6572_v55 = vpop.f32.mrf.mxu1  ;;  %v4696_v29 = vadd.f32 %v4604_v11, %v4433_v40  ;;  %v4153_v11 = vadd.f32 %v6556_v41, %v6544_v34 }
 0x26e   :  { %v4606_v51 = vpop.f32.mrf.mxu0 }
 0x26f   :  { %v4647_v9 = vpop.f32.mrf.mxu1  ;;  %v4155_v51 = vadd.f32 %v6560_v20, %v6546_v21  ;;  %v4435_v45 = vadd.f32 %v6566_v61, %v4153_v11 }
 0x270   :  { %v4607_v63 = vpop.f32.mrf.mxu0 }
 0x271   :  { %v4648_v7 = vpop.f32.mrf.mxu1  ;;  %v4437_v41 = vadd.f32 %v6568_v39, %v4155_v51  ;;  %v4698_v21 = vadd.f32 %v6572_v55, %v4435_v45 }
 0x272   :  { %v4684_v14 = vpop.f32.mrf.mxu0 }
 0x273   :  { %v4802_v47 = vpop.f32.mrf.mxu1  ;;  %v4699_v28 = vadd.f32 %v4684_v14, %v4436_v0 }
 0x274   :  { %v4973_v17 = vadd.f32 %v4802_v47, %v4691_v23  ;;  %v4686_v16 = vpop.f32.mrf.mxu0 }
 0x275   :  { %v4804_v1 = vpop.f32.mrf.mxu1 }
 0x276   :  { %v4974_v26 = vadd.f32 %v4804_v1, %v4692_v33  ;;  %v4989_v56 = vadd.f32 %v6576_v52, %v4973_v17  ;;  %v4688_v18 = vpop.f32.mrf.mxu0  ;;  %v4700_v17 = vadd.f32 %v4686_v16, %v4437_v41 }
 0x277   :  { %v4806_v58 = vpop.f32.mrf.mxu1 }
 0x278   :  { %v4990_v31 = vadd.f32 %v6576_v52, %v4974_v26  ;;  %v4689_v36 = vpop.f32.mrf.mxu0  ;;  %v4999_v3 = vmax.f32 %v4989_v56, 0.0 }
 0x279   :  { %v4807_v50 = vpop.f32.mrf.mxu1 }
 0x27a   :  { %v5000_v54 = vmax.f32 %v4990_v31, 0.0  ;;  %v4843_v42 = vpop.f32.mrf.mxu0 }
 0x27b   :  { %v4975_v46 = vadd.f32 %v4843_v42, %v4693_v60  ;;  %v4884_v57 = vpop.f32.mrf.mxu1 }
 0x27c   :  { %v5258_v48 = vpack.c.bf16 %v5000_v54, %v4999_v3  ;;  %v4977_v19 = vadd.f32 %v4884_v57, %v4695_v38  ;;  %v4845_v5 = vpop.f32.mrf.mxu0 }
 0x27d   :  { %v4991_v22 = vadd.f32 %v6576_v52, %v4975_v46  ;;  %v4976_v53 = vadd.f32 %v4845_v5, %v4694_v27  ;;  %v4886_v32 = vpop.f32.mrf.mxu1 }
 0x27e   :  { %5049 = vst [vmem:[%s6628_s5] sm:$0xff] %v5258_v48  ;;  %v4993_v62 = vadd.f32 %v6576_v52, %v4977_v19  ;;  %v4978_v24 = vadd.f32 %v4886_v32, %v4696_v29  ;;  %v4847_v13 = vpop.f32.mrf.mxu0 }
 0x27f   :  { %v4992_v37 = vadd.f32 %v6576_v52, %v4976_v53  ;;  %v4888_v10 = vpop.f32.mrf.mxu1  ;;  %v5001_v63 = vmax.f32 %v4991_v22, 0.0 }
 0x280   :  { %v4994_v30 = vadd.f32 %v6576_v52, %v4978_v24  ;;  %v4848_v9 = vpop.f32.mrf.mxu0  ;;  %v5003_v25 = vmax.f32 %v4993_v62, 0.0 }
 0x281   :  { %v5002_v7 = vmax.f32 %v4992_v37, 0.0  ;;  %v4889_v34 = vpop.f32.mrf.mxu1 }
 0x282   :  { %v5004_v23 = vmax.f32 %v4994_v30, 0.0  ;;  %v4925_v47 = vpop.f32.mrf.mxu0 }
 0x283   :  { %v5259_v20 = vpack.c.bf16 %v5002_v7, %v5001_v63  ;;  %v4979_v49 = vadd.f32 %v4925_v47, %v4697_v8  ;;  %v4966_v33 = vpop.f32.mrf.mxu1 }
 0x284   :  { %v5260_v1 = vpack.c.bf16 %v5004_v23, %v5003_v25  ;;  %v4981_v2 = vadd.f32 %v4966_v33, %v4699_v28  ;;  %v4927_v61 = vpop.f32.mrf.mxu0 }
 0x285   :  { %5050 = vst [vmem:[%s6628_s5 + $0x8] sm:$0xff] %v5259_v20  ;;  %v4995_v4 = vadd.f32 %v6576_v52, %v4979_v49  ;;  %v4980_v39 = vadd.f32 %v4927_v61, %v4698_v21  ;;  %v4968_v14 = vpop.f32.mrf.mxu1 }
 0x286   :  { %5051 = vst [vmem:[%s6628_s5 + $0x10] sm:$0xff] %v5260_v1  ;;  %v4997_v55 = vadd.f32 %v6576_v52, %v4981_v2  ;;  %v4982_v26 = vadd.f32 %v4968_v14, %v4700_v17  ;;  %v4929_v56 = vpop.f32.mrf.mxu0 }
 0x287   :  { %v4996_v16 = vadd.f32 %v6576_v52, %v4980_v39  ;;  %v4970_v18 = vpop.f32.mrf.mxu1  ;;  %v5005_v12 = vmax.f32 %v4995_v4, 0.0 }
 0x288   :  { %v4998_v6 = vadd.f32 %v6576_v52, %v4982_v26  ;;  %v4930_v58 = vpop.f32.mrf.mxu0  ;;  %v5007_v36 = vmax.f32 %v4997_v55, 0.0 }
 0x289   :  { %v5006_v44 = vmax.f32 %v4996_v16, 0.0  ;;  %v4971_v31 = vpop.f32.mrf.mxu1 }
 0x28a   :  { %v5008_v35 = vmax.f32 %v4998_v6, 0.0 }
 0x28b   :  { %v5261_v60 = vpack.c.bf16 %v5006_v44, %v5005_v12 }
 0x28c   :  { %v5262_v50 = vpack.c.bf16 %v5008_v35, %v5007_v36 }
 0x28d   :  { %5052 = vst [vmem:[%s6628_s5 + $0x18] sm:$0xff] %v5261_v60 }
 0x28e   :  { %5055 = vst.msk [vmem:[%s6628_s5 + $0x20] sm:$0xff] %vm5054_vm12, %v5262_v50 }

</bundles_post_ra>
